<compile_context>
chip_gen: v7x
topology: tpu7x:2x2x1
jax: 0.10.0
libtpu: 0.0.40
codegen_flags: <defaults>
</compile_context>

<pallas_src>
import jax
import jax.numpy as jnp
from jax.experimental import pallas as pl
from jax.experimental.pallas import tpu as pltpu

# ------------------------- model hyper-parameters --------------------------
B = 2            # batch
N_REG = 8        # number of image regions / proposals
DIM_IMG = 32     # image feature dim
DIM_PPL = 32     # proposal feature dim (must equal DIM_IMG, see header)
DIM_WORD = 16    # word embedding dim (answer_hint dim)
HIDDEN = 32      # LSTM hidden size (must equal DIM_IMG, see header)
VOCAB = 50       # vocabulary size
VOCAB_PAD = 128  # lane-dense padded vocab
MAX_STEP = 6     # decode steps

PAD_IDX, SOS_IDX, EOS_IDX = 0, 1, 2
NEG_INF = -1e9


# ------------------------------ Pallas kernel ------------------------------
def fused_decoder_kernel(
    # data (loop-invariant)
    img_feats_ref, ppl_mask_ref, h0_ref, c0_ref, emb_ref,
    # visual LSTM: hoisted img_pool gate contribution (+bias), split weights
    vis_pg_ref, vis_we_ref, vis_whh_ref,
    # fg attention: query proj + bias + score vector + hoisted memory proj
    fg_wq_ref, fg_bq_ref, fg_v_ref, fg_mp_ref,
    # bg attention: split query proj (h_vis / img_fg) + bias + v + memory proj
    bg_wq1_ref, bg_wq2_ref, bg_bq_ref, bg_v_ref, bg_mp_ref,
    # language LSTM: split weights (img_fg / img_bg / h_vis / h_lang) + bias
    lang_wfg_ref, lang_wbg_ref, lang_wh_ref, lang_whh_ref, lang_b_ref,
    # vocab projection (lane-padded to VOCAB_PAD)
    proj_w_ref, proj_b_ref,
    # output: (MAX_STEP, B, VOCAB_PAD) log-probabilities
    out_ref,
):
    f32 = jnp.float32
    bf16 = jnp.bfloat16
    Bk, H = h0_ref.shape
    Vp = proj_w_ref.shape[1]
    max_step = out_ref.shape[0]

    # ---- small loop-invariant values only (a few vregs); big refs are read
    # ---- at their use sites inside the step loop.
    ppl_mask = ppl_mask_ref[...]                                  # (B, N)
    bg_mask = 1.0 - ppl_mask
    all_fg = jnp.sum(bg_mask, axis=1, keepdims=True) == 0.0
    bg_mask = jnp.where(all_fg, 1.0, bg_mask)

    vocab_iota = jax.lax.broadcasted_iota(jnp.int32, (Bk, Vp), 1).astype(f32)

    vis_pool_gates = vis_pg_ref[...]                              # (B, 4H), bias folded
    lang_b = jnp.broadcast_to(lang_b_ref[...], (Bk, 4 * H))
    fg_bq = jnp.broadcast_to(fg_bq_ref[...], (Bk, H))
    bg_bq = jnp.broadcast_to(bg_bq_ref[...], (Bk, H))
    proj_b = jnp.broadcast_to(proj_b_ref[...], (Bk, Vp))

    def bdot(x, w_ref):
        # bf16 MXU operands, f32 accumulate; weight read at use site.
        return jnp.dot(x.astype(bf16), w_ref[...], preferred_element_type=f32)

    def lstm_apply(gates, c):
        # PyTorch LSTMCell gate order i,f,g,o; single-pass nonlinearities:
        # one sigmoid over all 4H lanes + one tanh on the g slice.
        sg = jax.nn.sigmoid(gates)
        i_g = sg[:, 0:H]
        f_g = sg[:, H:2 * H]
        o_g = sg[:, 3 * H:4 * H]
        g_g = jnp.tanh(gates[:, 2 * H:3 * H])
        c_new = f_g * c + i_g * g_g
        return o_g * jnp.tanh(c_new), c_new

    def attention(qp, mp_ref, v_ref, mask):
        # additive attention; memory projection mp is precomputed (hoisted).
        e = jnp.tanh(qp[:, None, :] + mp_ref[...])                # (B, N, H)
        scores = jnp.sum(e * v_ref[...][:, None, :], axis=-1)     # (B, N)
        scores = jnp.where(mask > 0.0, scores, NEG_INF)
        scores = scores - jnp.max(scores, axis=-1, keepdims=True)
        w_ = jnp.exp(scores)
        w_ = w_ * pl.reciprocal(jnp.sum(w_, axis=-1, keepdims=True), approx=True)
        return jnp.sum(w_[:, :, None] * img_feats_ref[...], axis=1)  # (B, M)

    # TODO(synk): the reference early-break `all(decoder_in == PAD)` is a
    # data-dependent Python break; here we always run max_step steps.
    def step(t, carry):
        h_vis, c_vis, h_lang, c_lang, dec_in, fin = carry

        # word_emb: Embedding (one-hot matmul) -> ReLU (Dropout = identity)
        onehot = (vocab_iota == dec_in).astype(f32)               # (B, Vp)
        dec_emb = jnp.maximum(bdot(onehot, emb_ref), 0.0)         # (B, Dw)

        # visual LSTM: gates = (img_pool@W + b, hoisted) + dec_emb@W + h@Whh
        gates_v = vis_pool_gates + bdot(dec_emb, vis_we_ref) + bdot(h_vis, vis_whh_ref)
        h_vis, c_vis = lstm_apply(gates_v, c_vis)

        # foreground attention over image feats with ppl_mask
        qp_fg = bdot(h_vis, fg_wq_ref) + fg_bq
        img_fg = attention(qp_fg, fg_mp_ref, fg_v_ref, ppl_mask)

        # background attention, query = cat(h_vis, img_fg) -> split dots
        qp_bg = bdot(h_vis, bg_wq1_ref) + bdot(img_fg, bg_wq2_ref) + bg_bq
        img_bg = attention(qp_bg, bg_mp_ref, bg_v_ref, bg_mask)

        # language LSTM: input = cat(img_fg, img_bg, h_vis) -> split dots
        gates_l = (bdot(img_fg, lang_wfg_ref) + bdot(img_bg, lang_wbg_ref)
                   + bdot(h_vis, lang_wh_ref) + bdot(h_lang, lang_whh_ref) + lang_b)
        h_lang, c_lang = lstm_apply(gates_l, c_lang)

        # projection + log_softmax (padded lanes carry bias -1e9 -> no effect)
        logits = bdot(h_lang, proj_w_ref) + proj_b                # (B, Vp) f32
        m = jnp.max(logits, axis=-1, keepdims=True)
        lse = m + jnp.log(jnp.sum(jnp.exp(logits - m), axis=-1, keepdims=True))
        out_ref[t] = logits - lse

        # greedy argmax (first occurrence) + EOS/finish bookkeeping (all f32)
        idx = jnp.min(jnp.where(logits == m, vocab_iota, float(Vp)),
                      axis=-1, keepdims=True)                     # (B, 1)
        fin = fin + (idx == float(EOS_IDX)).astype(f32)
        dec_in = jnp.where(fin != 0.0, float(EOS_IDX), idx)
        return (h_vis, c_vis, h_lang, c_lang, dec_in, fin)

    init = (h0_ref[...], c0_ref[...], h0_ref[...], c0_ref[...],
            jnp.full((Bk, 1), float(SOS_IDX), dtype=f32),
            jnp.zeros((Bk, 1), dtype=f32))
    jax.lax.fori_loop(0, max_step, step, init, unroll=True)


# ------------------------------- full forward -------------------------------
def forward(params, img_feats, ppl_feats, answer_hint, ppl_mask):
    # ppl_feats carried for signature fidelity; the reference _decode_step
    # attends over image_feats for both fg and bg, so ppl_feats is unused.
    del ppl_feats
    bsz = img_feats.shape[0]
    f32, bf16 = jnp.float32, jnp.bfloat16

    # one-time glue (plain XLA): init hidden, image pool
    h0 = jnp.tanh(answer_hint @ params["init_h_w"] + params["init_h_b"])
    c0 = jnp.tanh(answer_hint @ params["init_c_w"] + params["init_c_b"])
    img_pool = jnp.mean(img_feats, axis=1)

    # loop-invariant attention memory projections (hoisted out of decode loop)
    fg_mp = jnp.einsum("bnm,mh->bnh", img_feats, params["fg_wm"]) + params["fg_bm"]
    bg_mp = jnp.einsum("bnm,mh->bnh", img_feats, params["bg_wm"]) + params["bg_bm"]

    # visual LSTM: hoist the loop-invariant img_pool gate contribution (+bias)
    vis_b = params["vis_bih"] + params["vis_bhh"]
    vis_pool_gates = (img_pool @ params["vis_wih"][:DIM_IMG] + vis_b).astype(f32)
    vis_w_emb = params["vis_wih"][DIM_IMG:].astype(bf16)          # (Dw, 4H)
    vis_w_hh = params["vis_whh"].astype(bf16)                     # (H, 4H)

    # language LSTM: split input weight by concat segments (img_fg|img_bg|h_vis)
    lang_w_fg = params["lang_wih"][:DIM_IMG].astype(bf16)
    lang_w_bg = params["lang_wih"][DIM_IMG:DIM_IMG + DIM_PPL].astype(bf16)
    lang_w_h = params["lang_wih"][DIM_IMG + DIM_PPL:].astype(bf16)
    lang_w_hh = params["lang_whh"].astype(bf16)
    lang_b = (params["lang_bih"] + params["lang_bhh"]).astype(f32)

    # bg attention query proj split by concat segments (h_vis | img_fg)
    bg_wq1 = params["bg_wq"][:HIDDEN].astype(bf16)
    bg_wq2 = params["bg_wq"][HIDDEN:].astype(bf16)
    fg_wq = params["fg_wq"].astype(bf16)

    # lane-dense (128) padded vocab projection / embedding table
    proj_w = (jnp.zeros((HIDDEN, VOCAB_PAD), f32)
              .at[:, :VOCAB].set(params["proj_w"])).astype(bf16)
    proj_b = jnp.full((1, VOCAB_PAD), NEG_INF, f32).at[:, :VOCAB].set(params["proj_b"])
    emb_pad = (jnp.zeros((VOCAB_PAD, DIM_WORD), f32)
               .at[:VOCAB, :].set(params["emb"])).astype(bf16)

    vmem = pl.BlockSpec(memory_space=pltpu.MemorySpace.VMEM)
    inputs = (img_feats.astype(f32), ppl_mask.astype(f32), h0, c0, emb_pad,
              vis_pool_gates, vis_w_emb, vis_w_hh,
              fg_wq, params["fg_bq"], params["fg_v"], fg_mp,
              bg_wq1, bg_wq2, params["bg_bq"], params["bg_v"], bg_mp,
              lang_w_fg, lang_w_bg, lang_w_h, lang_w_hh, lang_b,
              proj_w, proj_b)

    out = pl.pallas_call(
        fused_decoder_kernel,
        out_shape=jax.ShapeDtypeStruct((MAX_STEP, bsz, VOCAB_PAD), f32),
        in_specs=[vmem] * len(inputs),
        out_specs=vmem,
    )(*inputs)

    # (MAX_STEP, B, VOCAB_PAD) -> (B, MAX_STEP, VOCAB)
    return jnp.transpose(out, (1, 0, 2))[:, :, :VOCAB]


# ------------------------------ parameter init ------------------------------
def init_params(key):
    def nrm(k, shape, scale=0.1):
        return (scale * jax.random.normal(k, shape)).astype(jnp.float32)

    keys = jax.random.split(key, 32)
    ki = iter(keys)
    p = {}
    p["emb"] = nrm(next(ki), (VOCAB, DIM_WORD))
    p["init_h_w"] = nrm(next(ki), (DIM_WORD, HIDDEN))
    p["init_h_b"] = nrm(next(ki), (HIDDEN,))
    p["init_c_w"] = nrm(next(ki), (DIM_WORD, HIDDEN))
    p["init_c_b"] = nrm(next(ki), (HIDDEN,))
    # visual LSTM: input = dim_img + dim_word
    p["vis_wih"] = nrm(next(ki), (DIM_IMG + DIM_WORD, 4 * HIDDEN))
    p["vis_whh"] = nrm(next(ki), (HIDDEN, 4 * HIDDEN))
    p["vis_bih"] = nrm(next(ki), (1, 4 * HIDDEN))
    p["vis_bhh"] = nrm(next(ki), (1, 4 * HIDDEN))
    # fg attention: query=HIDDEN, memory=DIM_IMG
    p["fg_wq"] = nrm(next(ki), (HIDDEN, HIDDEN))
    p["fg_bq"] = nrm(next(ki), (1, HIDDEN))
    p["fg_wm"] = nrm(next(ki), (DIM_IMG, HIDDEN))
    p["fg_bm"] = nrm(next(ki), (1, HIDDEN))
    p["fg_v"] = nrm(next(ki), (1, HIDDEN))
    # bg attention: query=2*HIDDEN, memory=DIM_PPL (== DIM_IMG)
    p["bg_wq"] = nrm(next(ki), (2 * HIDDEN, HIDDEN))
    p["bg_bq"] = nrm(next(ki), (1, HIDDEN))
    p["bg_wm"] = nrm(next(ki), (DIM_PPL, HIDDEN))
    p["bg_bm"] = nrm(next(ki), (1, HIDDEN))
    p["bg_v"] = nrm(next(ki), (1, HIDDEN))
    # language LSTM: input = dim_img + dim_ppl + hidden (concat order fg|bg|h)
    p["lang_wih"] = nrm(next(ki), (DIM_IMG + DIM_PPL + HIDDEN, 4 * HIDDEN))
    p["lang_whh"] = nrm(next(ki), (HIDDEN, 4 * HIDDEN))
    p["lang_bih"] = nrm(next(ki), (1, 4 * HIDDEN))
    p["lang_bhh"] = nrm(next(ki), (1, 4 * HIDDEN))
    # projection
    p["proj_w"] = nrm(next(ki), (HIDDEN, VOCAB))
    p["proj_b"] = nrm(next(ki), (1, VOCAB))
    return p


# ---------------------------------- main ------------------------------------
if __name__ == "__main__":
    key = jax.random.PRNGKey(0)
    k_par, k_img, k_ppl, k_ans, k_msk = jax.random.split(key, 5)

    params = init_params(k_par)

    img_feats = jax.random.normal(k_img, (B, N_REG, DIM_IMG), dtype=jnp.float32)
    ppl_feats = jax.random.normal(k_ppl, (B, N_REG, DIM_PPL), dtype=jnp.float32)
    answer_hint = jax.random.normal(k_ans, (B, DIM_WORD), dtype=jnp.float32)
    ppl_mask = jax.random.bernoulli(k_msk, 0.5, (B, N_REG)).astype(jnp.float32)
    ppl_mask = ppl_mask.at[:, 0].set(1.0)  # ensure at least one fg region per row

    out = forward(params, img_feats, ppl_feats, answer_hint, ppl_mask)
    out = jax.block_until_ready(out)

    assert out.shape == (B, MAX_STEP, VOCAB), out.shape
    # log-probabilities: each row should (exp-)sum to ~1
    row_sums = jnp.sum(jnp.exp(out), axis=-1)
    assert bool(jnp.all(jnp.abs(row_sums - 1.0) < 1e-3))
    assert bool(jnp.all(jnp.isfinite(out)))

    print("KERNEL_OK")
</pallas_src>

<mosaic_0001>
module attributes {stable_mosaic.version = 11 : i64} {
  func.func @fused_decoder_kernel(%arg0: memref<2x8x32xf32, #tpu.memory_space<vmem>>, %arg1: memref<2x8xf32, #tpu.memory_space<vmem>>, %arg2: memref<2x32xf32, #tpu.memory_space<vmem>>, %arg3: memref<2x32xf32, #tpu.memory_space<vmem>>, %arg4: memref<128x16xbf16, #tpu.memory_space<vmem>>, %arg5: memref<2x128xf32, #tpu.memory_space<vmem>>, %arg6: memref<16x128xbf16, #tpu.memory_space<vmem>>, %arg7: memref<32x128xbf16, #tpu.memory_space<vmem>>, %arg8: memref<32x32xbf16, #tpu.memory_space<vmem>>, %arg9: memref<1x32xf32, #tpu.memory_space<vmem>>, %arg10: memref<1x32xf32, #tpu.memory_space<vmem>>, %arg11: memref<2x8x32xf32, #tpu.memory_space<vmem>>, %arg12: memref<32x32xbf16, #tpu.memory_space<vmem>>, %arg13: memref<32x32xbf16, #tpu.memory_space<vmem>>, %arg14: memref<1x32xf32, #tpu.memory_space<vmem>>, %arg15: memref<1x32xf32, #tpu.memory_space<vmem>>, %arg16: memref<2x8x32xf32, #tpu.memory_space<vmem>>, %arg17: memref<32x128xbf16, #tpu.memory_space<vmem>>, %arg18: memref<32x128xbf16, #tpu.memory_space<vmem>>, %arg19: memref<32x128xbf16, #tpu.memory_space<vmem>>, %arg20: memref<32x128xbf16, #tpu.memory_space<vmem>>, %arg21: memref<1x128xf32, #tpu.memory_space<vmem>>, %arg22: memref<32x128xbf16, #tpu.memory_space<vmem>>, %arg23: memref<1x128xf32, #tpu.memory_space<vmem>>, %arg24: memref<6x2x128xf32, #tpu.memory_space<vmem>>) attributes {dimension_semantics = [], scalar_prefetch = 0 : i64, scratch_operands = 0 : i64, tpu.core_type = #tpu.core_type<tc>} {
    %c0 = arith.constant 0 : index
    %c0_0 = arith.constant 0 : index
    %0 = vector.load %arg1[%c0, %c0_0] : memref<2x8xf32, #tpu.memory_space<vmem>>, vector<2x8xf32>
    %cst = arith.constant 1.000000e+00 : f32
    %1 = vector.broadcast %cst : f32 to vector<2x8xf32>
    %2 = arith.subf %1, %0 : vector<2x8xf32>
    %cst_1 = arith.constant dense<0.000000e+00> : vector<2xf32>
    %3 = vector.multi_reduction <add>, %2, %cst_1 [1] : vector<2x8xf32> to vector<2xf32>
    %4 = vector.shape_cast %3 : vector<2xf32> to vector<2x1xf32>
    %cst_2 = arith.constant 0.000000e+00 : f32
    %5 = vector.broadcast %cst_2 : f32 to vector<2x1xf32>
    %6 = arith.cmpf oeq, %4, %5 : vector<2x1xf32>
    %cst_3 = arith.constant 1.000000e+00 : f32
    %7 = vector.shape_cast %6 : vector<2x1xi1> to vector<2x1xi1>
    %8 = vector.broadcast %7 : vector<2x1xi1> to vector<2x8xi1>
    %9 = vector.broadcast %cst_3 : f32 to vector<2x8xf32>
    %10 = arith.select %8, %9, %2 : vector<2x8xi1>, vector<2x8xf32>
    %11 = tpu.iota {dimensions = array<i32: 1>} : vector<2x128xi32>
    %12 = arith.sitofp %11 : vector<2x128xi32> to vector<2x128xf32>
    %c0_4 = arith.constant 0 : index
    %c0_5 = arith.constant 0 : index
    %13 = vector.load %arg5[%c0_4, %c0_5] : memref<2x128xf32, #tpu.memory_space<vmem>>, vector<2x128xf32>
    %c0_6 = arith.constant 0 : index
    %c0_7 = arith.constant 0 : index
    %14 = vector.load %arg21[%c0_6, %c0_7] : memref<1x128xf32, #tpu.memory_space<vmem>>, vector<1x128xf32>
    %15 = vector.shape_cast %14 : vector<1x128xf32> to vector<1x128xf32>
    %16 = vector.broadcast %15 : vector<1x128xf32> to vector<2x128xf32>
    %c0_8 = arith.constant 0 : index
    %c0_9 = arith.constant 0 : index
    %17 = vector.load %arg9[%c0_8, %c0_9] : memref<1x32xf32, #tpu.memory_space<vmem>>, vector<1x32xf32>
    %18 = vector.shape_cast %17 : vector<1x32xf32> to vector<1x32xf32>
    %19 = vector.broadcast %18 : vector<1x32xf32> to vector<2x32xf32>
    %c0_10 = arith.constant 0 : index
    %c0_11 = arith.constant 0 : index
    %20 = vector.load %arg14[%c0_10, %c0_11] : memref<1x32xf32, #tpu.memory_space<vmem>>, vector<1x32xf32>
    %21 = vector.shape_cast %20 : vector<1x32xf32> to vector<1x32xf32>
    %22 = vector.broadcast %21 : vector<1x32xf32> to vector<2x32xf32>
    %c0_12 = arith.constant 0 : index
    %c0_13 = arith.constant 0 : index
    %23 = vector.load %arg23[%c0_12, %c0_13] : memref<1x128xf32, #tpu.memory_space<vmem>>, vector<1x128xf32>
    %24 = vector.shape_cast %23 : vector<1x128xf32> to vector<1x128xf32>
    %25 = vector.broadcast %24 : vector<1x128xf32> to vector<2x128xf32>
    %c0_14 = arith.constant 0 : index
    %c0_15 = arith.constant 0 : index
    %26 = vector.load %arg2[%c0_14, %c0_15] : memref<2x32xf32, #tpu.memory_space<vmem>>, vector<2x32xf32>
    %c0_16 = arith.constant 0 : index
    %c0_17 = arith.constant 0 : index
    %27 = vector.load %arg3[%c0_16, %c0_17] : memref<2x32xf32, #tpu.memory_space<vmem>>, vector<2x32xf32>
    %c0_18 = arith.constant 0 : index
    %c0_19 = arith.constant 0 : index
    %28 = vector.load %arg2[%c0_18, %c0_19] : memref<2x32xf32, #tpu.memory_space<vmem>>, vector<2x32xf32>
    %c0_20 = arith.constant 0 : index
    %c0_21 = arith.constant 0 : index
    %29 = vector.load %arg3[%c0_20, %c0_21] : memref<2x32xf32, #tpu.memory_space<vmem>>, vector<2x32xf32>
    %cst_22 = arith.constant 1.000000e+00 : f32
    %30 = vector.broadcast %cst_22 : f32 to vector<2x1xf32>
    %cst_23 = arith.constant 0.000000e+00 : f32
    %31 = vector.broadcast %cst_23 : f32 to vector<2x1xf32>
    %c0_i32 = arith.constant 0 : i32
    %32 = vector.broadcast %30 : vector<2x1xf32> to vector<2x128xf32>
    %33 = arith.cmpf oeq, %12, %32 : vector<2x128xf32>
    %34 = arith.extui %33 : vector<2x128xi1> to vector<2x128xi32>
    %35 = arith.sitofp %34 : vector<2x128xi32> to vector<2x128xf32>
    %36 = arith.truncf %35 : vector<2x128xf32> to vector<2x128xbf16>
    %c0_24 = arith.constant 0 : index
    %c0_25 = arith.constant 0 : index
    %37 = vector.load %arg4[%c0_24, %c0_25] : memref<128x16xbf16, #tpu.memory_space<vmem>>, vector<128x16xbf16>
    %cst_26 = arith.constant dense<0.000000e+00> : vector<2x16xf32>
    %38 = tpu.matmul %36, %37, %cst_26 {dimension_numbers = #tpu.dot_dimension_numbers<[1], [0], [0], [1], [0, 0, 1, 1], [], []>} : vector<2x128xbf16>, vector<128x16xbf16>, vector<2x16xf32> -> vector<2x16xf32>
    %cst_27 = arith.constant 0.000000e+00 : f32
    %39 = vector.broadcast %cst_27 : f32 to vector<2x16xf32>
    %40 = arith.maximumf %38, %39 : vector<2x16xf32>
    %41 = arith.truncf %40 : vector<2x16xf32> to vector<2x16xbf16>
    %c0_28 = arith.constant 0 : index
    %c0_29 = arith.constant 0 : index
    %42 = vector.load %arg6[%c0_28, %c0_29] : memref<16x128xbf16, #tpu.memory_space<vmem>>, vector<16x128xbf16>
    %cst_30 = arith.constant dense<0.000000e+00> : vector<2x128xf32>
    %43 = tpu.matmul %41, %42, %cst_30 {dimension_numbers = #tpu.dot_dimension_numbers<[1], [0], [0], [1], [0, 0, 1, 1], [], []>} : vector<2x16xbf16>, vector<16x128xbf16>, vector<2x128xf32> -> vector<2x128xf32>
    %44 = arith.addf %13, %43 : vector<2x128xf32>
    %45 = arith.truncf %26 : vector<2x32xf32> to vector<2x32xbf16>
    %c0_31 = arith.constant 0 : index
    %c0_32 = arith.constant 0 : index
    %46 = vector.load %arg7[%c0_31, %c0_32] : memref<32x128xbf16, #tpu.memory_space<vmem>>, vector<32x128xbf16>
    %cst_33 = arith.constant dense<0.000000e+00> : vector<2x128xf32>
    %47 = tpu.matmul %45, %46, %cst_33 {dimension_numbers = #tpu.dot_dimension_numbers<[1], [0], [0], [1], [0, 0, 1, 1], [], []>} : vector<2x32xbf16>, vector<32x128xbf16>, vector<2x128xf32> -> vector<2x128xf32>
    %48 = arith.addf %44, %47 : vector<2x128xf32>
    %49 = arith.negf %48 : vector<2x128xf32>
    %50 = math.exp %49 : vector<2x128xf32>
    %cst_34 = arith.constant 1.000000e+00 : f32
    %51 = vector.broadcast %cst_34 : f32 to vector<2x128xf32>
    %52 = arith.addf %51, %50 : vector<2x128xf32>
    %53 = arith.divf %51, %52 : vector<2x128xf32>
    %54 = vector.extract_strided_slice %53 {offsets = [0, 0], sizes = [2, 32], strides = [1, 1]} : vector<2x128xf32> to vector<2x32xf32>
    %55 = vector.extract_strided_slice %53 {offsets = [0, 32], sizes = [2, 32], strides = [1, 1]} : vector<2x128xf32> to vector<2x32xf32>
    %56 = vector.extract_strided_slice %53 {offsets = [0, 96], sizes = [2, 32], strides = [1, 1]} : vector<2x128xf32> to vector<2x32xf32>
    %57 = vector.extract_strided_slice %48 {offsets = [0, 64], sizes = [2, 32], strides = [1, 1]} : vector<2x128xf32> to vector<2x32xf32>
    %58 = math.tanh %57 : vector<2x32xf32>
    %59 = arith.mulf %55, %27 : vector<2x32xf32>
    %60 = arith.mulf %54, %58 : vector<2x32xf32>
    %61 = arith.addf %59, %60 : vector<2x32xf32>
    %62 = math.tanh %61 : vector<2x32xf32>
    %63 = arith.mulf %56, %62 : vector<2x32xf32>
    %64 = arith.truncf %63 : vector<2x32xf32> to vector<2x32xbf16>
    %c0_35 = arith.constant 0 : index
    %c0_36 = arith.constant 0 : index
    %65 = vector.load %arg8[%c0_35, %c0_36] : memref<32x32xbf16, #tpu.memory_space<vmem>>, vector<32x32xbf16>
    %cst_37 = arith.constant dense<0.000000e+00> : vector<2x32xf32>
    %66 = tpu.matmul %64, %65, %cst_37 {dimension_numbers = #tpu.dot_dimension_numbers<[1], [0], [0], [1], [0, 0, 1, 1], [], []>} : vector<2x32xbf16>, vector<32x32xbf16>, vector<2x32xf32> -> vector<2x32xf32>
    %67 = arith.addf %66, %19 : vector<2x32xf32>
    %68 = vector.shape_cast %67 : vector<2x32xf32> to vector<2x1x32xf32>
    %c0_38 = arith.constant 0 : index
    %c0_39 = arith.constant 0 : index
    %c0_40 = arith.constant 0 : index
    %69 = vector.load %arg11[%c0_38, %c0_39, %c0_40] : memref<2x8x32xf32, #tpu.memory_space<vmem>>, vector<2x8x32xf32>
    %70 = vector.broadcast %68 : vector<2x1x32xf32> to vector<2x8x32xf32>
    %71 = arith.addf %70, %69 : vector<2x8x32xf32>
    %72 = math.tanh %71 : vector<2x8x32xf32>
    %c0_41 = arith.constant 0 : index
    %c0_42 = arith.constant 0 : index
    %73 = vector.load %arg10[%c0_41, %c0_42] : memref<1x32xf32, #tpu.memory_space<vmem>>, vector<1x32xf32>
    %74 = vector.shape_cast %73 : vector<1x32xf32> to vector<1x1x32xf32>
    %75 = vector.broadcast %74 : vector<1x1x32xf32> to vector<2x8x32xf32>
    %76 = arith.mulf %72, %75 : vector<2x8x32xf32>
    %cst_43 = arith.constant dense<0.000000e+00> : vector<2x8xf32>
    %77 = vector.multi_reduction <add>, %76, %cst_43 [2] : vector<2x8x32xf32> to vector<2x8xf32>
    %cst_44 = arith.constant 0.000000e+00 : f32
    %78 = vector.broadcast %cst_44 : f32 to vector<2x8xf32>
    %79 = arith.cmpf ogt, %0, %78 : vector<2x8xf32>
    %cst_45 = arith.constant -1.000000e+09 : f32
    %80 = vector.broadcast %cst_45 : f32 to vector<2x8xf32>
    %81 = arith.select %79, %77, %80 : vector<2x8xi1>, vector<2x8xf32>
    %cst_46 = arith.constant dense<0xFF800000> : vector<2xf32>
    %82 = vector.multi_reduction <maximumf>, %81, %cst_46 [1] : vector<2x8xf32> to vector<2xf32>
    %83 = vector.shape_cast %82 : vector<2xf32> to vector<2x1xf32>
    %84 = vector.broadcast %83 : vector<2x1xf32> to vector<2x8xf32>
    %85 = arith.subf %81, %84 : vector<2x8xf32>
    %86 = math.exp %85 : vector<2x8xf32>
    %cst_47 = arith.constant dense<0.000000e+00> : vector<2xf32>
    %87 = vector.multi_reduction <add>, %86, %cst_47 [1] : vector<2x8xf32> to vector<2xf32>
    %88 = vector.shape_cast %87 : vector<2xf32> to vector<2x1xf32>
    %89 = tpu.reciprocal %88 {approx = true} : vector<2x1xf32> -> vector<2x1xf32>
    %90 = vector.broadcast %89 : vector<2x1xf32> to vector<2x8xf32>
    %91 = arith.mulf %86, %90 : vector<2x8xf32>
    %92 = vector.shape_cast %91 : vector<2x8xf32> to vector<2x8x1xf32>
    %c0_48 = arith.constant 0 : index
    %c0_49 = arith.constant 0 : index
    %c0_50 = arith.constant 0 : index
    %93 = vector.load %arg0[%c0_48, %c0_49, %c0_50] : memref<2x8x32xf32, #tpu.memory_space<vmem>>, vector<2x8x32xf32>
    %94 = vector.broadcast %92 : vector<2x8x1xf32> to vector<2x8x32xf32>
    %95 = arith.mulf %94, %93 : vector<2x8x32xf32>
    %cst_51 = arith.constant dense<0.000000e+00> : vector<2x32xf32>
    %96 = vector.multi_reduction <add>, %95, %cst_51 [1] : vector<2x8x32xf32> to vector<2x32xf32>
    %97 = arith.truncf %63 : vector<2x32xf32> to vector<2x32xbf16>
    %c0_52 = arith.constant 0 : index
    %c0_53 = arith.constant 0 : index
    %98 = vector.load %arg12[%c0_52, %c0_53] : memref<32x32xbf16, #tpu.memory_space<vmem>>, vector<32x32xbf16>
    %cst_54 = arith.constant dense<0.000000e+00> : vector<2x32xf32>
    %99 = tpu.matmul %97, %98, %cst_54 {dimension_numbers = #tpu.dot_dimension_numbers<[1], [0], [0], [1], [0, 0, 1, 1], [], []>} : vector<2x32xbf16>, vector<32x32xbf16>, vector<2x32xf32> -> vector<2x32xf32>
    %100 = arith.truncf %96 : vector<2x32xf32> to vector<2x32xbf16>
    %c0_55 = arith.constant 0 : index
    %c0_56 = arith.constant 0 : index
    %101 = vector.load %arg13[%c0_55, %c0_56] : memref<32x32xbf16, #tpu.memory_space<vmem>>, vector<32x32xbf16>
    %cst_57 = arith.constant dense<0.000000e+00> : vector<2x32xf32>
    %102 = tpu.matmul %100, %101, %cst_57 {dimension_numbers = #tpu.dot_dimension_numbers<[1], [0], [0], [1], [0, 0, 1, 1], [], []>} : vector<2x32xbf16>, vector<32x32xbf16>, vector<2x32xf32> -> vector<2x32xf32>
    %103 = arith.addf %99, %102 : vector<2x32xf32>
    %104 = arith.addf %103, %22 : vector<2x32xf32>
    %105 = vector.shape_cast %104 : vector<2x32xf32> to vector<2x1x32xf32>
    %c0_58 = arith.constant 0 : index
    %c0_59 = arith.constant 0 : index
    %c0_60 = arith.constant 0 : index
    %106 = vector.load %arg16[%c0_58, %c0_59, %c0_60] : memref<2x8x32xf32, #tpu.memory_space<vmem>>, vector<2x8x32xf32>
    %107 = vector.broadcast %105 : vector<2x1x32xf32> to vector<2x8x32xf32>
    %108 = arith.addf %107, %106 : vector<2x8x32xf32>
    %109 = math.tanh %108 : vector<2x8x32xf32>
    %c0_61 = arith.constant 0 : index
    %c0_62 = arith.constant 0 : index
    %110 = vector.load %arg15[%c0_61, %c0_62] : memref<1x32xf32, #tpu.memory_space<vmem>>, vector<1x32xf32>
    %111 = vector.shape_cast %110 : vector<1x32xf32> to vector<1x1x32xf32>
    %112 = vector.broadcast %111 : vector<1x1x32xf32> to vector<2x8x32xf32>
    %113 = arith.mulf %109, %112 : vector<2x8x32xf32>
    %cst_63 = arith.constant dense<0.000000e+00> : vector<2x8xf32>
    %114 = vector.multi_reduction <add>, %113, %cst_63 [2] : vector<2x8x32xf32> to vector<2x8xf32>
    %cst_64 = arith.constant 0.000000e+00 : f32
    %115 = vector.broadcast %cst_64 : f32 to vector<2x8xf32>
    %116 = arith.cmpf ogt, %10, %115 : vector<2x8xf32>
    %cst_65 = arith.constant -1.000000e+09 : f32
    %117 = vector.broadcast %cst_65 : f32 to vector<2x8xf32>
    %118 = arith.select %116, %114, %117 : vector<2x8xi1>, vector<2x8xf32>
    %cst_66 = arith.constant dense<0xFF800000> : vector<2xf32>
    %119 = vector.multi_reduction <maximumf>, %118, %cst_66 [1] : vector<2x8xf32> to vector<2xf32>
    %120 = vector.shape_cast %119 : vector<2xf32> to vector<2x1xf32>
    %121 = vector.broadcast %120 : vector<2x1xf32> to vector<2x8xf32>
    %122 = arith.subf %118, %121 : vector<2x8xf32>
    %123 = math.exp %122 : vector<2x8xf32>
    %cst_67 = arith.constant dense<0.000000e+00> : vector<2xf32>
    %124 = vector.multi_reduction <add>, %123, %cst_67 [1] : vector<2x8xf32> to vector<2xf32>
    %125 = vector.shape_cast %124 : vector<2xf32> to vector<2x1xf32>
    %126 = tpu.reciprocal %125 {approx = true} : vector<2x1xf32> -> vector<2x1xf32>
    %127 = vector.broadcast %126 : vector<2x1xf32> to vector<2x8xf32>
    %128 = arith.mulf %123, %127 : vector<2x8xf32>
    %129 = vector.shape_cast %128 : vector<2x8xf32> to vector<2x8x1xf32>
    %c0_68 = arith.constant 0 : index
    %c0_69 = arith.constant 0 : index
    %c0_70 = arith.constant 0 : index
    %130 = vector.load %arg0[%c0_68, %c0_69, %c0_70] : memref<2x8x32xf32, #tpu.memory_space<vmem>>, vector<2x8x32xf32>
    %131 = vector.broadcast %129 : vector<2x8x1xf32> to vector<2x8x32xf32>
    %132 = arith.mulf %131, %130 : vector<2x8x32xf32>
    %cst_71 = arith.constant dense<0.000000e+00> : vector<2x32xf32>
    %133 = vector.multi_reduction <add>, %132, %cst_71 [1] : vector<2x8x32xf32> to vector<2x32xf32>
    %134 = arith.truncf %96 : vector<2x32xf32> to vector<2x32xbf16>
    %c0_72 = arith.constant 0 : index
    %c0_73 = arith.constant 0 : index
    %135 = vector.load %arg17[%c0_72, %c0_73] : memref<32x128xbf16, #tpu.memory_space<vmem>>, vector<32x128xbf16>
    %cst_74 = arith.constant dense<0.000000e+00> : vector<2x128xf32>
    %136 = tpu.matmul %134, %135, %cst_74 {dimension_numbers = #tpu.dot_dimension_numbers<[1], [0], [0], [1], [0, 0, 1, 1], [], []>} : vector<2x32xbf16>, vector<32x128xbf16>, vector<2x128xf32> -> vector<2x128xf32>
    %137 = arith.truncf %133 : vector<2x32xf32> to vector<2x32xbf16>
    %c0_75 = arith.constant 0 : index
    %c0_76 = arith.constant 0 : index
    %138 = vector.load %arg18[%c0_75, %c0_76] : memref<32x128xbf16, #tpu.memory_space<vmem>>, vector<32x128xbf16>
    %cst_77 = arith.constant dense<0.000000e+00> : vector<2x128xf32>
    %139 = tpu.matmul %137, %138, %cst_77 {dimension_numbers = #tpu.dot_dimension_numbers<[1], [0], [0], [1], [0, 0, 1, 1], [], []>} : vector<2x32xbf16>, vector<32x128xbf16>, vector<2x128xf32> -> vector<2x128xf32>
    %140 = arith.addf %136, %139 : vector<2x128xf32>
    %141 = arith.truncf %63 : vector<2x32xf32> to vector<2x32xbf16>
    %c0_78 = arith.constant 0 : index
    %c0_79 = arith.constant 0 : index
    %142 = vector.load %arg19[%c0_78, %c0_79] : memref<32x128xbf16, #tpu.memory_space<vmem>>, vector<32x128xbf16>
    %cst_80 = arith.constant dense<0.000000e+00> : vector<2x128xf32>
    %143 = tpu.matmul %141, %142, %cst_80 {dimension_numbers = #tpu.dot_dimension_numbers<[1], [0], [0], [1], [0, 0, 1, 1], [], []>} : vector<2x32xbf16>, vector<32x128xbf16>, vector<2x128xf32> -> vector<2x128xf32>
    %144 = arith.addf %140, %143 : vector<2x128xf32>
    %145 = arith.truncf %28 : vector<2x32xf32> to vector<2x32xbf16>
    %c0_81 = arith.constant 0 : index
    %c0_82 = arith.constant 0 : index
    %146 = vector.load %arg20[%c0_81, %c0_82] : memref<32x128xbf16, #tpu.memory_space<vmem>>, vector<32x128xbf16>
    %cst_83 = arith.constant dense<0.000000e+00> : vector<2x128xf32>
    %147 = tpu.matmul %145, %146, %cst_83 {dimension_numbers = #tpu.dot_dimension_numbers<[1], [0], [0], [1], [0, 0, 1, 1], [], []>} : vector<2x32xbf16>, vector<32x128xbf16>, vector<2x128xf32> -> vector<2x128xf32>
    %148 = arith.addf %144, %147 : vector<2x128xf32>
    %149 = arith.addf %148, %16 : vector<2x128xf32>
    %150 = arith.negf %149 : vector<2x128xf32>
    %151 = math.exp %150 : vector<2x128xf32>
    %cst_84 = arith.constant 1.000000e+00 : f32
    %152 = vector.broadcast %cst_84 : f32 to vector<2x128xf32>
    %153 = arith.addf %152, %151 : vector<2x128xf32>
    %154 = arith.divf %152, %153 : vector<2x128xf32>
    %155 = vector.extract_strided_slice %154 {offsets = [0, 0], sizes = [2, 32], strides = [1, 1]} : vector<2x128xf32> to vector<2x32xf32>
    %156 = vector.extract_strided_slice %154 {offsets = [0, 32], sizes = [2, 32], strides = [1, 1]} : vector<2x128xf32> to vector<2x32xf32>
    %157 = vector.extract_strided_slice %154 {offsets = [0, 96], sizes = [2, 32], strides = [1, 1]} : vector<2x128xf32> to vector<2x32xf32>
    %158 = vector.extract_strided_slice %149 {offsets = [0, 64], sizes = [2, 32], strides = [1, 1]} : vector<2x128xf32> to vector<2x32xf32>
    %159 = math.tanh %158 : vector<2x32xf32>
    %160 = arith.mulf %156, %29 : vector<2x32xf32>
    %161 = arith.mulf %155, %159 : vector<2x32xf32>
    %162 = arith.addf %160, %161 : vector<2x32xf32>
    %163 = math.tanh %162 : vector<2x32xf32>
    %164 = arith.mulf %157, %163 : vector<2x32xf32>
    %165 = arith.truncf %164 : vector<2x32xf32> to vector<2x32xbf16>
    %c0_85 = arith.constant 0 : index
    %c0_86 = arith.constant 0 : index
    %166 = vector.load %arg22[%c0_85, %c0_86] : memref<32x128xbf16, #tpu.memory_space<vmem>>, vector<32x128xbf16>
    %cst_87 = arith.constant dense<0.000000e+00> : vector<2x128xf32>
    %167 = tpu.matmul %165, %166, %cst_87 {dimension_numbers = #tpu.dot_dimension_numbers<[1], [0], [0], [1], [0, 0, 1, 1], [], []>} : vector<2x32xbf16>, vector<32x128xbf16>, vector<2x128xf32> -> vector<2x128xf32>
    %168 = arith.addf %167, %25 : vector<2x128xf32>
    %cst_88 = arith.constant dense<0xFF800000> : vector<2xf32>
    %169 = vector.multi_reduction <maximumf>, %168, %cst_88 [1] : vector<2x128xf32> to vector<2xf32>
    %170 = vector.shape_cast %169 : vector<2xf32> to vector<2x1xf32>
    %171 = vector.broadcast %170 : vector<2x1xf32> to vector<2x128xf32>
    %172 = arith.subf %168, %171 : vector<2x128xf32>
    %173 = math.exp %172 : vector<2x128xf32>
    %cst_89 = arith.constant dense<0.000000e+00> : vector<2xf32>
    %174 = vector.multi_reduction <add>, %173, %cst_89 [1] : vector<2x128xf32> to vector<2xf32>
    %175 = vector.shape_cast %174 : vector<2xf32> to vector<2x1xf32>
    %176 = math.log %175 : vector<2x1xf32>
    %177 = arith.addf %170, %176 : vector<2x1xf32>
    %178 = vector.broadcast %177 : vector<2x1xf32> to vector<2x128xf32>
    %179 = arith.subf %168, %178 : vector<2x128xf32>
    %180 = arith.index_cast %c0_i32 : i32 to index
    %c0_90 = arith.constant 0 : index
    %c0_91 = arith.constant 0 : index
    %181 = vector.load %arg24[%180, %c0_90, %c0_91] : memref<6x2x128xf32, #tpu.memory_space<vmem>>, vector<1x2x128xf32>
    %182 = vector.shape_cast %181 : vector<1x2x128xf32> to vector<2x128xf32>
    %183 = vector.shape_cast %179 : vector<2x128xf32> to vector<1x2x128xf32>
    tpu.vector_store %arg24[%180, %c0_90, %c0_91], %183 {strides = array<i32>} : memref<6x2x128xf32, #tpu.memory_space<vmem>>, vector<1x2x128xf32>,
    %184 = vector.broadcast %170 : vector<2x1xf32> to vector<2x128xf32>
    %185 = arith.cmpf oeq, %168, %184 : vector<2x128xf32>
    %cst_92 = arith.constant 1.280000e+02 : f32
    %186 = vector.broadcast %cst_92 : f32 to vector<2x128xf32>
    %187 = arith.select %185, %12, %186 : vector<2x128xi1>, vector<2x128xf32>
    %cst_93 = arith.constant dense<0x7F800000> : vector<2xf32>
    %188 = vector.multi_reduction <minimumf>, %187, %cst_93 [1] : vector<2x128xf32> to vector<2xf32>
    %189 = vector.shape_cast %188 : vector<2xf32> to vector<2x1xf32>
    %cst_94 = arith.constant 2.000000e+00 : f32
    %190 = vector.broadcast %cst_94 : f32 to vector<2x1xf32>
    %191 = arith.cmpf oeq, %189, %190 : vector<2x1xf32>
    %192 = arith.extui %191 : vector<2x1xi1> to vector<2x1xi32>
    %193 = arith.sitofp %192 : vector<2x1xi32> to vector<2x1xf32>
    %194 = arith.addf %31, %193 : vector<2x1xf32>
    %cst_95 = arith.constant 0.000000e+00 : f32
    %195 = vector.broadcast %cst_95 : f32 to vector<2x1xf32>
    %196 = arith.cmpf one, %194, %195 : vector<2x1xf32>
    %cst_96 = arith.constant 2.000000e+00 : f32
    %197 = vector.broadcast %cst_96 : f32 to vector<2x1xf32>
    %198 = arith.select %196, %197, %189 : vector<2x1xi1>, vector<2x1xf32>
    %c1_i32 = arith.constant 1 : i32
    %199 = vector.broadcast %198 : vector<2x1xf32> to vector<2x128xf32>
    %200 = arith.cmpf oeq, %12, %199 : vector<2x128xf32>
    %201 = arith.extui %200 : vector<2x128xi1> to vector<2x128xi32>
    %202 = arith.sitofp %201 : vector<2x128xi32> to vector<2x128xf32>
    %203 = arith.truncf %202 : vector<2x128xf32> to vector<2x128xbf16>
    %c0_97 = arith.constant 0 : index
    %c0_98 = arith.constant 0 : index
    %204 = vector.load %arg4[%c0_97, %c0_98] : memref<128x16xbf16, #tpu.memory_space<vmem>>, vector<128x16xbf16>
    %cst_99 = arith.constant dense<0.000000e+00> : vector<2x16xf32>
    %205 = tpu.matmul %203, %204, %cst_99 {dimension_numbers = #tpu.dot_dimension_numbers<[1], [0], [0], [1], [0, 0, 1, 1], [], []>} : vector<2x128xbf16>, vector<128x16xbf16>, vector<2x16xf32> -> vector<2x16xf32>
    %cst_100 = arith.constant 0.000000e+00 : f32
    %206 = vector.broadcast %cst_100 : f32 to vector<2x16xf32>
    %207 = arith.maximumf %205, %206 : vector<2x16xf32>
    %208 = arith.truncf %207 : vector<2x16xf32> to vector<2x16xbf16>
    %c0_101 = arith.constant 0 : index
    %c0_102 = arith.constant 0 : index
    %209 = vector.load %arg6[%c0_101, %c0_102] : memref<16x128xbf16, #tpu.memory_space<vmem>>, vector<16x128xbf16>
    %cst_103 = arith.constant dense<0.000000e+00> : vector<2x128xf32>
    %210 = tpu.matmul %208, %209, %cst_103 {dimension_numbers = #tpu.dot_dimension_numbers<[1], [0], [0], [1], [0, 0, 1, 1], [], []>} : vector<2x16xbf16>, vector<16x128xbf16>, vector<2x128xf32> -> vector<2x128xf32>
    %211 = arith.addf %13, %210 : vector<2x128xf32>
    %212 = arith.truncf %63 : vector<2x32xf32> to vector<2x32xbf16>
    %c0_104 = arith.constant 0 : index
    %c0_105 = arith.constant 0 : index
    %213 = vector.load %arg7[%c0_104, %c0_105] : memref<32x128xbf16, #tpu.memory_space<vmem>>, vector<32x128xbf16>
    %cst_106 = arith.constant dense<0.000000e+00> : vector<2x128xf32>
    %214 = tpu.matmul %212, %213, %cst_106 {dimension_numbers = #tpu.dot_dimension_numbers<[1], [0], [0], [1], [0, 0, 1, 1], [], []>} : vector<2x32xbf16>, vector<32x128xbf16>, vector<2x128xf32> -> vector<2x128xf32>
    %215 = arith.addf %211, %214 : vector<2x128xf32>
    %216 = arith.negf %215 : vector<2x128xf32>
    %217 = math.exp %216 : vector<2x128xf32>
    %cst_107 = arith.constant 1.000000e+00 : f32
    %218 = vector.broadcast %cst_107 : f32 to vector<2x128xf32>
    %219 = arith.addf %218, %217 : vector<2x128xf32>
    %220 = arith.divf %218, %219 : vector<2x128xf32>
    %221 = vector.extract_strided_slice %220 {offsets = [0, 0], sizes = [2, 32], strides = [1, 1]} : vector<2x128xf32> to vector<2x32xf32>
    %222 = vector.extract_strided_slice %220 {offsets = [0, 32], sizes = [2, 32], strides = [1, 1]} : vector<2x128xf32> to vector<2x32xf32>
    %223 = vector.extract_strided_slice %220 {offsets = [0, 96], sizes = [2, 32], strides = [1, 1]} : vector<2x128xf32> to vector<2x32xf32>
    %224 = vector.extract_strided_slice %215 {offsets = [0, 64], sizes = [2, 32], strides = [1, 1]} : vector<2x128xf32> to vector<2x32xf32>
    %225 = math.tanh %224 : vector<2x32xf32>
    %226 = arith.mulf %222, %61 : vector<2x32xf32>
    %227 = arith.mulf %221, %225 : vector<2x32xf32>
    %228 = arith.addf %226, %227 : vector<2x32xf32>
    %229 = math.tanh %228 : vector<2x32xf32>
    %230 = arith.mulf %223, %229 : vector<2x32xf32>
    %231 = arith.truncf %230 : vector<2x32xf32> to vector<2x32xbf16>
    %c0_108 = arith.constant 0 : index
    %c0_109 = arith.constant 0 : index
    %232 = vector.load %arg8[%c0_108, %c0_109] : memref<32x32xbf16, #tpu.memory_space<vmem>>, vector<32x32xbf16>
    %cst_110 = arith.constant dense<0.000000e+00> : vector<2x32xf32>
    %233 = tpu.matmul %231, %232, %cst_110 {dimension_numbers = #tpu.dot_dimension_numbers<[1], [0], [0], [1], [0, 0, 1, 1], [], []>} : vector<2x32xbf16>, vector<32x32xbf16>, vector<2x32xf32> -> vector<2x32xf32>
    %234 = arith.addf %233, %19 : vector<2x32xf32>
    %235 = vector.shape_cast %234 : vector<2x32xf32> to vector<2x1x32xf32>
    %c0_111 = arith.constant 0 : index
    %c0_112 = arith.constant 0 : index
    %c0_113 = arith.constant 0 : index
    %236 = vector.load %arg11[%c0_111, %c0_112, %c0_113] : memref<2x8x32xf32, #tpu.memory_space<vmem>>, vector<2x8x32xf32>
    %237 = vector.broadcast %235 : vector<2x1x32xf32> to vector<2x8x32xf32>
    %238 = arith.addf %237, %236 : vector<2x8x32xf32>
    %239 = math.tanh %238 : vector<2x8x32xf32>
    %c0_114 = arith.constant 0 : index
    %c0_115 = arith.constant 0 : index
    %240 = vector.load %arg10[%c0_114, %c0_115] : memref<1x32xf32, #tpu.memory_space<vmem>>, vector<1x32xf32>
    %241 = vector.shape_cast %240 : vector<1x32xf32> to vector<1x1x32xf32>
    %242 = vector.broadcast %241 : vector<1x1x32xf32> to vector<2x8x32xf32>
    %243 = arith.mulf %239, %242 : vector<2x8x32xf32>
    %cst_116 = arith.constant dense<0.000000e+00> : vector<2x8xf32>
    %244 = vector.multi_reduction <add>, %243, %cst_116 [2] : vector<2x8x32xf32> to vector<2x8xf32>
    %cst_117 = arith.constant 0.000000e+00 : f32
    %245 = vector.broadcast %cst_117 : f32 to vector<2x8xf32>
    %246 = arith.cmpf ogt, %0, %245 : vector<2x8xf32>
    %cst_118 = arith.constant -1.000000e+09 : f32
    %247 = vector.broadcast %cst_118 : f32 to vector<2x8xf32>
    %248 = arith.select %246, %244, %247 : vector<2x8xi1>, vector<2x8xf32>
    %cst_119 = arith.constant dense<0xFF800000> : vector<2xf32>
    %249 = vector.multi_reduction <maximumf>, %248, %cst_119 [1] : vector<2x8xf32> to vector<2xf32>
    %250 = vector.shape_cast %249 : vector<2xf32> to vector<2x1xf32>
    %251 = vector.broadcast %250 : vector<2x1xf32> to vector<2x8xf32>
    %252 = arith.subf %248, %251 : vector<2x8xf32>
    %253 = math.exp %252 : vector<2x8xf32>
    %cst_120 = arith.constant dense<0.000000e+00> : vector<2xf32>
    %254 = vector.multi_reduction <add>, %253, %cst_120 [1] : vector<2x8xf32> to vector<2xf32>
    %255 = vector.shape_cast %254 : vector<2xf32> to vector<2x1xf32>
    %256 = tpu.reciprocal %255 {approx = true} : vector<2x1xf32> -> vector<2x1xf32>
    %257 = vector.broadcast %256 : vector<2x1xf32> to vector<2x8xf32>
    %258 = arith.mulf %253, %257 : vector<2x8xf32>
    %259 = vector.shape_cast %258 : vector<2x8xf32> to vector<2x8x1xf32>
    %c0_121 = arith.constant 0 : index
    %c0_122 = arith.constant 0 : index
    %c0_123 = arith.constant 0 : index
    %260 = vector.load %arg0[%c0_121, %c0_122, %c0_123] : memref<2x8x32xf32, #tpu.memory_space<vmem>>, vector<2x8x32xf32>
    %261 = vector.broadcast %259 : vector<2x8x1xf32> to vector<2x8x32xf32>
    %262 = arith.mulf %261, %260 : vector<2x8x32xf32>
    %cst_124 = arith.constant dense<0.000000e+00> : vector<2x32xf32>
    %263 = vector.multi_reduction <add>, %262, %cst_124 [1] : vector<2x8x32xf32> to vector<2x32xf32>
    %264 = arith.truncf %230 : vector<2x32xf32> to vector<2x32xbf16>
    %c0_125 = arith.constant 0 : index
    %c0_126 = arith.constant 0 : index
    %265 = vector.load %arg12[%c0_125, %c0_126] : memref<32x32xbf16, #tpu.memory_space<vmem>>, vector<32x32xbf16>
    %cst_127 = arith.constant dense<0.000000e+00> : vector<2x32xf32>
    %266 = tpu.matmul %264, %265, %cst_127 {dimension_numbers = #tpu.dot_dimension_numbers<[1], [0], [0], [1], [0, 0, 1, 1], [], []>} : vector<2x32xbf16>, vector<32x32xbf16>, vector<2x32xf32> -> vector<2x32xf32>
    %267 = arith.truncf %263 : vector<2x32xf32> to vector<2x32xbf16>
    %c0_128 = arith.constant 0 : index
    %c0_129 = arith.constant 0 : index
    %268 = vector.load %arg13[%c0_128, %c0_129] : memref<32x32xbf16, #tpu.memory_space<vmem>>, vector<32x32xbf16>
    %cst_130 = arith.constant dense<0.000000e+00> : vector<2x32xf32>
    %269 = tpu.matmul %267, %268, %cst_130 {dimension_numbers = #tpu.dot_dimension_numbers<[1], [0], [0], [1], [0, 0, 1, 1], [], []>} : vector<2x32xbf16>, vector<32x32xbf16>, vector<2x32xf32> -> vector<2x32xf32>
    %270 = arith.addf %266, %269 : vector<2x32xf32>
    %271 = arith.addf %270, %22 : vector<2x32xf32>
    %272 = vector.shape_cast %271 : vector<2x32xf32> to vector<2x1x32xf32>
    %c0_131 = arith.constant 0 : index
    %c0_132 = arith.constant 0 : index
    %c0_133 = arith.constant 0 : index
    %273 = vector.load %arg16[%c0_131, %c0_132, %c0_133] : memref<2x8x32xf32, #tpu.memory_space<vmem>>, vector<2x8x32xf32>
    %274 = vector.broadcast %272 : vector<2x1x32xf32> to vector<2x8x32xf32>
    %275 = arith.addf %274, %273 : vector<2x8x32xf32>
    %276 = math.tanh %275 : vector<2x8x32xf32>
    %c0_134 = arith.constant 0 : index
    %c0_135 = arith.constant 0 : index
    %277 = vector.load %arg15[%c0_134, %c0_135] : memref<1x32xf32, #tpu.memory_space<vmem>>, vector<1x32xf32>
    %278 = vector.shape_cast %277 : vector<1x32xf32> to vector<1x1x32xf32>
    %279 = vector.broadcast %278 : vector<1x1x32xf32> to vector<2x8x32xf32>
    %280 = arith.mulf %276, %279 : vector<2x8x32xf32>
    %cst_136 = arith.constant dense<0.000000e+00> : vector<2x8xf32>
    %281 = vector.multi_reduction <add>, %280, %cst_136 [2] : vector<2x8x32xf32> to vector<2x8xf32>
    %cst_137 = arith.constant 0.000000e+00 : f32
    %282 = vector.broadcast %cst_137 : f32 to vector<2x8xf32>
    %283 = arith.cmpf ogt, %10, %282 : vector<2x8xf32>
    %cst_138 = arith.constant -1.000000e+09 : f32
    %284 = vector.broadcast %cst_138 : f32 to vector<2x8xf32>
    %285 = arith.select %283, %281, %284 : vector<2x8xi1>, vector<2x8xf32>
    %cst_139 = arith.constant dense<0xFF800000> : vector<2xf32>
    %286 = vector.multi_reduction <maximumf>, %285, %cst_139 [1] : vector<2x8xf32> to vector<2xf32>
    %287 = vector.shape_cast %286 : vector<2xf32> to vector<2x1xf32>
    %288 = vector.broadcast %287 : vector<2x1xf32> to vector<2x8xf32>
    %289 = arith.subf %285, %288 : vector<2x8xf32>
    %290 = math.exp %289 : vector<2x8xf32>
    %cst_140 = arith.constant dense<0.000000e+00> : vector<2xf32>
    %291 = vector.multi_reduction <add>, %290, %cst_140 [1] : vector<2x8xf32> to vector<2xf32>
    %292 = vector.shape_cast %291 : vector<2xf32> to vector<2x1xf32>
    %293 = tpu.reciprocal %292 {approx = true} : vector<2x1xf32> -> vector<2x1xf32>
    %294 = vector.broadcast %293 : vector<2x1xf32> to vector<2x8xf32>
    %295 = arith.mulf %290, %294 : vector<2x8xf32>
    %296 = vector.shape_cast %295 : vector<2x8xf32> to vector<2x8x1xf32>
    %c0_141 = arith.constant 0 : index
    %c0_142 = arith.constant 0 : index
    %c0_143 = arith.constant 0 : index
    %297 = vector.load %arg0[%c0_141, %c0_142, %c0_143] : memref<2x8x32xf32, #tpu.memory_space<vmem>>, vector<2x8x32xf32>
    %298 = vector.broadcast %296 : vector<2x8x1xf32> to vector<2x8x32xf32>
    %299 = arith.mulf %298, %297 : vector<2x8x32xf32>
    %cst_144 = arith.constant dense<0.000000e+00> : vector<2x32xf32>
    %300 = vector.multi_reduction <add>, %299, %cst_144 [1] : vector<2x8x32xf32> to vector<2x32xf32>
    %301 = arith.truncf %263 : vector<2x32xf32> to vector<2x32xbf16>
    %c0_145 = arith.constant 0 : index
    %c0_146 = arith.constant 0 : index
    %302 = vector.load %arg17[%c0_145, %c0_146] : memref<32x128xbf16, #tpu.memory_space<vmem>>, vector<32x128xbf16>
    %cst_147 = arith.constant dense<0.000000e+00> : vector<2x128xf32>
    %303 = tpu.matmul %301, %302, %cst_147 {dimension_numbers = #tpu.dot_dimension_numbers<[1], [0], [0], [1], [0, 0, 1, 1], [], []>} : vector<2x32xbf16>, vector<32x128xbf16>, vector<2x128xf32> -> vector<2x128xf32>
    %304 = arith.truncf %300 : vector<2x32xf32> to vector<2x32xbf16>
    %c0_148 = arith.constant 0 : index
    %c0_149 = arith.constant 0 : index
    %305 = vector.load %arg18[%c0_148, %c0_149] : memref<32x128xbf16, #tpu.memory_space<vmem>>, vector<32x128xbf16>
    %cst_150 = arith.constant dense<0.000000e+00> : vector<2x128xf32>
    %306 = tpu.matmul %304, %305, %cst_150 {dimension_numbers = #tpu.dot_dimension_numbers<[1], [0], [0], [1], [0, 0, 1, 1], [], []>} : vector<2x32xbf16>, vector<32x128xbf16>, vector<2x128xf32> -> vector<2x128xf32>
    %307 = arith.addf %303, %306 : vector<2x128xf32>
    %308 = arith.truncf %230 : vector<2x32xf32> to vector<2x32xbf16>
    %c0_151 = arith.constant 0 : index
    %c0_152 = arith.constant 0 : index
    %309 = vector.load %arg19[%c0_151, %c0_152] : memref<32x128xbf16, #tpu.memory_space<vmem>>, vector<32x128xbf16>
    %cst_153 = arith.constant dense<0.000000e+00> : vector<2x128xf32>
    %310 = tpu.matmul %308, %309, %cst_153 {dimension_numbers = #tpu.dot_dimension_numbers<[1], [0], [0], [1], [0, 0, 1, 1], [], []>} : vector<2x32xbf16>, vector<32x128xbf16>, vector<2x128xf32> -> vector<2x128xf32>
    %311 = arith.addf %307, %310 : vector<2x128xf32>
    %312 = arith.truncf %164 : vector<2x32xf32> to vector<2x32xbf16>
    %c0_154 = arith.constant 0 : index
    %c0_155 = arith.constant 0 : index
    %313 = vector.load %arg20[%c0_154, %c0_155] : memref<32x128xbf16, #tpu.memory_space<vmem>>, vector<32x128xbf16>
    %cst_156 = arith.constant dense<0.000000e+00> : vector<2x128xf32>
    %314 = tpu.matmul %312, %313, %cst_156 {dimension_numbers = #tpu.dot_dimension_numbers<[1], [0], [0], [1], [0, 0, 1, 1], [], []>} : vector<2x32xbf16>, vector<32x128xbf16>, vector<2x128xf32> -> vector<2x128xf32>
    %315 = arith.addf %311, %314 : vector<2x128xf32>
    %316 = arith.addf %315, %16 : vector<2x128xf32>
    %317 = arith.negf %316 : vector<2x128xf32>
    %318 = math.exp %317 : vector<2x128xf32>
    %cst_157 = arith.constant 1.000000e+00 : f32
    %319 = vector.broadcast %cst_157 : f32 to vector<2x128xf32>
    %320 = arith.addf %319, %318 : vector<2x128xf32>
    %321 = arith.divf %319, %320 : vector<2x128xf32>
    %322 = vector.extract_strided_slice %321 {offsets = [0, 0], sizes = [2, 32], strides = [1, 1]} : vector<2x128xf32> to vector<2x32xf32>
    %323 = vector.extract_strided_slice %321 {offsets = [0, 32], sizes = [2, 32], strides = [1, 1]} : vector<2x128xf32> to vector<2x32xf32>
    %324 = vector.extract_strided_slice %321 {offsets = [0, 96], sizes = [2, 32], strides = [1, 1]} : vector<2x128xf32> to vector<2x32xf32>
    %325 = vector.extract_strided_slice %316 {offsets = [0, 64], sizes = [2, 32], strides = [1, 1]} : vector<2x128xf32> to vector<2x32xf32>
    %326 = math.tanh %325 : vector<2x32xf32>
    %327 = arith.mulf %323, %162 : vector<2x32xf32>
    %328 = arith.mulf %322, %326 : vector<2x32xf32>
    %329 = arith.addf %327, %328 : vector<2x32xf32>
    %330 = math.tanh %329 : vector<2x32xf32>
    %331 = arith.mulf %324, %330 : vector<2x32xf32>
    %332 = arith.truncf %331 : vector<2x32xf32> to vector<2x32xbf16>
    %c0_158 = arith.constant 0 : index
    %c0_159 = arith.constant 0 : index
    %333 = vector.load %arg22[%c0_158, %c0_159] : memref<32x128xbf16, #tpu.memory_space<vmem>>, vector<32x128xbf16>
    %cst_160 = arith.constant dense<0.000000e+00> : vector<2x128xf32>
    %334 = tpu.matmul %332, %333, %cst_160 {dimension_numbers = #tpu.dot_dimension_numbers<[1], [0], [0], [1], [0, 0, 1, 1], [], []>} : vector<2x32xbf16>, vector<32x128xbf16>, vector<2x128xf32> -> vector<2x128xf32>
    %335 = arith.addf %334, %25 : vector<2x128xf32>
    %cst_161 = arith.constant dense<0xFF800000> : vector<2xf32>
    %336 = vector.multi_reduction <maximumf>, %335, %cst_161 [1] : vector<2x128xf32> to vector<2xf32>
    %337 = vector.shape_cast %336 : vector<2xf32> to vector<2x1xf32>
    %338 = vector.broadcast %337 : vector<2x1xf32> to vector<2x128xf32>
    %339 = arith.subf %335, %338 : vector<2x128xf32>
    %340 = math.exp %339 : vector<2x128xf32>
    %cst_162 = arith.constant dense<0.000000e+00> : vector<2xf32>
    %341 = vector.multi_reduction <add>, %340, %cst_162 [1] : vector<2x128xf32> to vector<2xf32>
    %342 = vector.shape_cast %341 : vector<2xf32> to vector<2x1xf32>
    %343 = math.log %342 : vector<2x1xf32>
    %344 = arith.addf %337, %343 : vector<2x1xf32>
    %345 = vector.broadcast %344 : vector<2x1xf32> to vector<2x128xf32>
    %346 = arith.subf %335, %345 : vector<2x128xf32>
    %347 = arith.index_cast %c1_i32 : i32 to index
    %c0_163 = arith.constant 0 : index
    %c0_164 = arith.constant 0 : index
    %348 = vector.load %arg24[%347, %c0_163, %c0_164] : memref<6x2x128xf32, #tpu.memory_space<vmem>>, vector<1x2x128xf32>
    %349 = vector.shape_cast %348 : vector<1x2x128xf32> to vector<2x128xf32>
    %350 = vector.shape_cast %346 : vector<2x128xf32> to vector<1x2x128xf32>
    tpu.vector_store %arg24[%347, %c0_163, %c0_164], %350 {strides = array<i32>} : memref<6x2x128xf32, #tpu.memory_space<vmem>>, vector<1x2x128xf32>,
    %351 = vector.broadcast %337 : vector<2x1xf32> to vector<2x128xf32>
    %352 = arith.cmpf oeq, %335, %351 : vector<2x128xf32>
    %cst_165 = arith.constant 1.280000e+02 : f32
    %353 = vector.broadcast %cst_165 : f32 to vector<2x128xf32>
    %354 = arith.select %352, %12, %353 : vector<2x128xi1>, vector<2x128xf32>
    %cst_166 = arith.constant dense<0x7F800000> : vector<2xf32>
    %355 = vector.multi_reduction <minimumf>, %354, %cst_166 [1] : vector<2x128xf32> to vector<2xf32>
    %356 = vector.shape_cast %355 : vector<2xf32> to vector<2x1xf32>
    %cst_167 = arith.constant 2.000000e+00 : f32
    %357 = vector.broadcast %cst_167 : f32 to vector<2x1xf32>
    %358 = arith.cmpf oeq, %356, %357 : vector<2x1xf32>
    %359 = arith.extui %358 : vector<2x1xi1> to vector<2x1xi32>
    %360 = arith.sitofp %359 : vector<2x1xi32> to vector<2x1xf32>
    %361 = arith.addf %194, %360 : vector<2x1xf32>
    %cst_168 = arith.constant 0.000000e+00 : f32
    %362 = vector.broadcast %cst_168 : f32 to vector<2x1xf32>
    %363 = arith.cmpf one, %361, %362 : vector<2x1xf32>
    %cst_169 = arith.constant 2.000000e+00 : f32
    %364 = vector.broadcast %cst_169 : f32 to vector<2x1xf32>
    %365 = arith.select %363, %364, %356 : vector<2x1xi1>, vector<2x1xf32>
    %c2_i32 = arith.constant 2 : i32
    %366 = vector.broadcast %365 : vector<2x1xf32> to vector<2x128xf32>
    %367 = arith.cmpf oeq, %12, %366 : vector<2x128xf32>
    %368 = arith.extui %367 : vector<2x128xi1> to vector<2x128xi32>
    %369 = arith.sitofp %368 : vector<2x128xi32> to vector<2x128xf32>
    %370 = arith.truncf %369 : vector<2x128xf32> to vector<2x128xbf16>
    %c0_170 = arith.constant 0 : index
    %c0_171 = arith.constant 0 : index
    %371 = vector.load %arg4[%c0_170, %c0_171] : memref<128x16xbf16, #tpu.memory_space<vmem>>, vector<128x16xbf16>
    %cst_172 = arith.constant dense<0.000000e+00> : vector<2x16xf32>
    %372 = tpu.matmul %370, %371, %cst_172 {dimension_numbers = #tpu.dot_dimension_numbers<[1], [0], [0], [1], [0, 0, 1, 1], [], []>} : vector<2x128xbf16>, vector<128x16xbf16>, vector<2x16xf32> -> vector<2x16xf32>
    %cst_173 = arith.constant 0.000000e+00 : f32
    %373 = vector.broadcast %cst_173 : f32 to vector<2x16xf32>
    %374 = arith.maximumf %372, %373 : vector<2x16xf32>
    %375 = arith.truncf %374 : vector<2x16xf32> to vector<2x16xbf16>
    %c0_174 = arith.constant 0 : index
    %c0_175 = arith.constant 0 : index
    %376 = vector.load %arg6[%c0_174, %c0_175] : memref<16x128xbf16, #tpu.memory_space<vmem>>, vector<16x128xbf16>
    %cst_176 = arith.constant dense<0.000000e+00> : vector<2x128xf32>
    %377 = tpu.matmul %375, %376, %cst_176 {dimension_numbers = #tpu.dot_dimension_numbers<[1], [0], [0], [1], [0, 0, 1, 1], [], []>} : vector<2x16xbf16>, vector<16x128xbf16>, vector<2x128xf32> -> vector<2x128xf32>
    %378 = arith.addf %13, %377 : vector<2x128xf32>
    %379 = arith.truncf %230 : vector<2x32xf32> to vector<2x32xbf16>
    %c0_177 = arith.constant 0 : index
    %c0_178 = arith.constant 0 : index
    %380 = vector.load %arg7[%c0_177, %c0_178] : memref<32x128xbf16, #tpu.memory_space<vmem>>, vector<32x128xbf16>
    %cst_179 = arith.constant dense<0.000000e+00> : vector<2x128xf32>
    %381 = tpu.matmul %379, %380, %cst_179 {dimension_numbers = #tpu.dot_dimension_numbers<[1], [0], [0], [1], [0, 0, 1, 1], [], []>} : vector<2x32xbf16>, vector<32x128xbf16>, vector<2x128xf32> -> vector<2x128xf32>
    %382 = arith.addf %378, %381 : vector<2x128xf32>
    %383 = arith.negf %382 : vector<2x128xf32>
    %384 = math.exp %383 : vector<2x128xf32>
    %cst_180 = arith.constant 1.000000e+00 : f32
    %385 = vector.broadcast %cst_180 : f32 to vector<2x128xf32>
    %386 = arith.addf %385, %384 : vector<2x128xf32>
    %387 = arith.divf %385, %386 : vector<2x128xf32>
    %388 = vector.extract_strided_slice %387 {offsets = [0, 0], sizes = [2, 32], strides = [1, 1]} : vector<2x128xf32> to vector<2x32xf32>
    %389 = vector.extract_strided_slice %387 {offsets = [0, 32], sizes = [2, 32], strides = [1, 1]} : vector<2x128xf32> to vector<2x32xf32>
    %390 = vector.extract_strided_slice %387 {offsets = [0, 96], sizes = [2, 32], strides = [1, 1]} : vector<2x128xf32> to vector<2x32xf32>
    %391 = vector.extract_strided_slice %382 {offsets = [0, 64], sizes = [2, 32], strides = [1, 1]} : vector<2x128xf32> to vector<2x32xf32>
    %392 = math.tanh %391 : vector<2x32xf32>
    %393 = arith.mulf %389, %228 : vector<2x32xf32>
    %394 = arith.mulf %388, %392 : vector<2x32xf32>
    %395 = arith.addf %393, %394 : vector<2x32xf32>
    %396 = math.tanh %395 : vector<2x32xf32>
    %397 = arith.mulf %390, %396 : vector<2x32xf32>
    %398 = arith.truncf %397 : vector<2x32xf32> to vector<2x32xbf16>
    %c0_181 = arith.constant 0 : index
    %c0_182 = arith.constant 0 : index
    %399 = vector.load %arg8[%c0_181, %c0_182] : memref<32x32xbf16, #tpu.memory_space<vmem>>, vector<32x32xbf16>
    %cst_183 = arith.constant dense<0.000000e+00> : vector<2x32xf32>
    %400 = tpu.matmul %398, %399, %cst_183 {dimension_numbers = #tpu.dot_dimension_numbers<[1], [0], [0], [1], [0, 0, 1, 1], [], []>} : vector<2x32xbf16>, vector<32x32xbf16>, vector<2x32xf32> -> vector<2x32xf32>
    %401 = arith.addf %400, %19 : vector<2x32xf32>
    %402 = vector.shape_cast %401 : vector<2x32xf32> to vector<2x1x32xf32>
    %c0_184 = arith.constant 0 : index
    %c0_185 = arith.constant 0 : index
    %c0_186 = arith.constant 0 : index
    %403 = vector.load %arg11[%c0_184, %c0_185, %c0_186] : memref<2x8x32xf32, #tpu.memory_space<vmem>>, vector<2x8x32xf32>
    %404 = vector.broadcast %402 : vector<2x1x32xf32> to vector<2x8x32xf32>
    %405 = arith.addf %404, %403 : vector<2x8x32xf32>
    %406 = math.tanh %405 : vector<2x8x32xf32>
    %c0_187 = arith.constant 0 : index
    %c0_188 = arith.constant 0 : index
    %407 = vector.load %arg10[%c0_187, %c0_188] : memref<1x32xf32, #tpu.memory_space<vmem>>, vector<1x32xf32>
    %408 = vector.shape_cast %407 : vector<1x32xf32> to vector<1x1x32xf32>
    %409 = vector.broadcast %408 : vector<1x1x32xf32> to vector<2x8x32xf32>
    %410 = arith.mulf %406, %409 : vector<2x8x32xf32>
    %cst_189 = arith.constant dense<0.000000e+00> : vector<2x8xf32>
    %411 = vector.multi_reduction <add>, %410, %cst_189 [2] : vector<2x8x32xf32> to vector<2x8xf32>
    %cst_190 = arith.constant 0.000000e+00 : f32
    %412 = vector.broadcast %cst_190 : f32 to vector<2x8xf32>
    %413 = arith.cmpf ogt, %0, %412 : vector<2x8xf32>
    %cst_191 = arith.constant -1.000000e+09 : f32
    %414 = vector.broadcast %cst_191 : f32 to vector<2x8xf32>
    %415 = arith.select %413, %411, %414 : vector<2x8xi1>, vector<2x8xf32>
    %cst_192 = arith.constant dense<0xFF800000> : vector<2xf32>
    %416 = vector.multi_reduction <maximumf>, %415, %cst_192 [1] : vector<2x8xf32> to vector<2xf32>
    %417 = vector.shape_cast %416 : vector<2xf32> to vector<2x1xf32>
    %418 = vector.broadcast %417 : vector<2x1xf32> to vector<2x8xf32>
    %419 = arith.subf %415, %418 : vector<2x8xf32>
    %420 = math.exp %419 : vector<2x8xf32>
    %cst_193 = arith.constant dense<0.000000e+00> : vector<2xf32>
    %421 = vector.multi_reduction <add>, %420, %cst_193 [1] : vector<2x8xf32> to vector<2xf32>
    %422 = vector.shape_cast %421 : vector<2xf32> to vector<2x1xf32>
    %423 = tpu.reciprocal %422 {approx = true} : vector<2x1xf32> -> vector<2x1xf32>
    %424 = vector.broadcast %423 : vector<2x1xf32> to vector<2x8xf32>
    %425 = arith.mulf %420, %424 : vector<2x8xf32>
    %426 = vector.shape_cast %425 : vector<2x8xf32> to vector<2x8x1xf32>
    %c0_194 = arith.constant 0 : index
    %c0_195 = arith.constant 0 : index
    %c0_196 = arith.constant 0 : index
    %427 = vector.load %arg0[%c0_194, %c0_195, %c0_196] : memref<2x8x32xf32, #tpu.memory_space<vmem>>, vector<2x8x32xf32>
    %428 = vector.broadcast %426 : vector<2x8x1xf32> to vector<2x8x32xf32>
    %429 = arith.mulf %428, %427 : vector<2x8x32xf32>
    %cst_197 = arith.constant dense<0.000000e+00> : vector<2x32xf32>
    %430 = vector.multi_reduction <add>, %429, %cst_197 [1] : vector<2x8x32xf32> to vector<2x32xf32>
    %431 = arith.truncf %397 : vector<2x32xf32> to vector<2x32xbf16>
    %c0_198 = arith.constant 0 : index
    %c0_199 = arith.constant 0 : index
    %432 = vector.load %arg12[%c0_198, %c0_199] : memref<32x32xbf16, #tpu.memory_space<vmem>>, vector<32x32xbf16>
    %cst_200 = arith.constant dense<0.000000e+00> : vector<2x32xf32>
    %433 = tpu.matmul %431, %432, %cst_200 {dimension_numbers = #tpu.dot_dimension_numbers<[1], [0], [0], [1], [0, 0, 1, 1], [], []>} : vector<2x32xbf16>, vector<32x32xbf16>, vector<2x32xf32> -> vector<2x32xf32>
    %434 = arith.truncf %430 : vector<2x32xf32> to vector<2x32xbf16>
    %c0_201 = arith.constant 0 : index
    %c0_202 = arith.constant 0 : index
    %435 = vector.load %arg13[%c0_201, %c0_202] : memref<32x32xbf16, #tpu.memory_space<vmem>>, vector<32x32xbf16>
    %cst_203 = arith.constant dense<0.000000e+00> : vector<2x32xf32>
    %436 = tpu.matmul %434, %435, %cst_203 {dimension_numbers = #tpu.dot_dimension_numbers<[1], [0], [0], [1], [0, 0, 1, 1], [], []>} : vector<2x32xbf16>, vector<32x32xbf16>, vector<2x32xf32> -> vector<2x32xf32>
    %437 = arith.addf %433, %436 : vector<2x32xf32>
    %438 = arith.addf %437, %22 : vector<2x32xf32>
    %439 = vector.shape_cast %438 : vector<2x32xf32> to vector<2x1x32xf32>
    %c0_204 = arith.constant 0 : index
    %c0_205 = arith.constant 0 : index
    %c0_206 = arith.constant 0 : index
    %440 = vector.load %arg16[%c0_204, %c0_205, %c0_206] : memref<2x8x32xf32, #tpu.memory_space<vmem>>, vector<2x8x32xf32>
    %441 = vector.broadcast %439 : vector<2x1x32xf32> to vector<2x8x32xf32>
    %442 = arith.addf %441, %440 : vector<2x8x32xf32>
    %443 = math.tanh %442 : vector<2x8x32xf32>
    %c0_207 = arith.constant 0 : index
    %c0_208 = arith.constant 0 : index
    %444 = vector.load %arg15[%c0_207, %c0_208] : memref<1x32xf32, #tpu.memory_space<vmem>>, vector<1x32xf32>
    %445 = vector.shape_cast %444 : vector<1x32xf32> to vector<1x1x32xf32>
    %446 = vector.broadcast %445 : vector<1x1x32xf32> to vector<2x8x32xf32>
    %447 = arith.mulf %443, %446 : vector<2x8x32xf32>
    %cst_209 = arith.constant dense<0.000000e+00> : vector<2x8xf32>
    %448 = vector.multi_reduction <add>, %447, %cst_209 [2] : vector<2x8x32xf32> to vector<2x8xf32>
    %cst_210 = arith.constant 0.000000e+00 : f32
    %449 = vector.broadcast %cst_210 : f32 to vector<2x8xf32>
    %450 = arith.cmpf ogt, %10, %449 : vector<2x8xf32>
    %cst_211 = arith.constant -1.000000e+09 : f32
    %451 = vector.broadcast %cst_211 : f32 to vector<2x8xf32>
    %452 = arith.select %450, %448, %451 : vector<2x8xi1>, vector<2x8xf32>
    %cst_212 = arith.constant dense<0xFF800000> : vector<2xf32>
    %453 = vector.multi_reduction <maximumf>, %452, %cst_212 [1] : vector<2x8xf32> to vector<2xf32>
    %454 = vector.shape_cast %453 : vector<2xf32> to vector<2x1xf32>
    %455 = vector.broadcast %454 : vector<2x1xf32> to vector<2x8xf32>
    %456 = arith.subf %452, %455 : vector<2x8xf32>
    %457 = math.exp %456 : vector<2x8xf32>
    %cst_213 = arith.constant dense<0.000000e+00> : vector<2xf32>
    %458 = vector.multi_reduction <add>, %457, %cst_213 [1] : vector<2x8xf32> to vector<2xf32>
    %459 = vector.shape_cast %458 : vector<2xf32> to vector<2x1xf32>
    %460 = tpu.reciprocal %459 {approx = true} : vector<2x1xf32> -> vector<2x1xf32>
    %461 = vector.broadcast %460 : vector<2x1xf32> to vector<2x8xf32>
    %462 = arith.mulf %457, %461 : vector<2x8xf32>
    %463 = vector.shape_cast %462 : vector<2x8xf32> to vector<2x8x1xf32>
    %c0_214 = arith.constant 0 : index
    %c0_215 = arith.constant 0 : index
    %c0_216 = arith.constant 0 : index
    %464 = vector.load %arg0[%c0_214, %c0_215, %c0_216] : memref<2x8x32xf32, #tpu.memory_space<vmem>>, vector<2x8x32xf32>
    %465 = vector.broadcast %463 : vector<2x8x1xf32> to vector<2x8x32xf32>
    %466 = arith.mulf %465, %464 : vector<2x8x32xf32>
    %cst_217 = arith.constant dense<0.000000e+00> : vector<2x32xf32>
    %467 = vector.multi_reduction <add>, %466, %cst_217 [1] : vector<2x8x32xf32> to vector<2x32xf32>
    %468 = arith.truncf %430 : vector<2x32xf32> to vector<2x32xbf16>
    %c0_218 = arith.constant 0 : index
    %c0_219 = arith.constant 0 : index
    %469 = vector.load %arg17[%c0_218, %c0_219] : memref<32x128xbf16, #tpu.memory_space<vmem>>, vector<32x128xbf16>
    %cst_220 = arith.constant dense<0.000000e+00> : vector<2x128xf32>
    %470 = tpu.matmul %468, %469, %cst_220 {dimension_numbers = #tpu.dot_dimension_numbers<[1], [0], [0], [1], [0, 0, 1, 1], [], []>} : vector<2x32xbf16>, vector<32x128xbf16>, vector<2x128xf32> -> vector<2x128xf32>
    %471 = arith.truncf %467 : vector<2x32xf32> to vector<2x32xbf16>
    %c0_221 = arith.constant 0 : index
    %c0_222 = arith.constant 0 : index
    %472 = vector.load %arg18[%c0_221, %c0_222] : memref<32x128xbf16, #tpu.memory_space<vmem>>, vector<32x128xbf16>
    %cst_223 = arith.constant dense<0.000000e+00> : vector<2x128xf32>
    %473 = tpu.matmul %471, %472, %cst_223 {dimension_numbers = #tpu.dot_dimension_numbers<[1], [0], [0], [1], [0, 0, 1, 1], [], []>} : vector<2x32xbf16>, vector<32x128xbf16>, vector<2x128xf32> -> vector<2x128xf32>
    %474 = arith.addf %470, %473 : vector<2x128xf32>
    %475 = arith.truncf %397 : vector<2x32xf32> to vector<2x32xbf16>
    %c0_224 = arith.constant 0 : index
    %c0_225 = arith.constant 0 : index
    %476 = vector.load %arg19[%c0_224, %c0_225] : memref<32x128xbf16, #tpu.memory_space<vmem>>, vector<32x128xbf16>
    %cst_226 = arith.constant dense<0.000000e+00> : vector<2x128xf32>
    %477 = tpu.matmul %475, %476, %cst_226 {dimension_numbers = #tpu.dot_dimension_numbers<[1], [0], [0], [1], [0, 0, 1, 1], [], []>} : vector<2x32xbf16>, vector<32x128xbf16>, vector<2x128xf32> -> vector<2x128xf32>
    %478 = arith.addf %474, %477 : vector<2x128xf32>
    %479 = arith.truncf %331 : vector<2x32xf32> to vector<2x32xbf16>
    %c0_227 = arith.constant 0 : index
    %c0_228 = arith.constant 0 : index
    %480 = vector.load %arg20[%c0_227, %c0_228] : memref<32x128xbf16, #tpu.memory_space<vmem>>, vector<32x128xbf16>
    %cst_229 = arith.constant dense<0.000000e+00> : vector<2x128xf32>
    %481 = tpu.matmul %479, %480, %cst_229 {dimension_numbers = #tpu.dot_dimension_numbers<[1], [0], [0], [1], [0, 0, 1, 1], [], []>} : vector<2x32xbf16>, vector<32x128xbf16>, vector<2x128xf32> -> vector<2x128xf32>
    %482 = arith.addf %478, %481 : vector<2x128xf32>
    %483 = arith.addf %482, %16 : vector<2x128xf32>
    %484 = arith.negf %483 : vector<2x128xf32>
    %485 = math.exp %484 : vector<2x128xf32>
    %cst_230 = arith.constant 1.000000e+00 : f32
    %486 = vector.broadcast %cst_230 : f32 to vector<2x128xf32>
    %487 = arith.addf %486, %485 : vector<2x128xf32>
    %488 = arith.divf %486, %487 : vector<2x128xf32>
    %489 = vector.extract_strided_slice %488 {offsets = [0, 0], sizes = [2, 32], strides = [1, 1]} : vector<2x128xf32> to vector<2x32xf32>
    %490 = vector.extract_strided_slice %488 {offsets = [0, 32], sizes = [2, 32], strides = [1, 1]} : vector<2x128xf32> to vector<2x32xf32>
    %491 = vector.extract_strided_slice %488 {offsets = [0, 96], sizes = [2, 32], strides = [1, 1]} : vector<2x128xf32> to vector<2x32xf32>
    %492 = vector.extract_strided_slice %483 {offsets = [0, 64], sizes = [2, 32], strides = [1, 1]} : vector<2x128xf32> to vector<2x32xf32>
    %493 = math.tanh %492 : vector<2x32xf32>
    %494 = arith.mulf %490, %329 : vector<2x32xf32>
    %495 = arith.mulf %489, %493 : vector<2x32xf32>
    %496 = arith.addf %494, %495 : vector<2x32xf32>
    %497 = math.tanh %496 : vector<2x32xf32>
    %498 = arith.mulf %491, %497 : vector<2x32xf32>
    %499 = arith.truncf %498 : vector<2x32xf32> to vector<2x32xbf16>
    %c0_231 = arith.constant 0 : index
    %c0_232 = arith.constant 0 : index
    %500 = vector.load %arg22[%c0_231, %c0_232] : memref<32x128xbf16, #tpu.memory_space<vmem>>, vector<32x128xbf16>
    %cst_233 = arith.constant dense<0.000000e+00> : vector<2x128xf32>
    %501 = tpu.matmul %499, %500, %cst_233 {dimension_numbers = #tpu.dot_dimension_numbers<[1], [0], [0], [1], [0, 0, 1, 1], [], []>} : vector<2x32xbf16>, vector<32x128xbf16>, vector<2x128xf32> -> vector<2x128xf32>
    %502 = arith.addf %501, %25 : vector<2x128xf32>
    %cst_234 = arith.constant dense<0xFF800000> : vector<2xf32>
    %503 = vector.multi_reduction <maximumf>, %502, %cst_234 [1] : vector<2x128xf32> to vector<2xf32>
    %504 = vector.shape_cast %503 : vector<2xf32> to vector<2x1xf32>
    %505 = vector.broadcast %504 : vector<2x1xf32> to vector<2x128xf32>
    %506 = arith.subf %502, %505 : vector<2x128xf32>
    %507 = math.exp %506 : vector<2x128xf32>
    %cst_235 = arith.constant dense<0.000000e+00> : vector<2xf32>
    %508 = vector.multi_reduction <add>, %507, %cst_235 [1] : vector<2x128xf32> to vector<2xf32>
    %509 = vector.shape_cast %508 : vector<2xf32> to vector<2x1xf32>
    %510 = math.log %509 : vector<2x1xf32>
    %511 = arith.addf %504, %510 : vector<2x1xf32>
    %512 = vector.broadcast %511 : vector<2x1xf32> to vector<2x128xf32>
    %513 = arith.subf %502, %512 : vector<2x128xf32>
    %514 = arith.index_cast %c2_i32 : i32 to index
    %c0_236 = arith.constant 0 : index
    %c0_237 = arith.constant 0 : index
    %515 = vector.load %arg24[%514, %c0_236, %c0_237] : memref<6x2x128xf32, #tpu.memory_space<vmem>>, vector<1x2x128xf32>
    %516 = vector.shape_cast %515 : vector<1x2x128xf32> to vector<2x128xf32>
    %517 = vector.shape_cast %513 : vector<2x128xf32> to vector<1x2x128xf32>
    tpu.vector_store %arg24[%514, %c0_236, %c0_237], %517 {strides = array<i32>} : memref<6x2x128xf32, #tpu.memory_space<vmem>>, vector<1x2x128xf32>,
    %518 = vector.broadcast %504 : vector<2x1xf32> to vector<2x128xf32>
    %519 = arith.cmpf oeq, %502, %518 : vector<2x128xf32>
    %cst_238 = arith.constant 1.280000e+02 : f32
    %520 = vector.broadcast %cst_238 : f32 to vector<2x128xf32>
    %521 = arith.select %519, %12, %520 : vector<2x128xi1>, vector<2x128xf32>
    %cst_239 = arith.constant dense<0x7F800000> : vector<2xf32>
    %522 = vector.multi_reduction <minimumf>, %521, %cst_239 [1] : vector<2x128xf32> to vector<2xf32>
    %523 = vector.shape_cast %522 : vector<2xf32> to vector<2x1xf32>
    %cst_240 = arith.constant 2.000000e+00 : f32
    %524 = vector.broadcast %cst_240 : f32 to vector<2x1xf32>
    %525 = arith.cmpf oeq, %523, %524 : vector<2x1xf32>
    %526 = arith.extui %525 : vector<2x1xi1> to vector<2x1xi32>
    %527 = arith.sitofp %526 : vector<2x1xi32> to vector<2x1xf32>
    %528 = arith.addf %361, %527 : vector<2x1xf32>
    %cst_241 = arith.constant 0.000000e+00 : f32
    %529 = vector.broadcast %cst_241 : f32 to vector<2x1xf32>
    %530 = arith.cmpf one, %528, %529 : vector<2x1xf32>
    %cst_242 = arith.constant 2.000000e+00 : f32
    %531 = vector.broadcast %cst_242 : f32 to vector<2x1xf32>
    %532 = arith.select %530, %531, %523 : vector<2x1xi1>, vector<2x1xf32>
    %c3_i32 = arith.constant 3 : i32
    %533 = vector.broadcast %532 : vector<2x1xf32> to vector<2x128xf32>
    %534 = arith.cmpf oeq, %12, %533 : vector<2x128xf32>
    %535 = arith.extui %534 : vector<2x128xi1> to vector<2x128xi32>
    %536 = arith.sitofp %535 : vector<2x128xi32> to vector<2x128xf32>
    %537 = arith.truncf %536 : vector<2x128xf32> to vector<2x128xbf16>
    %c0_243 = arith.constant 0 : index
    %c0_244 = arith.constant 0 : index
    %538 = vector.load %arg4[%c0_243, %c0_244] : memref<128x16xbf16, #tpu.memory_space<vmem>>, vector<128x16xbf16>
    %cst_245 = arith.constant dense<0.000000e+00> : vector<2x16xf32>
    %539 = tpu.matmul %537, %538, %cst_245 {dimension_numbers = #tpu.dot_dimension_numbers<[1], [0], [0], [1], [0, 0, 1, 1], [], []>} : vector<2x128xbf16>, vector<128x16xbf16>, vector<2x16xf32> -> vector<2x16xf32>
    %cst_246 = arith.constant 0.000000e+00 : f32
    %540 = vector.broadcast %cst_246 : f32 to vector<2x16xf32>
    %541 = arith.maximumf %539, %540 : vector<2x16xf32>
    %542 = arith.truncf %541 : vector<2x16xf32> to vector<2x16xbf16>
    %c0_247 = arith.constant 0 : index
    %c0_248 = arith.constant 0 : index
    %543 = vector.load %arg6[%c0_247, %c0_248] : memref<16x128xbf16, #tpu.memory_space<vmem>>, vector<16x128xbf16>
    %cst_249 = arith.constant dense<0.000000e+00> : vector<2x128xf32>
    %544 = tpu.matmul %542, %543, %cst_249 {dimension_numbers = #tpu.dot_dimension_numbers<[1], [0], [0], [1], [0, 0, 1, 1], [], []>} : vector<2x16xbf16>, vector<16x128xbf16>, vector<2x128xf32> -> vector<2x128xf32>
    %545 = arith.addf %13, %544 : vector<2x128xf32>
    %546 = arith.truncf %397 : vector<2x32xf32> to vector<2x32xbf16>
    %c0_250 = arith.constant 0 : index
    %c0_251 = arith.constant 0 : index
    %547 = vector.load %arg7[%c0_250, %c0_251] : memref<32x128xbf16, #tpu.memory_space<vmem>>, vector<32x128xbf16>
    %cst_252 = arith.constant dense<0.000000e+00> : vector<2x128xf32>
    %548 = tpu.matmul %546, %547, %cst_252 {dimension_numbers = #tpu.dot_dimension_numbers<[1], [0], [0], [1], [0, 0, 1, 1], [], []>} : vector<2x32xbf16>, vector<32x128xbf16>, vector<2x128xf32> -> vector<2x128xf32>
    %549 = arith.addf %545, %548 : vector<2x128xf32>
    %550 = arith.negf %549 : vector<2x128xf32>
    %551 = math.exp %550 : vector<2x128xf32>
    %cst_253 = arith.constant 1.000000e+00 : f32
    %552 = vector.broadcast %cst_253 : f32 to vector<2x128xf32>
    %553 = arith.addf %552, %551 : vector<2x128xf32>
    %554 = arith.divf %552, %553 : vector<2x128xf32>
    %555 = vector.extract_strided_slice %554 {offsets = [0, 0], sizes = [2, 32], strides = [1, 1]} : vector<2x128xf32> to vector<2x32xf32>
    %556 = vector.extract_strided_slice %554 {offsets = [0, 32], sizes = [2, 32], strides = [1, 1]} : vector<2x128xf32> to vector<2x32xf32>
    %557 = vector.extract_strided_slice %554 {offsets = [0, 96], sizes = [2, 32], strides = [1, 1]} : vector<2x128xf32> to vector<2x32xf32>
    %558 = vector.extract_strided_slice %549 {offsets = [0, 64], sizes = [2, 32], strides = [1, 1]} : vector<2x128xf32> to vector<2x32xf32>
    %559 = math.tanh %558 : vector<2x32xf32>
    %560 = arith.mulf %556, %395 : vector<2x32xf32>
    %561 = arith.mulf %555, %559 : vector<2x32xf32>
    %562 = arith.addf %560, %561 : vector<2x32xf32>
    %563 = math.tanh %562 : vector<2x32xf32>
    %564 = arith.mulf %557, %563 : vector<2x32xf32>
    %565 = arith.truncf %564 : vector<2x32xf32> to vector<2x32xbf16>
    %c0_254 = arith.constant 0 : index
    %c0_255 = arith.constant 0 : index
    %566 = vector.load %arg8[%c0_254, %c0_255] : memref<32x32xbf16, #tpu.memory_space<vmem>>, vector<32x32xbf16>
    %cst_256 = arith.constant dense<0.000000e+00> : vector<2x32xf32>
    %567 = tpu.matmul %565, %566, %cst_256 {dimension_numbers = #tpu.dot_dimension_numbers<[1], [0], [0], [1], [0, 0, 1, 1], [], []>} : vector<2x32xbf16>, vector<32x32xbf16>, vector<2x32xf32> -> vector<2x32xf32>
    %568 = arith.addf %567, %19 : vector<2x32xf32>
    %569 = vector.shape_cast %568 : vector<2x32xf32> to vector<2x1x32xf32>
    %c0_257 = arith.constant 0 : index
    %c0_258 = arith.constant 0 : index
    %c0_259 = arith.constant 0 : index
    %570 = vector.load %arg11[%c0_257, %c0_258, %c0_259] : memref<2x8x32xf32, #tpu.memory_space<vmem>>, vector<2x8x32xf32>
    %571 = vector.broadcast %569 : vector<2x1x32xf32> to vector<2x8x32xf32>
    %572 = arith.addf %571, %570 : vector<2x8x32xf32>
    %573 = math.tanh %572 : vector<2x8x32xf32>
    %c0_260 = arith.constant 0 : index
    %c0_261 = arith.constant 0 : index
    %574 = vector.load %arg10[%c0_260, %c0_261] : memref<1x32xf32, #tpu.memory_space<vmem>>, vector<1x32xf32>
    %575 = vector.shape_cast %574 : vector<1x32xf32> to vector<1x1x32xf32>
    %576 = vector.broadcast %575 : vector<1x1x32xf32> to vector<2x8x32xf32>
    %577 = arith.mulf %573, %576 : vector<2x8x32xf32>
    %cst_262 = arith.constant dense<0.000000e+00> : vector<2x8xf32>
    %578 = vector.multi_reduction <add>, %577, %cst_262 [2] : vector<2x8x32xf32> to vector<2x8xf32>
    %cst_263 = arith.constant 0.000000e+00 : f32
    %579 = vector.broadcast %cst_263 : f32 to vector<2x8xf32>
    %580 = arith.cmpf ogt, %0, %579 : vector<2x8xf32>
    %cst_264 = arith.constant -1.000000e+09 : f32
    %581 = vector.broadcast %cst_264 : f32 to vector<2x8xf32>
    %582 = arith.select %580, %578, %581 : vector<2x8xi1>, vector<2x8xf32>
    %cst_265 = arith.constant dense<0xFF800000> : vector<2xf32>
    %583 = vector.multi_reduction <maximumf>, %582, %cst_265 [1] : vector<2x8xf32> to vector<2xf32>
    %584 = vector.shape_cast %583 : vector<2xf32> to vector<2x1xf32>
    %585 = vector.broadcast %584 : vector<2x1xf32> to vector<2x8xf32>
    %586 = arith.subf %582, %585 : vector<2x8xf32>
    %587 = math.exp %586 : vector<2x8xf32>
    %cst_266 = arith.constant dense<0.000000e+00> : vector<2xf32>
    %588 = vector.multi_reduction <add>, %587, %cst_266 [1] : vector<2x8xf32> to vector<2xf32>
    %589 = vector.shape_cast %588 : vector<2xf32> to vector<2x1xf32>
    %590 = tpu.reciprocal %589 {approx = true} : vector<2x1xf32> -> vector<2x1xf32>
    %591 = vector.broadcast %590 : vector<2x1xf32> to vector<2x8xf32>
    %592 = arith.mulf %587, %591 : vector<2x8xf32>
    %593 = vector.shape_cast %592 : vector<2x8xf32> to vector<2x8x1xf32>
    %c0_267 = arith.constant 0 : index
    %c0_268 = arith.constant 0 : index
    %c0_269 = arith.constant 0 : index
    %594 = vector.load %arg0[%c0_267, %c0_268, %c0_269] : memref<2x8x32xf32, #tpu.memory_space<vmem>>, vector<2x8x32xf32>
    %595 = vector.broadcast %593 : vector<2x8x1xf32> to vector<2x8x32xf32>
    %596 = arith.mulf %595, %594 : vector<2x8x32xf32>
    %cst_270 = arith.constant dense<0.000000e+00> : vector<2x32xf32>
    %597 = vector.multi_reduction <add>, %596, %cst_270 [1] : vector<2x8x32xf32> to vector<2x32xf32>
    %598 = arith.truncf %564 : vector<2x32xf32> to vector<2x32xbf16>
    %c0_271 = arith.constant 0 : index
    %c0_272 = arith.constant 0 : index
    %599 = vector.load %arg12[%c0_271, %c0_272] : memref<32x32xbf16, #tpu.memory_space<vmem>>, vector<32x32xbf16>
    %cst_273 = arith.constant dense<0.000000e+00> : vector<2x32xf32>
    %600 = tpu.matmul %598, %599, %cst_273 {dimension_numbers = #tpu.dot_dimension_numbers<[1], [0], [0], [1], [0, 0, 1, 1], [], []>} : vector<2x32xbf16>, vector<32x32xbf16>, vector<2x32xf32> -> vector<2x32xf32>
    %601 = arith.truncf %597 : vector<2x32xf32> to vector<2x32xbf16>
    %c0_274 = arith.constant 0 : index
    %c0_275 = arith.constant 0 : index
    %602 = vector.load %arg13[%c0_274, %c0_275] : memref<32x32xbf16, #tpu.memory_space<vmem>>, vector<32x32xbf16>
    %cst_276 = arith.constant dense<0.000000e+00> : vector<2x32xf32>
    %603 = tpu.matmul %601, %602, %cst_276 {dimension_numbers = #tpu.dot_dimension_numbers<[1], [0], [0], [1], [0, 0, 1, 1], [], []>} : vector<2x32xbf16>, vector<32x32xbf16>, vector<2x32xf32> -> vector<2x32xf32>
    %604 = arith.addf %600, %603 : vector<2x32xf32>
    %605 = arith.addf %604, %22 : vector<2x32xf32>
    %606 = vector.shape_cast %605 : vector<2x32xf32> to vector<2x1x32xf32>
    %c0_277 = arith.constant 0 : index
    %c0_278 = arith.constant 0 : index
    %c0_279 = arith.constant 0 : index
    %607 = vector.load %arg16[%c0_277, %c0_278, %c0_279] : memref<2x8x32xf32, #tpu.memory_space<vmem>>, vector<2x8x32xf32>
    %608 = vector.broadcast %606 : vector<2x1x32xf32> to vector<2x8x32xf32>
    %609 = arith.addf %608, %607 : vector<2x8x32xf32>
    %610 = math.tanh %609 : vector<2x8x32xf32>
    %c0_280 = arith.constant 0 : index
    %c0_281 = arith.constant 0 : index
    %611 = vector.load %arg15[%c0_280, %c0_281] : memref<1x32xf32, #tpu.memory_space<vmem>>, vector<1x32xf32>
    %612 = vector.shape_cast %611 : vector<1x32xf32> to vector<1x1x32xf32>
    %613 = vector.broadcast %612 : vector<1x1x32xf32> to vector<2x8x32xf32>
    %614 = arith.mulf %610, %613 : vector<2x8x32xf32>
    %cst_282 = arith.constant dense<0.000000e+00> : vector<2x8xf32>
    %615 = vector.multi_reduction <add>, %614, %cst_282 [2] : vector<2x8x32xf32> to vector<2x8xf32>
    %cst_283 = arith.constant 0.000000e+00 : f32
    %616 = vector.broadcast %cst_283 : f32 to vector<2x8xf32>
    %617 = arith.cmpf ogt, %10, %616 : vector<2x8xf32>
    %cst_284 = arith.constant -1.000000e+09 : f32
    %618 = vector.broadcast %cst_284 : f32 to vector<2x8xf32>
    %619 = arith.select %617, %615, %618 : vector<2x8xi1>, vector<2x8xf32>
    %cst_285 = arith.constant dense<0xFF800000> : vector<2xf32>
    %620 = vector.multi_reduction <maximumf>, %619, %cst_285 [1] : vector<2x8xf32> to vector<2xf32>
    %621 = vector.shape_cast %620 : vector<2xf32> to vector<2x1xf32>
    %622 = vector.broadcast %621 : vector<2x1xf32> to vector<2x8xf32>
    %623 = arith.subf %619, %622 : vector<2x8xf32>
    %624 = math.exp %623 : vector<2x8xf32>
    %cst_286 = arith.constant dense<0.000000e+00> : vector<2xf32>
    %625 = vector.multi_reduction <add>, %624, %cst_286 [1] : vector<2x8xf32> to vector<2xf32>
    %626 = vector.shape_cast %625 : vector<2xf32> to vector<2x1xf32>
    %627 = tpu.reciprocal %626 {approx = true} : vector<2x1xf32> -> vector<2x1xf32>
    %628 = vector.broadcast %627 : vector<2x1xf32> to vector<2x8xf32>
    %629 = arith.mulf %624, %628 : vector<2x8xf32>
    %630 = vector.shape_cast %629 : vector<2x8xf32> to vector<2x8x1xf32>
    %c0_287 = arith.constant 0 : index
    %c0_288 = arith.constant 0 : index
    %c0_289 = arith.constant 0 : index
    %631 = vector.load %arg0[%c0_287, %c0_288, %c0_289] : memref<2x8x32xf32, #tpu.memory_space<vmem>>, vector<2x8x32xf32>
    %632 = vector.broadcast %630 : vector<2x8x1xf32> to vector<2x8x32xf32>
    %633 = arith.mulf %632, %631 : vector<2x8x32xf32>
    %cst_290 = arith.constant dense<0.000000e+00> : vector<2x32xf32>
    %634 = vector.multi_reduction <add>, %633, %cst_290 [1] : vector<2x8x32xf32> to vector<2x32xf32>
    %635 = arith.truncf %597 : vector<2x32xf32> to vector<2x32xbf16>
    %c0_291 = arith.constant 0 : index
    %c0_292 = arith.constant 0 : index
    %636 = vector.load %arg17[%c0_291, %c0_292] : memref<32x128xbf16, #tpu.memory_space<vmem>>, vector<32x128xbf16>
    %cst_293 = arith.constant dense<0.000000e+00> : vector<2x128xf32>
    %637 = tpu.matmul %635, %636, %cst_293 {dimension_numbers = #tpu.dot_dimension_numbers<[1], [0], [0], [1], [0, 0, 1, 1], [], []>} : vector<2x32xbf16>, vector<32x128xbf16>, vector<2x128xf32> -> vector<2x128xf32>
    %638 = arith.truncf %634 : vector<2x32xf32> to vector<2x32xbf16>
    %c0_294 = arith.constant 0 : index
    %c0_295 = arith.constant 0 : index
    %639 = vector.load %arg18[%c0_294, %c0_295] : memref<32x128xbf16, #tpu.memory_space<vmem>>, vector<32x128xbf16>
    %cst_296 = arith.constant dense<0.000000e+00> : vector<2x128xf32>
    %640 = tpu.matmul %638, %639, %cst_296 {dimension_numbers = #tpu.dot_dimension_numbers<[1], [0], [0], [1], [0, 0, 1, 1], [], []>} : vector<2x32xbf16>, vector<32x128xbf16>, vector<2x128xf32> -> vector<2x128xf32>
    %641 = arith.addf %637, %640 : vector<2x128xf32>
    %642 = arith.truncf %564 : vector<2x32xf32> to vector<2x32xbf16>
    %c0_297 = arith.constant 0 : index
    %c0_298 = arith.constant 0 : index
    %643 = vector.load %arg19[%c0_297, %c0_298] : memref<32x128xbf16, #tpu.memory_space<vmem>>, vector<32x128xbf16>
    %cst_299 = arith.constant dense<0.000000e+00> : vector<2x128xf32>
    %644 = tpu.matmul %642, %643, %cst_299 {dimension_numbers = #tpu.dot_dimension_numbers<[1], [0], [0], [1], [0, 0, 1, 1], [], []>} : vector<2x32xbf16>, vector<32x128xbf16>, vector<2x128xf32> -> vector<2x128xf32>
    %645 = arith.addf %641, %644 : vector<2x128xf32>
    %646 = arith.truncf %498 : vector<2x32xf32> to vector<2x32xbf16>
    %c0_300 = arith.constant 0 : index
    %c0_301 = arith.constant 0 : index
    %647 = vector.load %arg20[%c0_300, %c0_301] : memref<32x128xbf16, #tpu.memory_space<vmem>>, vector<32x128xbf16>
    %cst_302 = arith.constant dense<0.000000e+00> : vector<2x128xf32>
    %648 = tpu.matmul %646, %647, %cst_302 {dimension_numbers = #tpu.dot_dimension_numbers<[1], [0], [0], [1], [0, 0, 1, 1], [], []>} : vector<2x32xbf16>, vector<32x128xbf16>, vector<2x128xf32> -> vector<2x128xf32>
    %649 = arith.addf %645, %648 : vector<2x128xf32>
    %650 = arith.addf %649, %16 : vector<2x128xf32>
    %651 = arith.negf %650 : vector<2x128xf32>
    %652 = math.exp %651 : vector<2x128xf32>
    %cst_303 = arith.constant 1.000000e+00 : f32
    %653 = vector.broadcast %cst_303 : f32 to vector<2x128xf32>
    %654 = arith.addf %653, %652 : vector<2x128xf32>
    %655 = arith.divf %653, %654 : vector<2x128xf32>
    %656 = vector.extract_strided_slice %655 {offsets = [0, 0], sizes = [2, 32], strides = [1, 1]} : vector<2x128xf32> to vector<2x32xf32>
    %657 = vector.extract_strided_slice %655 {offsets = [0, 32], sizes = [2, 32], strides = [1, 1]} : vector<2x128xf32> to vector<2x32xf32>
    %658 = vector.extract_strided_slice %655 {offsets = [0, 96], sizes = [2, 32], strides = [1, 1]} : vector<2x128xf32> to vector<2x32xf32>
    %659 = vector.extract_strided_slice %650 {offsets = [0, 64], sizes = [2, 32], strides = [1, 1]} : vector<2x128xf32> to vector<2x32xf32>
    %660 = math.tanh %659 : vector<2x32xf32>
    %661 = arith.mulf %657, %496 : vector<2x32xf32>
    %662 = arith.mulf %656, %660 : vector<2x32xf32>
    %663 = arith.addf %661, %662 : vector<2x32xf32>
    %664 = math.tanh %663 : vector<2x32xf32>
    %665 = arith.mulf %658, %664 : vector<2x32xf32>
    %666 = arith.truncf %665 : vector<2x32xf32> to vector<2x32xbf16>
    %c0_304 = arith.constant 0 : index
    %c0_305 = arith.constant 0 : index
    %667 = vector.load %arg22[%c0_304, %c0_305] : memref<32x128xbf16, #tpu.memory_space<vmem>>, vector<32x128xbf16>
    %cst_306 = arith.constant dense<0.000000e+00> : vector<2x128xf32>
    %668 = tpu.matmul %666, %667, %cst_306 {dimension_numbers = #tpu.dot_dimension_numbers<[1], [0], [0], [1], [0, 0, 1, 1], [], []>} : vector<2x32xbf16>, vector<32x128xbf16>, vector<2x128xf32> -> vector<2x128xf32>
    %669 = arith.addf %668, %25 : vector<2x128xf32>
    %cst_307 = arith.constant dense<0xFF800000> : vector<2xf32>
    %670 = vector.multi_reduction <maximumf>, %669, %cst_307 [1] : vector<2x128xf32> to vector<2xf32>
    %671 = vector.shape_cast %670 : vector<2xf32> to vector<2x1xf32>
    %672 = vector.broadcast %671 : vector<2x1xf32> to vector<2x128xf32>
    %673 = arith.subf %669, %672 : vector<2x128xf32>
    %674 = math.exp %673 : vector<2x128xf32>
    %cst_308 = arith.constant dense<0.000000e+00> : vector<2xf32>
    %675 = vector.multi_reduction <add>, %674, %cst_308 [1] : vector<2x128xf32> to vector<2xf32>
    %676 = vector.shape_cast %675 : vector<2xf32> to vector<2x1xf32>
    %677 = math.log %676 : vector<2x1xf32>
    %678 = arith.addf %671, %677 : vector<2x1xf32>
    %679 = vector.broadcast %678 : vector<2x1xf32> to vector<2x128xf32>
    %680 = arith.subf %669, %679 : vector<2x128xf32>
    %681 = arith.index_cast %c3_i32 : i32 to index
    %c0_309 = arith.constant 0 : index
    %c0_310 = arith.constant 0 : index
    %682 = vector.load %arg24[%681, %c0_309, %c0_310] : memref<6x2x128xf32, #tpu.memory_space<vmem>>, vector<1x2x128xf32>
    %683 = vector.shape_cast %682 : vector<1x2x128xf32> to vector<2x128xf32>
    %684 = vector.shape_cast %680 : vector<2x128xf32> to vector<1x2x128xf32>
    tpu.vector_store %arg24[%681, %c0_309, %c0_310], %684 {strides = array<i32>} : memref<6x2x128xf32, #tpu.memory_space<vmem>>, vector<1x2x128xf32>,
    %685 = vector.broadcast %671 : vector<2x1xf32> to vector<2x128xf32>
    %686 = arith.cmpf oeq, %669, %685 : vector<2x128xf32>
    %cst_311 = arith.constant 1.280000e+02 : f32
    %687 = vector.broadcast %cst_311 : f32 to vector<2x128xf32>
    %688 = arith.select %686, %12, %687 : vector<2x128xi1>, vector<2x128xf32>
    %cst_312 = arith.constant dense<0x7F800000> : vector<2xf32>
    %689 = vector.multi_reduction <minimumf>, %688, %cst_312 [1] : vector<2x128xf32> to vector<2xf32>
    %690 = vector.shape_cast %689 : vector<2xf32> to vector<2x1xf32>
    %cst_313 = arith.constant 2.000000e+00 : f32
    %691 = vector.broadcast %cst_313 : f32 to vector<2x1xf32>
    %692 = arith.cmpf oeq, %690, %691 : vector<2x1xf32>
    %693 = arith.extui %692 : vector<2x1xi1> to vector<2x1xi32>
    %694 = arith.sitofp %693 : vector<2x1xi32> to vector<2x1xf32>
    %695 = arith.addf %528, %694 : vector<2x1xf32>
    %cst_314 = arith.constant 0.000000e+00 : f32
    %696 = vector.broadcast %cst_314 : f32 to vector<2x1xf32>
    %697 = arith.cmpf one, %695, %696 : vector<2x1xf32>
    %cst_315 = arith.constant 2.000000e+00 : f32
    %698 = vector.broadcast %cst_315 : f32 to vector<2x1xf32>
    %699 = arith.select %697, %698, %690 : vector<2x1xi1>, vector<2x1xf32>
    %c4_i32 = arith.constant 4 : i32
    %700 = vector.broadcast %699 : vector<2x1xf32> to vector<2x128xf32>
    %701 = arith.cmpf oeq, %12, %700 : vector<2x128xf32>
    %702 = arith.extui %701 : vector<2x128xi1> to vector<2x128xi32>
    %703 = arith.sitofp %702 : vector<2x128xi32> to vector<2x128xf32>
    %704 = arith.truncf %703 : vector<2x128xf32> to vector<2x128xbf16>
    %c0_316 = arith.constant 0 : index
    %c0_317 = arith.constant 0 : index
    %705 = vector.load %arg4[%c0_316, %c0_317] : memref<128x16xbf16, #tpu.memory_space<vmem>>, vector<128x16xbf16>
    %cst_318 = arith.constant dense<0.000000e+00> : vector<2x16xf32>
    %706 = tpu.matmul %704, %705, %cst_318 {dimension_numbers = #tpu.dot_dimension_numbers<[1], [0], [0], [1], [0, 0, 1, 1], [], []>} : vector<2x128xbf16>, vector<128x16xbf16>, vector<2x16xf32> -> vector<2x16xf32>
    %cst_319 = arith.constant 0.000000e+00 : f32
    %707 = vector.broadcast %cst_319 : f32 to vector<2x16xf32>
    %708 = arith.maximumf %706, %707 : vector<2x16xf32>
    %709 = arith.truncf %708 : vector<2x16xf32> to vector<2x16xbf16>
    %c0_320 = arith.constant 0 : index
    %c0_321 = arith.constant 0 : index
    %710 = vector.load %arg6[%c0_320, %c0_321] : memref<16x128xbf16, #tpu.memory_space<vmem>>, vector<16x128xbf16>
    %cst_322 = arith.constant dense<0.000000e+00> : vector<2x128xf32>
    %711 = tpu.matmul %709, %710, %cst_322 {dimension_numbers = #tpu.dot_dimension_numbers<[1], [0], [0], [1], [0, 0, 1, 1], [], []>} : vector<2x16xbf16>, vector<16x128xbf16>, vector<2x128xf32> -> vector<2x128xf32>
    %712 = arith.addf %13, %711 : vector<2x128xf32>
    %713 = arith.truncf %564 : vector<2x32xf32> to vector<2x32xbf16>
    %c0_323 = arith.constant 0 : index
    %c0_324 = arith.constant 0 : index
    %714 = vector.load %arg7[%c0_323, %c0_324] : memref<32x128xbf16, #tpu.memory_space<vmem>>, vector<32x128xbf16>
    %cst_325 = arith.constant dense<0.000000e+00> : vector<2x128xf32>
    %715 = tpu.matmul %713, %714, %cst_325 {dimension_numbers = #tpu.dot_dimension_numbers<[1], [0], [0], [1], [0, 0, 1, 1], [], []>} : vector<2x32xbf16>, vector<32x128xbf16>, vector<2x128xf32> -> vector<2x128xf32>
    %716 = arith.addf %712, %715 : vector<2x128xf32>
    %717 = arith.negf %716 : vector<2x128xf32>
    %718 = math.exp %717 : vector<2x128xf32>
    %cst_326 = arith.constant 1.000000e+00 : f32
    %719 = vector.broadcast %cst_326 : f32 to vector<2x128xf32>
    %720 = arith.addf %719, %718 : vector<2x128xf32>
    %721 = arith.divf %719, %720 : vector<2x128xf32>
    %722 = vector.extract_strided_slice %721 {offsets = [0, 0], sizes = [2, 32], strides = [1, 1]} : vector<2x128xf32> to vector<2x32xf32>
    %723 = vector.extract_strided_slice %721 {offsets = [0, 32], sizes = [2, 32], strides = [1, 1]} : vector<2x128xf32> to vector<2x32xf32>
    %724 = vector.extract_strided_slice %721 {offsets = [0, 96], sizes = [2, 32], strides = [1, 1]} : vector<2x128xf32> to vector<2x32xf32>
    %725 = vector.extract_strided_slice %716 {offsets = [0, 64], sizes = [2, 32], strides = [1, 1]} : vector<2x128xf32> to vector<2x32xf32>
    %726 = math.tanh %725 : vector<2x32xf32>
    %727 = arith.mulf %723, %562 : vector<2x32xf32>
    %728 = arith.mulf %722, %726 : vector<2x32xf32>
    %729 = arith.addf %727, %728 : vector<2x32xf32>
    %730 = math.tanh %729 : vector<2x32xf32>
    %731 = arith.mulf %724, %730 : vector<2x32xf32>
    %732 = arith.truncf %731 : vector<2x32xf32> to vector<2x32xbf16>
    %c0_327 = arith.constant 0 : index
    %c0_328 = arith.constant 0 : index
    %733 = vector.load %arg8[%c0_327, %c0_328] : memref<32x32xbf16, #tpu.memory_space<vmem>>, vector<32x32xbf16>
    %cst_329 = arith.constant dense<0.000000e+00> : vector<2x32xf32>
    %734 = tpu.matmul %732, %733, %cst_329 {dimension_numbers = #tpu.dot_dimension_numbers<[1], [0], [0], [1], [0, 0, 1, 1], [], []>} : vector<2x32xbf16>, vector<32x32xbf16>, vector<2x32xf32> -> vector<2x32xf32>
    %735 = arith.addf %734, %19 : vector<2x32xf32>
    %736 = vector.shape_cast %735 : vector<2x32xf32> to vector<2x1x32xf32>
    %c0_330 = arith.constant 0 : index
    %c0_331 = arith.constant 0 : index
    %c0_332 = arith.constant 0 : index
    %737 = vector.load %arg11[%c0_330, %c0_331, %c0_332] : memref<2x8x32xf32, #tpu.memory_space<vmem>>, vector<2x8x32xf32>
    %738 = vector.broadcast %736 : vector<2x1x32xf32> to vector<2x8x32xf32>
    %739 = arith.addf %738, %737 : vector<2x8x32xf32>
    %740 = math.tanh %739 : vector<2x8x32xf32>
    %c0_333 = arith.constant 0 : index
    %c0_334 = arith.constant 0 : index
    %741 = vector.load %arg10[%c0_333, %c0_334] : memref<1x32xf32, #tpu.memory_space<vmem>>, vector<1x32xf32>
    %742 = vector.shape_cast %741 : vector<1x32xf32> to vector<1x1x32xf32>
    %743 = vector.broadcast %742 : vector<1x1x32xf32> to vector<2x8x32xf32>
    %744 = arith.mulf %740, %743 : vector<2x8x32xf32>
    %cst_335 = arith.constant dense<0.000000e+00> : vector<2x8xf32>
    %745 = vector.multi_reduction <add>, %744, %cst_335 [2] : vector<2x8x32xf32> to vector<2x8xf32>
    %cst_336 = arith.constant 0.000000e+00 : f32
    %746 = vector.broadcast %cst_336 : f32 to vector<2x8xf32>
    %747 = arith.cmpf ogt, %0, %746 : vector<2x8xf32>
    %cst_337 = arith.constant -1.000000e+09 : f32
    %748 = vector.broadcast %cst_337 : f32 to vector<2x8xf32>
    %749 = arith.select %747, %745, %748 : vector<2x8xi1>, vector<2x8xf32>
    %cst_338 = arith.constant dense<0xFF800000> : vector<2xf32>
    %750 = vector.multi_reduction <maximumf>, %749, %cst_338 [1] : vector<2x8xf32> to vector<2xf32>
    %751 = vector.shape_cast %750 : vector<2xf32> to vector<2x1xf32>
    %752 = vector.broadcast %751 : vector<2x1xf32> to vector<2x8xf32>
    %753 = arith.subf %749, %752 : vector<2x8xf32>
    %754 = math.exp %753 : vector<2x8xf32>
    %cst_339 = arith.constant dense<0.000000e+00> : vector<2xf32>
    %755 = vector.multi_reduction <add>, %754, %cst_339 [1] : vector<2x8xf32> to vector<2xf32>
    %756 = vector.shape_cast %755 : vector<2xf32> to vector<2x1xf32>
    %757 = tpu.reciprocal %756 {approx = true} : vector<2x1xf32> -> vector<2x1xf32>
    %758 = vector.broadcast %757 : vector<2x1xf32> to vector<2x8xf32>
    %759 = arith.mulf %754, %758 : vector<2x8xf32>
    %760 = vector.shape_cast %759 : vector<2x8xf32> to vector<2x8x1xf32>
    %c0_340 = arith.constant 0 : index
    %c0_341 = arith.constant 0 : index
    %c0_342 = arith.constant 0 : index
    %761 = vector.load %arg0[%c0_340, %c0_341, %c0_342] : memref<2x8x32xf32, #tpu.memory_space<vmem>>, vector<2x8x32xf32>
    %762 = vector.broadcast %760 : vector<2x8x1xf32> to vector<2x8x32xf32>
    %763 = arith.mulf %762, %761 : vector<2x8x32xf32>
    %cst_343 = arith.constant dense<0.000000e+00> : vector<2x32xf32>
    %764 = vector.multi_reduction <add>, %763, %cst_343 [1] : vector<2x8x32xf32> to vector<2x32xf32>
    %765 = arith.truncf %731 : vector<2x32xf32> to vector<2x32xbf16>
    %c0_344 = arith.constant 0 : index
    %c0_345 = arith.constant 0 : index
    %766 = vector.load %arg12[%c0_344, %c0_345] : memref<32x32xbf16, #tpu.memory_space<vmem>>, vector<32x32xbf16>
    %cst_346 = arith.constant dense<0.000000e+00> : vector<2x32xf32>
    %767 = tpu.matmul %765, %766, %cst_346 {dimension_numbers = #tpu.dot_dimension_numbers<[1], [0], [0], [1], [0, 0, 1, 1], [], []>} : vector<2x32xbf16>, vector<32x32xbf16>, vector<2x32xf32> -> vector<2x32xf32>
    %768 = arith.truncf %764 : vector<2x32xf32> to vector<2x32xbf16>
    %c0_347 = arith.constant 0 : index
    %c0_348 = arith.constant 0 : index
    %769 = vector.load %arg13[%c0_347, %c0_348] : memref<32x32xbf16, #tpu.memory_space<vmem>>, vector<32x32xbf16>
    %cst_349 = arith.constant dense<0.000000e+00> : vector<2x32xf32>
    %770 = tpu.matmul %768, %769, %cst_349 {dimension_numbers = #tpu.dot_dimension_numbers<[1], [0], [0], [1], [0, 0, 1, 1], [], []>} : vector<2x32xbf16>, vector<32x32xbf16>, vector<2x32xf32> -> vector<2x32xf32>
    %771 = arith.addf %767, %770 : vector<2x32xf32>
    %772 = arith.addf %771, %22 : vector<2x32xf32>
    %773 = vector.shape_cast %772 : vector<2x32xf32> to vector<2x1x32xf32>
    %c0_350 = arith.constant 0 : index
    %c0_351 = arith.constant 0 : index
    %c0_352 = arith.constant 0 : index
    %774 = vector.load %arg16[%c0_350, %c0_351, %c0_352] : memref<2x8x32xf32, #tpu.memory_space<vmem>>, vector<2x8x32xf32>
    %775 = vector.broadcast %773 : vector<2x1x32xf32> to vector<2x8x32xf32>
    %776 = arith.addf %775, %774 : vector<2x8x32xf32>
    %777 = math.tanh %776 : vector<2x8x32xf32>
    %c0_353 = arith.constant 0 : index
    %c0_354 = arith.constant 0 : index
    %778 = vector.load %arg15[%c0_353, %c0_354] : memref<1x32xf32, #tpu.memory_space<vmem>>, vector<1x32xf32>
    %779 = vector.shape_cast %778 : vector<1x32xf32> to vector<1x1x32xf32>
    %780 = vector.broadcast %779 : vector<1x1x32xf32> to vector<2x8x32xf32>
    %781 = arith.mulf %777, %780 : vector<2x8x32xf32>
    %cst_355 = arith.constant dense<0.000000e+00> : vector<2x8xf32>
    %782 = vector.multi_reduction <add>, %781, %cst_355 [2] : vector<2x8x32xf32> to vector<2x8xf32>
    %cst_356 = arith.constant 0.000000e+00 : f32
    %783 = vector.broadcast %cst_356 : f32 to vector<2x8xf32>
    %784 = arith.cmpf ogt, %10, %783 : vector<2x8xf32>
    %cst_357 = arith.constant -1.000000e+09 : f32
    %785 = vector.broadcast %cst_357 : f32 to vector<2x8xf32>
    %786 = arith.select %784, %782, %785 : vector<2x8xi1>, vector<2x8xf32>
    %cst_358 = arith.constant dense<0xFF800000> : vector<2xf32>
    %787 = vector.multi_reduction <maximumf>, %786, %cst_358 [1] : vector<2x8xf32> to vector<2xf32>
    %788 = vector.shape_cast %787 : vector<2xf32> to vector<2x1xf32>
    %789 = vector.broadcast %788 : vector<2x1xf32> to vector<2x8xf32>
    %790 = arith.subf %786, %789 : vector<2x8xf32>
    %791 = math.exp %790 : vector<2x8xf32>
    %cst_359 = arith.constant dense<0.000000e+00> : vector<2xf32>
    %792 = vector.multi_reduction <add>, %791, %cst_359 [1] : vector<2x8xf32> to vector<2xf32>
    %793 = vector.shape_cast %792 : vector<2xf32> to vector<2x1xf32>
    %794 = tpu.reciprocal %793 {approx = true} : vector<2x1xf32> -> vector<2x1xf32>
    %795 = vector.broadcast %794 : vector<2x1xf32> to vector<2x8xf32>
    %796 = arith.mulf %791, %795 : vector<2x8xf32>
    %797 = vector.shape_cast %796 : vector<2x8xf32> to vector<2x8x1xf32>
    %c0_360 = arith.constant 0 : index
    %c0_361 = arith.constant 0 : index
    %c0_362 = arith.constant 0 : index
    %798 = vector.load %arg0[%c0_360, %c0_361, %c0_362] : memref<2x8x32xf32, #tpu.memory_space<vmem>>, vector<2x8x32xf32>
    %799 = vector.broadcast %797 : vector<2x8x1xf32> to vector<2x8x32xf32>
    %800 = arith.mulf %799, %798 : vector<2x8x32xf32>
    %cst_363 = arith.constant dense<0.000000e+00> : vector<2x32xf32>
    %801 = vector.multi_reduction <add>, %800, %cst_363 [1] : vector<2x8x32xf32> to vector<2x32xf32>
    %802 = arith.truncf %764 : vector<2x32xf32> to vector<2x32xbf16>
    %c0_364 = arith.constant 0 : index
    %c0_365 = arith.constant 0 : index
    %803 = vector.load %arg17[%c0_364, %c0_365] : memref<32x128xbf16, #tpu.memory_space<vmem>>, vector<32x128xbf16>
    %cst_366 = arith.constant dense<0.000000e+00> : vector<2x128xf32>
    %804 = tpu.matmul %802, %803, %cst_366 {dimension_numbers = #tpu.dot_dimension_numbers<[1], [0], [0], [1], [0, 0, 1, 1], [], []>} : vector<2x32xbf16>, vector<32x128xbf16>, vector<2x128xf32> -> vector<2x128xf32>
    %805 = arith.truncf %801 : vector<2x32xf32> to vector<2x32xbf16>
    %c0_367 = arith.constant 0 : index
    %c0_368 = arith.constant 0 : index
    %806 = vector.load %arg18[%c0_367, %c0_368] : memref<32x128xbf16, #tpu.memory_space<vmem>>, vector<32x128xbf16>
    %cst_369 = arith.constant dense<0.000000e+00> : vector<2x128xf32>
    %807 = tpu.matmul %805, %806, %cst_369 {dimension_numbers = #tpu.dot_dimension_numbers<[1], [0], [0], [1], [0, 0, 1, 1], [], []>} : vector<2x32xbf16>, vector<32x128xbf16>, vector<2x128xf32> -> vector<2x128xf32>
    %808 = arith.addf %804, %807 : vector<2x128xf32>
    %809 = arith.truncf %731 : vector<2x32xf32> to vector<2x32xbf16>
    %c0_370 = arith.constant 0 : index
    %c0_371 = arith.constant 0 : index
    %810 = vector.load %arg19[%c0_370, %c0_371] : memref<32x128xbf16, #tpu.memory_space<vmem>>, vector<32x128xbf16>
    %cst_372 = arith.constant dense<0.000000e+00> : vector<2x128xf32>
    %811 = tpu.matmul %809, %810, %cst_372 {dimension_numbers = #tpu.dot_dimension_numbers<[1], [0], [0], [1], [0, 0, 1, 1], [], []>} : vector<2x32xbf16>, vector<32x128xbf16>, vector<2x128xf32> -> vector<2x128xf32>
    %812 = arith.addf %808, %811 : vector<2x128xf32>
    %813 = arith.truncf %665 : vector<2x32xf32> to vector<2x32xbf16>
    %c0_373 = arith.constant 0 : index
    %c0_374 = arith.constant 0 : index
    %814 = vector.load %arg20[%c0_373, %c0_374] : memref<32x128xbf16, #tpu.memory_space<vmem>>, vector<32x128xbf16>
    %cst_375 = arith.constant dense<0.000000e+00> : vector<2x128xf32>
    %815 = tpu.matmul %813, %814, %cst_375 {dimension_numbers = #tpu.dot_dimension_numbers<[1], [0], [0], [1], [0, 0, 1, 1], [], []>} : vector<2x32xbf16>, vector<32x128xbf16>, vector<2x128xf32> -> vector<2x128xf32>
    %816 = arith.addf %812, %815 : vector<2x128xf32>
    %817 = arith.addf %816, %16 : vector<2x128xf32>
    %818 = arith.negf %817 : vector<2x128xf32>
    %819 = math.exp %818 : vector<2x128xf32>
    %cst_376 = arith.constant 1.000000e+00 : f32
    %820 = vector.broadcast %cst_376 : f32 to vector<2x128xf32>
    %821 = arith.addf %820, %819 : vector<2x128xf32>
    %822 = arith.divf %820, %821 : vector<2x128xf32>
    %823 = vector.extract_strided_slice %822 {offsets = [0, 0], sizes = [2, 32], strides = [1, 1]} : vector<2x128xf32> to vector<2x32xf32>
    %824 = vector.extract_strided_slice %822 {offsets = [0, 32], sizes = [2, 32], strides = [1, 1]} : vector<2x128xf32> to vector<2x32xf32>
    %825 = vector.extract_strided_slice %822 {offsets = [0, 96], sizes = [2, 32], strides = [1, 1]} : vector<2x128xf32> to vector<2x32xf32>
    %826 = vector.extract_strided_slice %817 {offsets = [0, 64], sizes = [2, 32], strides = [1, 1]} : vector<2x128xf32> to vector<2x32xf32>
    %827 = math.tanh %826 : vector<2x32xf32>
    %828 = arith.mulf %824, %663 : vector<2x32xf32>
    %829 = arith.mulf %823, %827 : vector<2x32xf32>
    %830 = arith.addf %828, %829 : vector<2x32xf32>
    %831 = math.tanh %830 : vector<2x32xf32>
    %832 = arith.mulf %825, %831 : vector<2x32xf32>
    %833 = arith.truncf %832 : vector<2x32xf32> to vector<2x32xbf16>
    %c0_377 = arith.constant 0 : index
    %c0_378 = arith.constant 0 : index
    %834 = vector.load %arg22[%c0_377, %c0_378] : memref<32x128xbf16, #tpu.memory_space<vmem>>, vector<32x128xbf16>
    %cst_379 = arith.constant dense<0.000000e+00> : vector<2x128xf32>
    %835 = tpu.matmul %833, %834, %cst_379 {dimension_numbers = #tpu.dot_dimension_numbers<[1], [0], [0], [1], [0, 0, 1, 1], [], []>} : vector<2x32xbf16>, vector<32x128xbf16>, vector<2x128xf32> -> vector<2x128xf32>
    %836 = arith.addf %835, %25 : vector<2x128xf32>
    %cst_380 = arith.constant dense<0xFF800000> : vector<2xf32>
    %837 = vector.multi_reduction <maximumf>, %836, %cst_380 [1] : vector<2x128xf32> to vector<2xf32>
    %838 = vector.shape_cast %837 : vector<2xf32> to vector<2x1xf32>
    %839 = vector.broadcast %838 : vector<2x1xf32> to vector<2x128xf32>
    %840 = arith.subf %836, %839 : vector<2x128xf32>
    %841 = math.exp %840 : vector<2x128xf32>
    %cst_381 = arith.constant dense<0.000000e+00> : vector<2xf32>
    %842 = vector.multi_reduction <add>, %841, %cst_381 [1] : vector<2x128xf32> to vector<2xf32>
    %843 = vector.shape_cast %842 : vector<2xf32> to vector<2x1xf32>
    %844 = math.log %843 : vector<2x1xf32>
    %845 = arith.addf %838, %844 : vector<2x1xf32>
    %846 = vector.broadcast %845 : vector<2x1xf32> to vector<2x128xf32>
    %847 = arith.subf %836, %846 : vector<2x128xf32>
    %848 = arith.index_cast %c4_i32 : i32 to index
    %c0_382 = arith.constant 0 : index
    %c0_383 = arith.constant 0 : index
    %849 = vector.load %arg24[%848, %c0_382, %c0_383] : memref<6x2x128xf32, #tpu.memory_space<vmem>>, vector<1x2x128xf32>
    %850 = vector.shape_cast %849 : vector<1x2x128xf32> to vector<2x128xf32>
    %851 = vector.shape_cast %847 : vector<2x128xf32> to vector<1x2x128xf32>
    tpu.vector_store %arg24[%848, %c0_382, %c0_383], %851 {strides = array<i32>} : memref<6x2x128xf32, #tpu.memory_space<vmem>>, vector<1x2x128xf32>,
    %852 = vector.broadcast %838 : vector<2x1xf32> to vector<2x128xf32>
    %853 = arith.cmpf oeq, %836, %852 : vector<2x128xf32>
    %cst_384 = arith.constant 1.280000e+02 : f32
    %854 = vector.broadcast %cst_384 : f32 to vector<2x128xf32>
    %855 = arith.select %853, %12, %854 : vector<2x128xi1>, vector<2x128xf32>
    %cst_385 = arith.constant dense<0x7F800000> : vector<2xf32>
    %856 = vector.multi_reduction <minimumf>, %855, %cst_385 [1] : vector<2x128xf32> to vector<2xf32>
    %857 = vector.shape_cast %856 : vector<2xf32> to vector<2x1xf32>
    %cst_386 = arith.constant 2.000000e+00 : f32
    %858 = vector.broadcast %cst_386 : f32 to vector<2x1xf32>
    %859 = arith.cmpf oeq, %857, %858 : vector<2x1xf32>
    %860 = arith.extui %859 : vector<2x1xi1> to vector<2x1xi32>
    %861 = arith.sitofp %860 : vector<2x1xi32> to vector<2x1xf32>
    %862 = arith.addf %695, %861 : vector<2x1xf32>
    %cst_387 = arith.constant 0.000000e+00 : f32
    %863 = vector.broadcast %cst_387 : f32 to vector<2x1xf32>
    %864 = arith.cmpf one, %862, %863 : vector<2x1xf32>
    %cst_388 = arith.constant 2.000000e+00 : f32
    %865 = vector.broadcast %cst_388 : f32 to vector<2x1xf32>
    %866 = arith.select %864, %865, %857 : vector<2x1xi1>, vector<2x1xf32>
    %c5_i32 = arith.constant 5 : i32
    %867 = vector.broadcast %866 : vector<2x1xf32> to vector<2x128xf32>
    %868 = arith.cmpf oeq, %12, %867 : vector<2x128xf32>
    %869 = arith.extui %868 : vector<2x128xi1> to vector<2x128xi32>
    %870 = arith.sitofp %869 : vector<2x128xi32> to vector<2x128xf32>
    %871 = arith.truncf %870 : vector<2x128xf32> to vector<2x128xbf16>
    %c0_389 = arith.constant 0 : index
    %c0_390 = arith.constant 0 : index
    %872 = vector.load %arg4[%c0_389, %c0_390] : memref<128x16xbf16, #tpu.memory_space<vmem>>, vector<128x16xbf16>
    %cst_391 = arith.constant dense<0.000000e+00> : vector<2x16xf32>
    %873 = tpu.matmul %871, %872, %cst_391 {dimension_numbers = #tpu.dot_dimension_numbers<[1], [0], [0], [1], [0, 0, 1, 1], [], []>} : vector<2x128xbf16>, vector<128x16xbf16>, vector<2x16xf32> -> vector<2x16xf32>
    %cst_392 = arith.constant 0.000000e+00 : f32
    %874 = vector.broadcast %cst_392 : f32 to vector<2x16xf32>
    %875 = arith.maximumf %873, %874 : vector<2x16xf32>
    %876 = arith.truncf %875 : vector<2x16xf32> to vector<2x16xbf16>
    %c0_393 = arith.constant 0 : index
    %c0_394 = arith.constant 0 : index
    %877 = vector.load %arg6[%c0_393, %c0_394] : memref<16x128xbf16, #tpu.memory_space<vmem>>, vector<16x128xbf16>
    %cst_395 = arith.constant dense<0.000000e+00> : vector<2x128xf32>
    %878 = tpu.matmul %876, %877, %cst_395 {dimension_numbers = #tpu.dot_dimension_numbers<[1], [0], [0], [1], [0, 0, 1, 1], [], []>} : vector<2x16xbf16>, vector<16x128xbf16>, vector<2x128xf32> -> vector<2x128xf32>
    %879 = arith.addf %13, %878 : vector<2x128xf32>
    %880 = arith.truncf %731 : vector<2x32xf32> to vector<2x32xbf16>
    %c0_396 = arith.constant 0 : index
    %c0_397 = arith.constant 0 : index
    %881 = vector.load %arg7[%c0_396, %c0_397] : memref<32x128xbf16, #tpu.memory_space<vmem>>, vector<32x128xbf16>
    %cst_398 = arith.constant dense<0.000000e+00> : vector<2x128xf32>
    %882 = tpu.matmul %880, %881, %cst_398 {dimension_numbers = #tpu.dot_dimension_numbers<[1], [0], [0], [1], [0, 0, 1, 1], [], []>} : vector<2x32xbf16>, vector<32x128xbf16>, vector<2x128xf32> -> vector<2x128xf32>
    %883 = arith.addf %879, %882 : vector<2x128xf32>
    %884 = arith.negf %883 : vector<2x128xf32>
    %885 = math.exp %884 : vector<2x128xf32>
    %cst_399 = arith.constant 1.000000e+00 : f32
    %886 = vector.broadcast %cst_399 : f32 to vector<2x128xf32>
    %887 = arith.addf %886, %885 : vector<2x128xf32>
    %888 = arith.divf %886, %887 : vector<2x128xf32>
    %889 = vector.extract_strided_slice %888 {offsets = [0, 0], sizes = [2, 32], strides = [1, 1]} : vector<2x128xf32> to vector<2x32xf32>
    %890 = vector.extract_strided_slice %888 {offsets = [0, 32], sizes = [2, 32], strides = [1, 1]} : vector<2x128xf32> to vector<2x32xf32>
    %891 = vector.extract_strided_slice %888 {offsets = [0, 96], sizes = [2, 32], strides = [1, 1]} : vector<2x128xf32> to vector<2x32xf32>
    %892 = vector.extract_strided_slice %883 {offsets = [0, 64], sizes = [2, 32], strides = [1, 1]} : vector<2x128xf32> to vector<2x32xf32>
    %893 = math.tanh %892 : vector<2x32xf32>
    %894 = arith.mulf %890, %729 : vector<2x32xf32>
    %895 = arith.mulf %889, %893 : vector<2x32xf32>
    %896 = arith.addf %894, %895 : vector<2x32xf32>
    %897 = math.tanh %896 : vector<2x32xf32>
    %898 = arith.mulf %891, %897 : vector<2x32xf32>
    %899 = arith.truncf %898 : vector<2x32xf32> to vector<2x32xbf16>
    %c0_400 = arith.constant 0 : index
    %c0_401 = arith.constant 0 : index
    %900 = vector.load %arg8[%c0_400, %c0_401] : memref<32x32xbf16, #tpu.memory_space<vmem>>, vector<32x32xbf16>
    %cst_402 = arith.constant dense<0.000000e+00> : vector<2x32xf32>
    %901 = tpu.matmul %899, %900, %cst_402 {dimension_numbers = #tpu.dot_dimension_numbers<[1], [0], [0], [1], [0, 0, 1, 1], [], []>} : vector<2x32xbf16>, vector<32x32xbf16>, vector<2x32xf32> -> vector<2x32xf32>
    %902 = arith.addf %901, %19 : vector<2x32xf32>
    %903 = vector.shape_cast %902 : vector<2x32xf32> to vector<2x1x32xf32>
    %c0_403 = arith.constant 0 : index
    %c0_404 = arith.constant 0 : index
    %c0_405 = arith.constant 0 : index
    %904 = vector.load %arg11[%c0_403, %c0_404, %c0_405] : memref<2x8x32xf32, #tpu.memory_space<vmem>>, vector<2x8x32xf32>
    %905 = vector.broadcast %903 : vector<2x1x32xf32> to vector<2x8x32xf32>
    %906 = arith.addf %905, %904 : vector<2x8x32xf32>
    %907 = math.tanh %906 : vector<2x8x32xf32>
    %c0_406 = arith.constant 0 : index
    %c0_407 = arith.constant 0 : index
    %908 = vector.load %arg10[%c0_406, %c0_407] : memref<1x32xf32, #tpu.memory_space<vmem>>, vector<1x32xf32>
    %909 = vector.shape_cast %908 : vector<1x32xf32> to vector<1x1x32xf32>
    %910 = vector.broadcast %909 : vector<1x1x32xf32> to vector<2x8x32xf32>
    %911 = arith.mulf %907, %910 : vector<2x8x32xf32>
    %cst_408 = arith.constant dense<0.000000e+00> : vector<2x8xf32>
    %912 = vector.multi_reduction <add>, %911, %cst_408 [2] : vector<2x8x32xf32> to vector<2x8xf32>
    %cst_409 = arith.constant 0.000000e+00 : f32
    %913 = vector.broadcast %cst_409 : f32 to vector<2x8xf32>
    %914 = arith.cmpf ogt, %0, %913 : vector<2x8xf32>
    %cst_410 = arith.constant -1.000000e+09 : f32
    %915 = vector.broadcast %cst_410 : f32 to vector<2x8xf32>
    %916 = arith.select %914, %912, %915 : vector<2x8xi1>, vector<2x8xf32>
    %cst_411 = arith.constant dense<0xFF800000> : vector<2xf32>
    %917 = vector.multi_reduction <maximumf>, %916, %cst_411 [1] : vector<2x8xf32> to vector<2xf32>
    %918 = vector.shape_cast %917 : vector<2xf32> to vector<2x1xf32>
    %919 = vector.broadcast %918 : vector<2x1xf32> to vector<2x8xf32>
    %920 = arith.subf %916, %919 : vector<2x8xf32>
    %921 = math.exp %920 : vector<2x8xf32>
    %cst_412 = arith.constant dense<0.000000e+00> : vector<2xf32>
    %922 = vector.multi_reduction <add>, %921, %cst_412 [1] : vector<2x8xf32> to vector<2xf32>
    %923 = vector.shape_cast %922 : vector<2xf32> to vector<2x1xf32>
    %924 = tpu.reciprocal %923 {approx = true} : vector<2x1xf32> -> vector<2x1xf32>
    %925 = vector.broadcast %924 : vector<2x1xf32> to vector<2x8xf32>
    %926 = arith.mulf %921, %925 : vector<2x8xf32>
    %927 = vector.shape_cast %926 : vector<2x8xf32> to vector<2x8x1xf32>
    %c0_413 = arith.constant 0 : index
    %c0_414 = arith.constant 0 : index
    %c0_415 = arith.constant 0 : index
    %928 = vector.load %arg0[%c0_413, %c0_414, %c0_415] : memref<2x8x32xf32, #tpu.memory_space<vmem>>, vector<2x8x32xf32>
    %929 = vector.broadcast %927 : vector<2x8x1xf32> to vector<2x8x32xf32>
    %930 = arith.mulf %929, %928 : vector<2x8x32xf32>
    %cst_416 = arith.constant dense<0.000000e+00> : vector<2x32xf32>
    %931 = vector.multi_reduction <add>, %930, %cst_416 [1] : vector<2x8x32xf32> to vector<2x32xf32>
    %932 = arith.truncf %898 : vector<2x32xf32> to vector<2x32xbf16>
    %c0_417 = arith.constant 0 : index
    %c0_418 = arith.constant 0 : index
    %933 = vector.load %arg12[%c0_417, %c0_418] : memref<32x32xbf16, #tpu.memory_space<vmem>>, vector<32x32xbf16>
    %cst_419 = arith.constant dense<0.000000e+00> : vector<2x32xf32>
    %934 = tpu.matmul %932, %933, %cst_419 {dimension_numbers = #tpu.dot_dimension_numbers<[1], [0], [0], [1], [0, 0, 1, 1], [], []>} : vector<2x32xbf16>, vector<32x32xbf16>, vector<2x32xf32> -> vector<2x32xf32>
    %935 = arith.truncf %931 : vector<2x32xf32> to vector<2x32xbf16>
    %c0_420 = arith.constant 0 : index
    %c0_421 = arith.constant 0 : index
    %936 = vector.load %arg13[%c0_420, %c0_421] : memref<32x32xbf16, #tpu.memory_space<vmem>>, vector<32x32xbf16>
    %cst_422 = arith.constant dense<0.000000e+00> : vector<2x32xf32>
    %937 = tpu.matmul %935, %936, %cst_422 {dimension_numbers = #tpu.dot_dimension_numbers<[1], [0], [0], [1], [0, 0, 1, 1], [], []>} : vector<2x32xbf16>, vector<32x32xbf16>, vector<2x32xf32> -> vector<2x32xf32>
    %938 = arith.addf %934, %937 : vector<2x32xf32>
    %939 = arith.addf %938, %22 : vector<2x32xf32>
    %940 = vector.shape_cast %939 : vector<2x32xf32> to vector<2x1x32xf32>
    %c0_423 = arith.constant 0 : index
    %c0_424 = arith.constant 0 : index
    %c0_425 = arith.constant 0 : index
    %941 = vector.load %arg16[%c0_423, %c0_424, %c0_425] : memref<2x8x32xf32, #tpu.memory_space<vmem>>, vector<2x8x32xf32>
    %942 = vector.broadcast %940 : vector<2x1x32xf32> to vector<2x8x32xf32>
    %943 = arith.addf %942, %941 : vector<2x8x32xf32>
    %944 = math.tanh %943 : vector<2x8x32xf32>
    %c0_426 = arith.constant 0 : index
    %c0_427 = arith.constant 0 : index
    %945 = vector.load %arg15[%c0_426, %c0_427] : memref<1x32xf32, #tpu.memory_space<vmem>>, vector<1x32xf32>
    %946 = vector.shape_cast %945 : vector<1x32xf32> to vector<1x1x32xf32>
    %947 = vector.broadcast %946 : vector<1x1x32xf32> to vector<2x8x32xf32>
    %948 = arith.mulf %944, %947 : vector<2x8x32xf32>
    %cst_428 = arith.constant dense<0.000000e+00> : vector<2x8xf32>
    %949 = vector.multi_reduction <add>, %948, %cst_428 [2] : vector<2x8x32xf32> to vector<2x8xf32>
    %cst_429 = arith.constant 0.000000e+00 : f32
    %950 = vector.broadcast %cst_429 : f32 to vector<2x8xf32>
    %951 = arith.cmpf ogt, %10, %950 : vector<2x8xf32>
    %cst_430 = arith.constant -1.000000e+09 : f32
    %952 = vector.broadcast %cst_430 : f32 to vector<2x8xf32>
    %953 = arith.select %951, %949, %952 : vector<2x8xi1>, vector<2x8xf32>
    %cst_431 = arith.constant dense<0xFF800000> : vector<2xf32>
    %954 = vector.multi_reduction <maximumf>, %953, %cst_431 [1] : vector<2x8xf32> to vector<2xf32>
    %955 = vector.shape_cast %954 : vector<2xf32> to vector<2x1xf32>
    %956 = vector.broadcast %955 : vector<2x1xf32> to vector<2x8xf32>
    %957 = arith.subf %953, %956 : vector<2x8xf32>
    %958 = math.exp %957 : vector<2x8xf32>
    %cst_432 = arith.constant dense<0.000000e+00> : vector<2xf32>
    %959 = vector.multi_reduction <add>, %958, %cst_432 [1] : vector<2x8xf32> to vector<2xf32>
    %960 = vector.shape_cast %959 : vector<2xf32> to vector<2x1xf32>
    %961 = tpu.reciprocal %960 {approx = true} : vector<2x1xf32> -> vector<2x1xf32>
    %962 = vector.broadcast %961 : vector<2x1xf32> to vector<2x8xf32>
    %963 = arith.mulf %958, %962 : vector<2x8xf32>
    %964 = vector.shape_cast %963 : vector<2x8xf32> to vector<2x8x1xf32>
    %c0_433 = arith.constant 0 : index
    %c0_434 = arith.constant 0 : index
    %c0_435 = arith.constant 0 : index
    %965 = vector.load %arg0[%c0_433, %c0_434, %c0_435] : memref<2x8x32xf32, #tpu.memory_space<vmem>>, vector<2x8x32xf32>
    %966 = vector.broadcast %964 : vector<2x8x1xf32> to vector<2x8x32xf32>
    %967 = arith.mulf %966, %965 : vector<2x8x32xf32>
    %cst_436 = arith.constant dense<0.000000e+00> : vector<2x32xf32>
    %968 = vector.multi_reduction <add>, %967, %cst_436 [1] : vector<2x8x32xf32> to vector<2x32xf32>
    %969 = arith.truncf %931 : vector<2x32xf32> to vector<2x32xbf16>
    %c0_437 = arith.constant 0 : index
    %c0_438 = arith.constant 0 : index
    %970 = vector.load %arg17[%c0_437, %c0_438] : memref<32x128xbf16, #tpu.memory_space<vmem>>, vector<32x128xbf16>
    %cst_439 = arith.constant dense<0.000000e+00> : vector<2x128xf32>
    %971 = tpu.matmul %969, %970, %cst_439 {dimension_numbers = #tpu.dot_dimension_numbers<[1], [0], [0], [1], [0, 0, 1, 1], [], []>} : vector<2x32xbf16>, vector<32x128xbf16>, vector<2x128xf32> -> vector<2x128xf32>
    %972 = arith.truncf %968 : vector<2x32xf32> to vector<2x32xbf16>
    %c0_440 = arith.constant 0 : index
    %c0_441 = arith.constant 0 : index
    %973 = vector.load %arg18[%c0_440, %c0_441] : memref<32x128xbf16, #tpu.memory_space<vmem>>, vector<32x128xbf16>
    %cst_442 = arith.constant dense<0.000000e+00> : vector<2x128xf32>
    %974 = tpu.matmul %972, %973, %cst_442 {dimension_numbers = #tpu.dot_dimension_numbers<[1], [0], [0], [1], [0, 0, 1, 1], [], []>} : vector<2x32xbf16>, vector<32x128xbf16>, vector<2x128xf32> -> vector<2x128xf32>
    %975 = arith.addf %971, %974 : vector<2x128xf32>
    %976 = arith.truncf %898 : vector<2x32xf32> to vector<2x32xbf16>
    %c0_443 = arith.constant 0 : index
    %c0_444 = arith.constant 0 : index
    %977 = vector.load %arg19[%c0_443, %c0_444] : memref<32x128xbf16, #tpu.memory_space<vmem>>, vector<32x128xbf16>
    %cst_445 = arith.constant dense<0.000000e+00> : vector<2x128xf32>
    %978 = tpu.matmul %976, %977, %cst_445 {dimension_numbers = #tpu.dot_dimension_numbers<[1], [0], [0], [1], [0, 0, 1, 1], [], []>} : vector<2x32xbf16>, vector<32x128xbf16>, vector<2x128xf32> -> vector<2x128xf32>
    %979 = arith.addf %975, %978 : vector<2x128xf32>
    %980 = arith.truncf %832 : vector<2x32xf32> to vector<2x32xbf16>
    %c0_446 = arith.constant 0 : index
    %c0_447 = arith.constant 0 : index
    %981 = vector.load %arg20[%c0_446, %c0_447] : memref<32x128xbf16, #tpu.memory_space<vmem>>, vector<32x128xbf16>
    %cst_448 = arith.constant dense<0.000000e+00> : vector<2x128xf32>
    %982 = tpu.matmul %980, %981, %cst_448 {dimension_numbers = #tpu.dot_dimension_numbers<[1], [0], [0], [1], [0, 0, 1, 1], [], []>} : vector<2x32xbf16>, vector<32x128xbf16>, vector<2x128xf32> -> vector<2x128xf32>
    %983 = arith.addf %979, %982 : vector<2x128xf32>
    %984 = arith.addf %983, %16 : vector<2x128xf32>
    %985 = arith.negf %984 : vector<2x128xf32>
    %986 = math.exp %985 : vector<2x128xf32>
    %cst_449 = arith.constant 1.000000e+00 : f32
    %987 = vector.broadcast %cst_449 : f32 to vector<2x128xf32>
    %988 = arith.addf %987, %986 : vector<2x128xf32>
    %989 = arith.divf %987, %988 : vector<2x128xf32>
    %990 = vector.extract_strided_slice %989 {offsets = [0, 0], sizes = [2, 32], strides = [1, 1]} : vector<2x128xf32> to vector<2x32xf32>
    %991 = vector.extract_strided_slice %989 {offsets = [0, 32], sizes = [2, 32], strides = [1, 1]} : vector<2x128xf32> to vector<2x32xf32>
    %992 = vector.extract_strided_slice %989 {offsets = [0, 96], sizes = [2, 32], strides = [1, 1]} : vector<2x128xf32> to vector<2x32xf32>
    %993 = vector.extract_strided_slice %984 {offsets = [0, 64], sizes = [2, 32], strides = [1, 1]} : vector<2x128xf32> to vector<2x32xf32>
    %994 = math.tanh %993 : vector<2x32xf32>
    %995 = arith.mulf %991, %830 : vector<2x32xf32>
    %996 = arith.mulf %990, %994 : vector<2x32xf32>
    %997 = arith.addf %995, %996 : vector<2x32xf32>
    %998 = math.tanh %997 : vector<2x32xf32>
    %999 = arith.mulf %992, %998 : vector<2x32xf32>
    %1000 = arith.truncf %999 : vector<2x32xf32> to vector<2x32xbf16>
    %c0_450 = arith.constant 0 : index
    %c0_451 = arith.constant 0 : index
    %1001 = vector.load %arg22[%c0_450, %c0_451] : memref<32x128xbf16, #tpu.memory_space<vmem>>, vector<32x128xbf16>
    %cst_452 = arith.constant dense<0.000000e+00> : vector<2x128xf32>
    %1002 = tpu.matmul %1000, %1001, %cst_452 {dimension_numbers = #tpu.dot_dimension_numbers<[1], [0], [0], [1], [0, 0, 1, 1], [], []>} : vector<2x32xbf16>, vector<32x128xbf16>, vector<2x128xf32> -> vector<2x128xf32>
    %1003 = arith.addf %1002, %25 : vector<2x128xf32>
    %cst_453 = arith.constant dense<0xFF800000> : vector<2xf32>
    %1004 = vector.multi_reduction <maximumf>, %1003, %cst_453 [1] : vector<2x128xf32> to vector<2xf32>
    %1005 = vector.shape_cast %1004 : vector<2xf32> to vector<2x1xf32>
    %1006 = vector.broadcast %1005 : vector<2x1xf32> to vector<2x128xf32>
    %1007 = arith.subf %1003, %1006 : vector<2x128xf32>
    %1008 = math.exp %1007 : vector<2x128xf32>
    %cst_454 = arith.constant dense<0.000000e+00> : vector<2xf32>
    %1009 = vector.multi_reduction <add>, %1008, %cst_454 [1] : vector<2x128xf32> to vector<2xf32>
    %1010 = vector.shape_cast %1009 : vector<2xf32> to vector<2x1xf32>
    %1011 = math.log %1010 : vector<2x1xf32>
    %1012 = arith.addf %1005, %1011 : vector<2x1xf32>
    %1013 = vector.broadcast %1012 : vector<2x1xf32> to vector<2x128xf32>
    %1014 = arith.subf %1003, %1013 : vector<2x128xf32>
    %1015 = arith.index_cast %c5_i32 : i32 to index
    %c0_455 = arith.constant 0 : index
    %c0_456 = arith.constant 0 : index
    %1016 = vector.load %arg24[%1015, %c0_455, %c0_456] : memref<6x2x128xf32, #tpu.memory_space<vmem>>, vector<1x2x128xf32>
    %1017 = vector.shape_cast %1016 : vector<1x2x128xf32> to vector<2x128xf32>
    %1018 = vector.shape_cast %1014 : vector<2x128xf32> to vector<1x2x128xf32>
    tpu.vector_store %arg24[%1015, %c0_455, %c0_456], %1018 {strides = array<i32>} : memref<6x2x128xf32, #tpu.memory_space<vmem>>, vector<1x2x128xf32>,
    %1019 = vector.broadcast %1005 : vector<2x1xf32> to vector<2x128xf32>
    %1020 = arith.cmpf oeq, %1003, %1019 : vector<2x128xf32>
    %cst_457 = arith.constant 1.280000e+02 : f32
    %1021 = vector.broadcast %cst_457 : f32 to vector<2x128xf32>
    %1022 = arith.select %1020, %12, %1021 : vector<2x128xi1>, vector<2x128xf32>
    %cst_458 = arith.constant dense<0x7F800000> : vector<2xf32>
    %1023 = vector.multi_reduction <minimumf>, %1022, %cst_458 [1] : vector<2x128xf32> to vector<2xf32>
    %1024 = vector.shape_cast %1023 : vector<2xf32> to vector<2x1xf32>
    %cst_459 = arith.constant 2.000000e+00 : f32
    %1025 = vector.broadcast %cst_459 : f32 to vector<2x1xf32>
    %1026 = arith.cmpf oeq, %1024, %1025 : vector<2x1xf32>
    %1027 = arith.extui %1026 : vector<2x1xi1> to vector<2x1xi32>
    %1028 = arith.sitofp %1027 : vector<2x1xi32> to vector<2x1xf32>
    %1029 = arith.addf %862, %1028 : vector<2x1xf32>
    %cst_460 = arith.constant 0.000000e+00 : f32
    %1030 = vector.broadcast %cst_460 : f32 to vector<2x1xf32>
    %1031 = arith.cmpf one, %1029, %1030 : vector<2x1xf32>
    %cst_461 = arith.constant 2.000000e+00 : f32
    %1032 = vector.broadcast %cst_461 : f32 to vector<2x1xf32>
    %1033 = arith.select %1031, %1032, %1024 : vector<2x1xi1>, vector<2x1xf32>
    %c6_i32 = arith.constant 6 : i32
    return
  }
}

</mosaic_0001>

<bundles_post_ra>
// kernel: tpu_custom_call.1
= control target key start
LH: loop header
LB: loop body
LE: loop exit
PB: predicated region body
PF: predicated region fallthrough
CT: control target
= control target key end

     0   :  { %s9977_s0 = inlined_call_operand.vmem [shape: f32[2,8,32], index: 0, kind: input, shape index: {}]   ;;  %s9978_s1 = inlined_call_operand.hbm [shape: f32[2,8], index: 1, kind: input, shape index: {}]   ;;  %s9979_s2 = inlined_call_operand.hbm [shape: f32[2,32], index: 2, kind: input, shape index: {}]   ;;  %s9980_s3 = inlined_call_operand.hbm [shape: f32[2,32], index: 3, kind: input, shape index: {}]   ;;  %s9981_s4 = inlined_call_operand.vmem [shape: bf16[128,16], index: 4, kind: input, shape index: {}]   ;;  %s9982_s5 = inlined_call_operand.hbm [shape: f32[2,128], index: 5, kind: input, shape index: {}]   ;;  %s9983_s6 = inlined_call_operand.hbm [shape: bf16[16,128], index: 6, kind: input, shape index: {}]   ;;  %s9984_s7 = inlined_call_operand.vmem [shape: bf16[32,128], index: 7, kind: input, shape index: {}]   ;;  %s9985_s8 = inlined_call_operand.vmem [shape: bf16[32,32], index: 8, kind: input, shape index: {}]   ;;  %s9986_s9 = inlined_call_operand.hbm [shape: f32[1,32], index: 9, kind: input, shape index: {}]   ;;  %s9987_s10 = inlined_call_operand.hbm [shape: f32[1,32], index: 10, kind: input, shape index: {}]   ;;  %s9988_s11 = inlined_call_operand.vmem [shape: f32[2,8,32], index: 11, kind: input, shape index: {}]   ;;  %s9989_s12 = inlined_call_operand.vmem [shape: bf16[32,32], index: 12, kind: input, shape index: {}]   ;;  %s9990_s13 = inlined_call_operand.vmem [shape: bf16[32,32], index: 13, kind: input, shape index: {}]   ;;  %s9991_s14 = inlined_call_operand.hbm [shape: f32[1,32], index: 14, kind: input, shape index: {}]   ;;  %s9992_s15 = inlined_call_operand.hbm [shape: f32[1,32], index: 15, kind: input, shape index: {}]   ;;  %s9993_s16 = inlined_call_operand.vmem [shape: f32[2,8,32], index: 16, kind: input, shape index: {}]   ;;  %s9994_s17 = inlined_call_operand.vmem [shape: bf16[32,128], index: 17, kind: input, shape index: {}]   ;;  %s9995_s18 = inlined_call_operand.hbm [shape: bf16[32,128], index: 18, kind: input, shape index: {}]   ;;  %s9996_s19 = inlined_call_operand.hbm [shape: bf16[32,128], index: 19, kind: input, shape index: {}]   ;;  %s9997_s20 = inlined_call_operand.vmem [shape: bf16[32,128], index: 20, kind: input, shape index: {}]   ;;  %s9998_s21 = inlined_call_operand.vmem [shape: f32[1,128], index: 21, kind: input, shape index: {}]   ;;  %s9999_s22 = inlined_call_operand.hbm [shape: bf16[32,128], index: 22, kind: input, shape index: {}]   ;;  %s10000_s23 = inlined_call_operand.vmem [shape: f32[1,128], index: 23, kind: input, shape index: {}]   ;;  %s10001_s24 = inlined_call_operand.hbm [shape: f32[6,2,128], index: 24, kind: output, shape index: {}]  }
   0x1   :  { %10011 = sst [smem:[#allocation31_spill]] %s9977_s0 }
   0x2   :  { %10012 = sst [smem:[#allocation32_spill]] %s9978_s1 }
   0x3   :  { %10013 = sst [smem:[#allocation33_spill]] %s9979_s2 }
   0x4   :  { %10014 = sst [smem:[#allocation34_spill]] %s9980_s3 }
   0x5   :  { %10015 = sst [smem:[#allocation35_spill]] %s9981_s4 }
   0x6   :  { %10016 = sst [smem:[#allocation36_spill]] %s9982_s5 }
   0x7   :  { %10017 = sst [smem:[#allocation37_spill]] %s9983_s6 }
   0x8   :  { %10018 = sst [smem:[#allocation38_spill]] %s9984_s7 }
   0x9   :  { %10019 = sst [smem:[#allocation39_spill]] %s9985_s8 }
   0xa   :  { %29 = vsyncpa [#allocation3], 0 }
   0xb   :  { %30 = vsyncpa [#allocation6], 0 }
   0xc   :  { %31 = vsyncpa [#allocation9], 0 }
   0xd   :  { %32 = vsyncpa [#allocation12], 0 }
   0xe   :  { %33 = vsyncpa [#allocation15], 0 }
   0xf   :  { %34 = vsyncpa [#allocation18], 0 }
  0x10   :  { %35 = vsyncpa [#allocation21], 0 }
  0x11   :  { %36 = vsyncpa [#allocation4], 0  ;;  %s8119_s5 = smov [#allocation5]   ;;  %s8120_s27 = smov [#allocation8]  }
  0x12   :  { %s55_s26 = sshll.u32 %s8119_s5, 4  ;;  %s77_s28 = sshll.u32 %s8120_s27, 4  ;;  %s56_s26 = int_to_ptr.vmem [resolvable:$true] %s55_s26  ;;  %s78_s28 = int_to_ptr.vmem [resolvable:$true] %s77_s28 }
  0x13   :  { %s10020_s29 = sld [smem:[#allocation33_spill]] }
  0x19   :  { %s7817_s0 = scalar_lea.hbm %s10020_s29, 32 }
  0x1a   :  { %p7818_p0 = scmp.ne.s32.totalorder %s10020_s29, %s7817_s0  ;;  %p7821_p1 = scmp.lt.u32.totalorder %s7817_s0, %s10020_s29 }
  0x1c   :  { %p7823_p2 = pnand %p7821_p1, %p7818_p0 }
  0x1e   :  { %7826 = shalt.err (!%p7823_p2)
}
  0x1f   :  { %s7827_s8 = scalar_lea.vmem %s56_s26, 32  ;;  %p7832_p4 = scmp.lt.s32.totalorder %s56_s26, %s56_s26 }
  0x20   :  { %p7828_p3 = scmp.ne.s32.totalorder %s56_s26, %s7827_s8  ;;  %p7833_p5 = scmp.lt.s32.totalorder %s7827_s8, %s7827_s8 }
  0x22   :  { %p7834_p6 = por %p7833_p5, %p7832_p4 }
  0x24   :  { %p7835_p7 = pnand %p7834_p6, %p7828_p3 }
  0x26   :  { %7838 = shalt.err (!%p7835_p7)
}
  0x27   :  { %58 = dma.hbm_to_vmem [thread:$0]  %s10020_s29, 32, %s56_s26, [#allocation6]  }
  0x28   :  { %s10021_s6 = sld [smem:[#allocation36_spill]] }
  0x2e   :  { %s7839_s2 = scalar_lea.hbm %s10021_s6, 32 }
  0x2f   :  { %p7840_p8 = scmp.ne.s32.totalorder %s10021_s6, %s7839_s2  ;;  %p7843_p9 = scmp.lt.u32.totalorder %s7839_s2, %s10021_s6 }
  0x31   :  { %p7845_p10 = pnand %p7843_p9, %p7840_p8 }
  0x33   :  { %7848 = shalt.err (!%p7845_p10)
}
  0x34   :  { %s7849_s25 = scalar_lea.vmem %s78_s28, 32  ;;  %p7854_p12 = scmp.lt.s32.totalorder %s78_s28, %s78_s28 }
  0x35   :  { %p7850_p11 = scmp.ne.s32.totalorder %s78_s28, %s7849_s25  ;;  %p7855_p13 = scmp.lt.s32.totalorder %s7849_s25, %s7849_s25 }
  0x37   :  { %p7856_p0 = por %p7855_p13, %p7854_p12 }
  0x39   :  { %p7857_p1 = pnand %p7856_p0, %p7850_p11 }
  0x3b   :  { %7860 = shalt.err (!%p7857_p1)
}
  0x3c   :  { %80 = dma.hbm_to_vmem [thread:$0]  %s10021_s6, 32, %s78_s28, [#allocation9]  }
  0x3d   :  { %s8121_s8 = smov [#allocation11]   ;;  %s8122_s1 = smov [#allocation14]  }
  0x3e   :  { %s103_s4 = sshll.u32 %s8121_s8, 4  ;;  %s129_s5 = sshll.u32 %s8122_s1, 4  ;;  %s104_s4 = int_to_ptr.vmem [resolvable:$true] %s103_s4  ;;  %s130_s5 = int_to_ptr.vmem [resolvable:$true] %s129_s5 }
  0x3f   :  { %s7861_s7 = scalar_lea.hbm %s9986_s9, 16 }
  0x40   :  { %p7862_p2 = scmp.ne.s32.totalorder %s9986_s9, %s7861_s7  ;;  %p7865_p3 = scmp.lt.u32.totalorder %s7861_s7, %s9986_s9 }
  0x42   :  { %p7867_p4 = pnand %p7865_p3, %p7862_p2 }
  0x44   :  { %7870 = shalt.err (!%p7867_p4)
}
  0x45   :  { %s7871_s28 = scalar_lea.vmem %s104_s4, 16  ;;  %s7875_s6 = scalar_lea.vmem %s104_s4, 32 }
  0x46   :  { %p7872_p5 = scmp.ne.s32.totalorder %s104_s4, %s7871_s28  ;;  %p7876_p6 = scmp.lt.s32.totalorder %s104_s4, %s104_s4 }
  0x47   :  { %p7877_p7 = scmp.lt.s32.totalorder %s7875_s6, %s7871_s28 }
  0x49   :  { %p7878_p8 = por %p7877_p7, %p7876_p6 }
  0x4b   :  { %p7879_p9 = pnand %p7878_p8, %p7872_p5 }
  0x4d   :  { %7882 = shalt.err (!%p7879_p9)
}
  0x4e   :  { %106 = dma.hbm_to_vmem [thread:$0]  %s9986_s9, 16, %s104_s4, [#allocation12]  }
  0x4f   :  { %s7883_s27 = scalar_lea.hbm %s9991_s14, 16 }
  0x50   :  { %p7884_p10 = scmp.ne.s32.totalorder %s9991_s14, %s7883_s27  ;;  %p7887_p11 = scmp.lt.u32.totalorder %s7883_s27, %s9991_s14 }
  0x52   :  { %p7889_p12 = pnand %p7887_p11, %p7884_p10 }
  0x54   :  { %7892 = shalt.err (!%p7889_p12)
}
  0x55   :  { %s7893_s3 = scalar_lea.vmem %s130_s5, 16  ;;  %s7897_s25 = scalar_lea.vmem %s130_s5, 32 }
  0x56   :  { %p7894_p13 = scmp.ne.s32.totalorder %s130_s5, %s7893_s3  ;;  %p7898_p0 = scmp.lt.s32.totalorder %s130_s5, %s130_s5 }
  0x57   :  { %p7899_p1 = scmp.lt.s32.totalorder %s7897_s25, %s7893_s3 }
  0x59   :  { %p7900_p2 = por %p7899_p1, %p7898_p0 }
  0x5b   :  { %p7901_p3 = pnand %p7900_p2, %p7894_p13 }
  0x5d   :  { %7904 = shalt.err (!%p7901_p3)
}
  0x5e   :  { %132 = dma.hbm_to_vmem [thread:$0]  %s9991_s14, 16, %s130_s5, [#allocation15]  }
  0x5f   :  { %s8123_s28 = smov [#allocation17]   ;;  %s8124_s26 = smov [#allocation2]  }
  0x60   :  { %s152_s6 = sshll.u32 %s8123_s28, 4  ;;  %s45_s29 = sshll.u32 %s8124_s26, 4  ;;  %s153_s6 = int_to_ptr.vmem [resolvable:$true] %s152_s6  ;;  %s46_s29 = int_to_ptr.vmem [resolvable:$true] %s45_s29 }
  0x61   :  { %s7905_s27 = scalar_lea.hbm %s9995_s18, 256 }
  0x62   :  { %p7906_p4 = scmp.ne.s32.totalorder %s9995_s18, %s7905_s27  ;;  %p7909_p5 = scmp.lt.u32.totalorder %s7905_s27, %s9995_s18 }
  0x64   :  { %p7911_p6 = pnand %p7909_p5, %p7906_p4 }
  0x66   :  { %7914 = shalt.err (!%p7911_p6)
}
  0x67   :  { %s7915_s14 = scalar_lea.vmem %s153_s6, 256  ;;  %p7920_p8 = scmp.lt.s32.totalorder %s153_s6, %s153_s6 }
  0x68   :  { %p7916_p7 = scmp.ne.s32.totalorder %s153_s6, %s7915_s14  ;;  %p7921_p9 = scmp.lt.s32.totalorder %s7915_s14, %s7915_s14 }
  0x6a   :  { %p7922_p10 = por %p7921_p9, %p7920_p8 }
  0x6c   :  { %p7923_p11 = pnand %p7922_p10, %p7916_p7 }
  0x6e   :  { %7926 = shalt.err (!%p7923_p11)
}
  0x6f   :  { %s8125_s5 = smov 64   ;;  %s8126_s3 = smov 4  }
  0x70   :  { %158 = dma.hbm_to_vmem [thread:$0]  %s9995_s18, 256, %s153_s6, [#allocation18], %s8125_s5, %s8125_s5, %s8126_s3  }
  0x71   :  { %s10022_s26 = sld [smem:[#allocation32_spill]] }
  0x77   :  { %s7927_s8 = scalar_lea.hbm %s10022_s26, 32 }
  0x78   :  { %p7928_p12 = scmp.ne.s32.totalorder %s10022_s26, %s7927_s8  ;;  %p7931_p13 = scmp.lt.u32.totalorder %s7927_s8, %s10022_s26 }
  0x7a   :  { %p7933_p0 = pnand %p7931_p13, %p7928_p12 }
  0x7c   :  { %7936 = shalt.err (!%p7933_p0)
}
  0x7d   :  { %s7937_s30 = scalar_lea.vmem %s46_s29, 32  ;;  %p7942_p2 = scmp.lt.s32.totalorder %s46_s29, %s46_s29 }
  0x7e   :  { %p7938_p1 = scmp.ne.s32.totalorder %s46_s29, %s7937_s30  ;;  %p7943_p3 = scmp.lt.s32.totalorder %s7937_s30, %s7937_s30 }
  0x80   :  { %p7944_p4 = por %p7943_p3, %p7942_p2 }
  0x82   :  { %p7945_p5 = pnand %p7944_p4, %p7938_p1 }
  0x84   :  { %7948 = shalt.err (!%p7945_p5)
}
  0x85   :  { %48 = dma.hbm_to_vmem [thread:$0]  %s10022_s26, 32, %s46_s29, [#allocation3]  }
  0x86   :  { %s8127_s0 = smov [#allocation7]   ;;  %s8128_s25 = smov [#allocation10]  }
  0x87   :  { %s65_s14 = sshll.u32 %s8127_s0, 4  ;;  %s86_s9 = sshll.u32 %s8128_s25, 4  ;;  %s66_s14 = int_to_ptr.vmem [resolvable:$true] %s65_s14  ;;  %s8340_s9 = int_to_ptr.vmem [resolvable:$true] %s86_s9 }
  0x88   :  { %s10023_s8 = sld [smem:[#allocation34_spill]] }
  0x8e   :  { %s7949_s1 = scalar_lea.hbm %s10023_s8, 32 }
  0x8f   :  { %p7950_p6 = scmp.ne.s32.totalorder %s10023_s8, %s7949_s1  ;;  %p7953_p7 = scmp.lt.u32.totalorder %s7949_s1, %s10023_s8 }
  0x91   :  { %p7955_p8 = pnand %p7953_p7, %p7950_p6 }
  0x93   :  { %7958 = shalt.err (!%p7955_p8)
}
  0x94   :  { %s7959_s29 = scalar_lea.vmem %s66_s14, 32  ;;  %p7964_p10 = scmp.lt.s32.totalorder %s66_s14, %s66_s14 }
  0x95   :  { %p7960_p9 = scmp.ne.s32.totalorder %s66_s14, %s7959_s29  ;;  %p7965_p11 = scmp.lt.s32.totalorder %s7959_s29, %s7959_s29 }
  0x97   :  { %p7966_p12 = por %p7965_p11, %p7964_p10 }
  0x99   :  { %p7967_p13 = pnand %p7966_p12, %p7960_p9 }
  0x9b   :  { %7970 = shalt.err (!%p7967_p13)
}
  0x9c   :  { %68 = dma.hbm_to_vmem [thread:$0]  %s10023_s8, 32, %s66_s14, [#allocation6]  }
  0x9d   :  { %s10024_s25 = sld [smem:[#allocation37_spill]] }
  0xa3   :  { %s7971_s4 = scalar_lea.hbm %s10024_s25, 128 }
  0xa4   :  { %p7972_p0 = scmp.ne.s32.totalorder %s10024_s25, %s7971_s4  ;;  %p7975_p1 = scmp.lt.u32.totalorder %s7971_s4, %s10024_s25 }
  0xa6   :  { %p7977_p2 = pnand %p7975_p1, %p7972_p0 }
  0xa8   :  { %7980 = shalt.err (!%p7977_p2)
}
  0xa9   :  { %s7981_s7 = scalar_lea.vmem %s8340_s9, 128  ;;  %p7986_p4 = scmp.lt.s32.totalorder %s8340_s9, %s8340_s9 }
  0xaa   :  { %p7982_p3 = scmp.ne.s32.totalorder %s8340_s9, %s7981_s7  ;;  %p7987_p5 = scmp.lt.s32.totalorder %s7981_s7, %s7981_s7 }
  0xac   :  { %p7988_p6 = por %p7987_p5, %p7986_p4 }
  0xae   :  { %p7989_p7 = pnand %p7988_p6, %p7982_p3 }
  0xb0   :  { %7992 = shalt.err (!%p7989_p7)
}
  0xb1   :  { %92 = dma.hbm_to_vmem [thread:$0]  %s10024_s25, 128, %s8340_s9, [#allocation9], %s8125_s5, %s8125_s5, %s8126_s3  }
  0xb2   :  { %s8129_s30 = smov [#allocation13]   ;;  %s8130_s26 = smov [#allocation16]  }
  0xb3   :  { %s113_s29 = sshll.u32 %s8129_s30, 4  ;;  %s139_s18 = sshll.u32 %s8130_s26, 4  ;;  %s114_s29 = int_to_ptr.vmem [resolvable:$true] %s113_s29  ;;  %s140_s18 = int_to_ptr.vmem [resolvable:$true] %s139_s18 }
  0xb4   :  { %s7993_s4 = scalar_lea.hbm %s9987_s10, 16 }
  0xb5   :  { %p7994_p8 = scmp.ne.s32.totalorder %s9987_s10, %s7993_s4  ;;  %p7997_p9 = scmp.lt.u32.totalorder %s7993_s4, %s9987_s10 }
  0xb7   :  { %p7999_p10 = pnand %p7997_p9, %p7994_p8 }
  0xb9   :  { %8002 = shalt.err (!%p7999_p10)
}
  0xba   :  { %s8003_s9 = scalar_lea.vmem %s114_s29, 16  ;;  %s8007_s25 = scalar_lea.vmem %s114_s29, 32 }
  0xbb   :  { %p8004_p11 = scmp.ne.s32.totalorder %s114_s29, %s8003_s9  ;;  %p8008_p12 = scmp.lt.s32.totalorder %s114_s29, %s114_s29 }
  0xbc   :  { %p8009_p13 = scmp.lt.s32.totalorder %s8007_s25, %s8003_s9 }
  0xbe   :  { %p8010_p0 = por %p8009_p13, %p8008_p12 }
  0xc0   :  { %p8011_p1 = pnand %p8010_p0, %p8004_p11 }
  0xc2   :  { %8014 = shalt.err (!%p8011_p1)
}
  0xc3   :  { %116 = dma.hbm_to_vmem [thread:$0]  %s9987_s10, 16, %s114_s29, [#allocation12]  }
  0xc4   :  { %s8015_s26 = scalar_lea.hbm %s9992_s15, 16 }
  0xc5   :  { %p8016_p2 = scmp.ne.s32.totalorder %s9992_s15, %s8015_s26  ;;  %p8019_p3 = scmp.lt.u32.totalorder %s8015_s26, %s9992_s15 }
  0xc7   :  { %p8021_p4 = pnand %p8019_p3, %p8016_p2 }
  0xc9   :  { %8024 = shalt.err (!%p8021_p4)
}
  0xca   :  { %s8025_s27 = scalar_lea.vmem %s140_s18, 16  ;;  %s8029_s1 = scalar_lea.vmem %s140_s18, 32 }
  0xcb   :  { %p8026_p5 = scmp.ne.s32.totalorder %s140_s18, %s8025_s27  ;;  %p8030_p6 = scmp.lt.s32.totalorder %s140_s18, %s140_s18 }
  0xcc   :  { %p8031_p7 = scmp.lt.s32.totalorder %s8029_s1, %s8025_s27 }
  0xce   :  { %p8032_p8 = por %p8031_p7, %p8030_p6 }
  0xd0   :  { %p8033_p9 = pnand %p8032_p8, %p8026_p5 }
  0xd2   :  { %8036 = shalt.err (!%p8033_p9)
}
  0xd3   :  { %142 = dma.hbm_to_vmem [thread:$0]  %s9992_s15, 16, %s140_s18, [#allocation15]  }
  0xd4   :  { %s8131_s2 = smov [#allocation19]   ;;  %s8132_s25 = smov [#allocation20]  }
  0xd5   :  { %s164_s9 = sshll.u32 %s8131_s2, 4  ;;  %s180_s7 = sshll.u32 %s8132_s25, 4  ;;  %s165_s9 = int_to_ptr.vmem [resolvable:$true] %s164_s9  ;;  %s8398_s7 = int_to_ptr.vmem [resolvable:$true] %s180_s7 }
  0xd6   :  { %s8037_s30 = scalar_lea.hbm %s9996_s19, 256 }
  0xd7   :  { %p8038_p10 = scmp.ne.s32.totalorder %s9996_s19, %s8037_s30  ;;  %p8041_p11 = scmp.lt.u32.totalorder %s8037_s30, %s9996_s19 }
  0xd9   :  { %p8043_p12 = pnand %p8041_p11, %p8038_p10 }
  0xdb   :  { %8046 = shalt.err (!%p8043_p12)
}
  0xdc   :  { %s8047_s15 = scalar_lea.vmem %s165_s9, 256  ;;  %p8052_p0 = scmp.lt.s32.totalorder %s165_s9, %s165_s9 }
  0xdd   :  { %p8048_p13 = scmp.ne.s32.totalorder %s165_s9, %s8047_s15  ;;  %p8053_p1 = scmp.lt.s32.totalorder %s8047_s15, %s8047_s15 }
  0xdf   :  { %p8054_p2 = por %p8053_p1, %p8052_p0 }
  0xe1   :  { %p8055_p3 = pnand %p8054_p2, %p8048_p13 }
  0xe3   :  { %8058 = shalt.err (!%p8055_p3)
}
  0xe4   :  { %170 = dma.hbm_to_vmem [thread:$0]  %s9996_s19, 256, %s165_s9, [#allocation18], %s8125_s5, %s8125_s5, %s8126_s3  }
  0xe5   :  { %s8059_s10 = scalar_lea.hbm %s9999_s22, 256 }
  0xe6   :  { %p8060_p4 = scmp.ne.s32.totalorder %s9999_s22, %s8059_s10  ;;  %p8063_p5 = scmp.lt.u32.totalorder %s8059_s10, %s9999_s22 }
  0xe8   :  { %p8065_p6 = pnand %p8063_p5, %p8060_p4 }
  0xea   :  { %8068 = shalt.err (!%p8065_p6)
}
  0xeb   :  { %s8069_s8 = scalar_lea.vmem %s8398_s7, 256  ;;  %p8074_p8 = scmp.lt.s32.totalorder %s8398_s7, %s8398_s7 }
  0xec   :  { %p8070_p7 = scmp.ne.s32.totalorder %s8398_s7, %s8069_s8  ;;  %p8075_p9 = scmp.lt.s32.totalorder %s8069_s8, %s8069_s8 }
  0xee   :  { %p8076_p10 = por %p8075_p9, %p8074_p8 }
  0xf0   :  { %p8077_p11 = pnand %p8076_p10, %p8070_p7 }
  0xf2   :  { %8080 = shalt.err (!%p8077_p11)
}
  0xf3   :  { %186 = dma.hbm_to_vmem [thread:$0]  %s9999_s22, 256, %s8398_s7, [#allocation21], %s8125_s5, %s8125_s5, %s8126_s3  }
  0xf4   :  { %8103 = dma.done.wait [#allocation3], 32  }
  0xf5   :  { %8104 = vsyncadd [#allocation3], 4294967264 }
  0xf6   :  { %8105 = dma.done.wait [#allocation6], 64  }
  0xf7   :  { %8106 = vsyncadd [#allocation6], 4294967232 }
  0xf8   :  { %8107 = dma.done.wait [#allocation9], 160  }
  0xf9   :  { %8108 = vsyncadd [#allocation9], 4294967136 }
  0xfa   :  { %8109 = dma.done.wait [#allocation12], 32  }
  0xfb   :  { %8110 = vsyncadd [#allocation12], 4294967264 }
  0xfc   :  { %8111 = dma.done.wait [#allocation15], 32  }
  0xfd   :  { %8112 = vsyncadd [#allocation15], 4294967264 }
  0xfe   :  { %8113 = dma.done.wait [#allocation18], 512  }
  0xff   :  { %8114 = vsyncadd [#allocation18], 4294966784 }
 0x100   :  { %8115 = dma.done.wait [#allocation21], 256  }
 0x101   :  { %8116 = vsyncadd [#allocation21], 4294967040  ;;  %v8133_v0 = vmov 0.0   ;;  %vm8134_vm0 = vmmov 0   ;;  %v236_v1 = vlaneseq  ;;  %s10025_s7 = sld [smem:[#allocation35_spill]]  ;;  %v7437_v13 = vld [vmem:[#allocation10] sm:$0xff]  }
 0x102   :  { %6790 = vmatprep.subr.bf16.mxu0 %v8133_v0  ;;  %6806 = vmatprep.mubr.msk.bf16.mxu0 %vm8134_vm0, %v8133_v0  ;;  %v8135_v12 = vmov 1.0|1.0   ;;  %vm388_vm3 = vcmask 130048   ;;  %s10026_s19 = sld [smem:[#allocation38_spill]]  ;;  %v268_v22 = vld [vmem:[#allocation5] sm:$0x3] }
 0x103   :  { %6810 = vmatprep.subr.bf16.mxu1 %v8133_v0  ;;  %6812 = vmatprep.mubr.msk.bf16.mxu1 %vm8134_vm0, %v8133_v0  ;;  %v8449_v4 = vand.u32 127, %v236_v1  ;;  %v8495_v23 = vpack.c.bf16 %v268_v22, %v268_v22  ;;  %vm450_vm4 = vcmask 261120   ;;  %v8501_v24 = vld [vmem:[#allocation8] sm:$0x3]  ;;  %v269_v31 = vld [vmem:[#allocation7] sm:$0x3] }
 0x104   :  { %6811 = vmatpush3.bf16.msra.mxu1 %v7437_v13  ;;  %s8136_s3 = smov 32   ;;  %s10027_s6 = sld [smem:[#allocation39_spill]]  ;;  %v8137_v49 = vmov 1966171168   ;;  %v591_v52 = vshrl.u32 %v236_v1, 7  ;;  %v8542_v1 = vld [vmem:[%s9988_s11] sm:$0xff] }
 0x105   :  { %v8456_v6 = vcvt.s32.f32 %v8449_v4  ;;  %6816 = vmatprep.subr.bf16.mxu1 %v8133_v0  ;;  %v588_v50 = vunpack.c.l.s4 %v8137_v49  ;;  %v8530_v53 = vld [vmem:[#allocation11] ss:$0 sm:$0xff]  ;;  %vm651_vm5 = vcmask 1041409   ;;  %vm228_vm7 = vcmask 58368   ;;  %s10028_s8 = sld [smem:[#allocation31_spill]] }
 0x106   :  { %v8535_v59 = vsub.s32 0, %v591_v52  ;;  %vm1256_vm10 = vcmask 1041408  }
 0x107   :  { %v7429_v2 = vld [vmem:[%s10025_s7] sm:$0xff]   ;;  %v7430_v3 = vld [vmem:[%s10025_s7 + $0x8] sm:$0xff]   ;;  %v7431_v5 = vld [vmem:[%s10025_s7 + $0x10] sm:$0xff]   ;;  %vm270_vm1 = vcmp.eq.f32.partialorder %v8456_v6, 1.0  ;;  %v589_v51 = vunpack.c.0.s8 %v588_v50 }
 0x108   :  { %6791 = vmatpush3.bf16.msra.mxu0 %v7429_v2  ;;  %v7432_v7 = vld [vmem:[%s10025_s7 + $0x18] sm:$0xff]   ;;  %v7433_v8 = vld [vmem:[%s10025_s7 + $0x20] sm:$0xff]   ;;  %v7434_v9 = vld [vmem:[%s10025_s7 + $0x28] sm:$0xff]  }
 0x109   :  { %6792 = vmatprep.subr.bf16.mxu0 %v8133_v0  ;;  %v7435_v10 = vld [vmem:[%s10025_s7 + $0x30] sm:$0xff]   ;;  %vm6302_vm2 = vmpackc.low %vm270_vm1, %vm270_vm1  ;;  %v7436_v11 = vld [vmem:[%s10025_s7 + $0x38] sm:$0xff]   ;;  %v8532_v54 = vsub.s32 %v589_v51, %v591_v52 }
 0x10a   :  { %v7438_v18 = vld [vmem:[%s10026_s19] sm:$0xff]   ;;  %v7439_v21 = vld [vmem:[%s10026_s19 + $0x8] sm:$0xff]  }
 0x10b   :  { %v7440_v42 = vld [vmem:[%s10027_s6] sm:$0xff]   ;;  %v7441_v43 = vld [vmem:[%s10027_s6 + $0x8] sm:$0xff]  }
 0x10c   :  { %6793 = vmatpush3.bf16.msra.mxu0 %v7430_v3 }
 0x10d   :  { %6794 = vmatprep.subr.bf16.mxu0 %v8133_v0 }
 0x110   :  { %6795 = vmatpush3.bf16.msra.mxu0 %v7431_v5  ;;  %v8549_v5 = vld [vmem:[%s9988_s11 + $0x8] sm:$0xff] }
 0x111   :  { %6796 = vmatprep.subr.bf16.mxu0 %v8133_v0 }
 0x114   :  { %6797 = vmatpush3.bf16.msra.mxu0 %v7432_v7 }
 0x115   :  { %6798 = vmatprep.subr.bf16.mxu0 %v8133_v0 }
 0x118   :  { %6799 = vmatpush3.bf16.msra.mxu0 %v7433_v8 }
 0x119   :  { %6800 = vmatprep.subr.bf16.mxu0 %v8133_v0 }
 0x11c   :  { %6801 = vmatpush3.bf16.msra.mxu0 %v7434_v9 }
 0x11d   :  { %6802 = vmatprep.subr.bf16.mxu0 %v8133_v0 }
 0x120   :  { %6803 = vmatpush3.bf16.msra.mxu0 %v7435_v10  ;;  %v8554_v10 = vld [vmem:[#allocation13] ss:$0 sm:$0xff] }
 0x121   :  { %6804 = vmatprep.subr.bf16.mxu0 %v8133_v0 }
 0x124   :  { %6805 = vmatpush3.bf16.msra.mxu0 %v7436_v11 }
 0x125   :  { %6848 = vmatprep.subr.bf16.mxu0 %v8133_v0 }
 0x127   :  { %6807 = vmatmul.mubr.msk.bf16.vlgmr.msra.gmra.mrb[0].mxu0 %vm6302_vm2, %v8135_v12 }
 0x128   :  { %6852 = vmatprep.mubr.msk.bf16.mxu0 %vm8134_vm0, %v8133_v0 }
 0x1fa   :  { %v372_v14 = vpop.f32.mrb[0].mxu0 }
 0x1fb   :  { %v378_v15 = vmax.f32 %v372_v14, 0.0  ;;  %v6808_v16 = vpop.f32.mrb[1].mxu0 }
 0x1fc   :  { %v375_v17 = vpop.f32.mrb[2].mxu0 }
 0x1fd   :  { %v379_v19 = vpack.c.bf16 %v378_v15, %v378_v15  ;;  %v6809_v20 = vpop.f32.mrb[3].mxu0 }
 0x1fe   :  { %v8563_v20 = vld [vmem:[#allocation2] sm:$0x3] }
 0x1ff   :  { %6813 = vmatmul.mubr.msk.bf16.vlgmr.msra.gmra.mrb[0].mxu1 %vm388_vm3, %v379_v19  ;;  %vm640_vm6 = vcmp.gt.f32.partialorder %v8563_v20, 0.0 }
 0x200   :  { %6817 = vmatpush3.bf16.msra.mxu1 %v7438_v18  ;;  %6820 = vmatprep.mubr.msk.bf16.mxu1 %vm8134_vm0, %v8133_v0  ;;  %v8561_v18 = vsub.s32 %v8449_v4, %v591_v52 }
 0x201   :  { %6818 = vmatprep.subr.bf16.mxu1 %v8133_v0 }
 0x204   :  { %6819 = vmatpush3.bf16.msra.mxu1 %v7439_v21 }
 0x205   :  { %6824 = vmatprep.subr.bf16.mxu1 %v8133_v0 }
 0x20b   :  { %6821 = vmatmul.mubr.msk.bf16.vlgmr.msra.gmra.mrb[0].mxu1 %vm450_vm4, %v8495_v23 }
 0x20c   :  { %6828 = vmatprep.mubr.msk.bf16.mxu1 %vm8134_vm0, %v8133_v0  ;;  %6825 = vmatpush3.bf16.msra.mxu1 %v7440_v42  ;;  %v7443_v42 = vld [vmem:[%s9990_s13 + $0x8] sm:$0xff]  }
 0x20d   :  { %6826 = vmatprep.subr.bf16.mxu1 %v8133_v0 }
 0x210   :  { %6827 = vmatpush3.bf16.msra.mxu1 %v7441_v43  ;;  %v8588_v43 = vld [vmem:[%s10028_s8 + $0x8] sm:$0xff] }
 0x211   :  { %6832 = vmatprep.subr.bf16.mxu1 %v8133_v0 }
 0x2de   :  { %v488_v25 = vpop.f32.mrb[0].mxu1 }
 0x2df   :  { %v7378_v26 = vadd.f32 %v488_v25, %v8501_v24  ;;  %v6822_v27 = vpop.f32.mrb[1].mxu1 }
 0x2e0   :  { %v491_v28 = vpop.f32.mrb[2].mxu1 }
 0x2e1   :  { %v6823_v29 = vpop.f32.mrb[3].mxu1  ;;  %7591 = vtanh.f32 %v7378_v26  ;;  %v6309_v32 = vmul.f32 -1.442695, %v7378_v26 }
 0x2e3   :  { %7593 = vpow2.f32 %v6309_v32 }
 0x2eb   :  { %v7592_v30 = vpop.eup %7591 }
 0x2ec   :  { %508 = vrot.lane.b32.xlu0 %v7592_v30, %s8125_s5 }
 0x2ed   :  { %v7594_v33 = vpop.eup %7593 }
 0x2ee   :  { %v498_v34 = vadd.f32 1.0, %v7594_v33 }
 0x2f0   :  { %503 = vrot.lane.b32.xlu0 %v269_v31, %s8136_s3  ;;  %7595 = vrcp.f32 %v498_v34  ;;  %v8573_v34 = vsub.s32 1, %v591_v52 }
 0x2fa   :  { %v7596_v35 = vpop.eup %7595 }
 0x35e   :  { %v509_v36 = vpop.permute.xlu0 %508 }
 0x35f   :  { %v511_v37 = vmul.f32 %v7596_v35, %v509_v36 }
 0x361   :  { %513 = vrot.lane.b32.xlu1 %v511_v37, %s8136_s3 }
 0x362   :  { %v8507_v38 = vpop.permute.xlu0 %503 }
 0x363   :  { %v506_v39 = vmul.f32 %v7596_v35, %v8507_v38 }
 0x3d3   :  { %v514_v40 = vpop.permute.xlu1 %513 }
 0x3d4   :  { %v8510_v41 = vadd.f32 %v514_v40, %v506_v39  ;;  %v7442_v40 = vld [vmem:[%s9990_s13] sm:$0xff]  }
 0x3d6   :  { %7597 = vtanh.f32 %v8510_v41 }
 0x3e0   :  { %v7598_v44 = vpop.eup %7597 }
 0x3e1   :  { %519 = vrot.lane.b32.xlu1 %v7598_v44, %s8125_s5  ;;  %v8593_v44 = vld [vmem:[%s10028_s8] sm:$0xff] }
 0x453   :  { %v520_v45 = vpop.permute.xlu1 %519 }
 0x454   :  { %v522_v46 = vmul.f32 %v7596_v35, %v520_v45 }
 0x456   :  { %v523_v47 = vpack.c.bf16 %v522_v46, %v522_v46 }
 0x458   :  { %529 = vrot.lane.b32.xlu0 %v523_v47, %s8136_s3 }
 0x4ca   :  { %v8523_v48 = vpop.permute.xlu0 %529 }
 0x4cb   :  { %6829 = vmatmul.mubr.msk.bf16.vlgmr.msra.gmra.mrb[4].mxu1 %vm450_vm4, %v8523_v48 }
 0x4cc   :  { %6836 = vmatprep.mubr.msk.bf16.mxu1 %vm8134_vm0, %v8133_v0  ;;  %6833 = vmatpush3.bf16.msra.mxu1 %v7442_v40 }
 0x4cd   :  { %6834 = vmatprep.subr.bf16.mxu1 %v8133_v0 }
 0x4d0   :  { %6835 = vmatpush3.bf16.msra.mxu1 %v7443_v42  ;;  %v8636_v42 = vld [vmem:[%s9993_s16] sm:$0xff] }
 0x4d1   :  { %6840 = vmatprep.subr.bf16.mxu1 %v8133_v0 }
 0x59e   :  { %v580_v55 = vpop.f32.mrb[4].mxu1 }
 0x59f   :  { %v581_v56 = vadd.f32 %v8530_v53, %v580_v55  ;;  %v6830_v57 = vpop.f32.mrb[5].mxu1 }
 0x5a0   :  { %v583_v58 = vpop.f32.mrb[6].mxu1 }
 0x5a1   :  { %v593_v60 = vrot.slane %v581_v56, %v8532_v54  ;;  %v6831_v61 = vpop.f32.mrb[7].mxu1 }
 0x5a3   :  { %v594_v62 = vcombine.high %v593_v60, %v593_v60  ;;  %v601_v63 = vrot.slane %v593_v60, %v8532_v54 }
 0x5a5   :  { %v608_v2 = vrot.slane %v594_v62, %v8532_v54  ;;  %v614_v3 = vrot.slane %v601_v63, %v8535_v59 }
 0x5a7   :  { %v618_v7 = vrot.slane %v608_v2, %v8535_v59  ;;  %v621_v8 = vadd.f32 %v614_v3, %v8542_v1 }
 0x5a9   :  { %v622_v9 = vadd.f32 %v618_v7, %v8549_v5  ;;  %7599 = vtanh.f32 %v621_v8 }
 0x5ab   :  { %7601 = vtanh.f32 %v622_v9 }
 0x5b3   :  { %v7600_v11 = vpop.eup %7599 }
 0x5b4   :  { %v632_v13 = vmul.f32 %v7600_v11, %v8554_v10 }
 0x5b5   :  { %v7602_v14 = vpop.eup %7601 }
 0x5b6   :  { %v634_v15 = vsel %vm450_vm4, %v632_v13, 0.0  ;;  %v633_v16 = vmul.f32 %v7602_v14, %v8554_v10 }
 0x5b7   :  { %635 = vadd.xlane.f32.xlu1 %v634_v15  ;;  %v7444_v15 = vld [vmem:[%s9989_s12] sm:$0xff]  }
 0x5b8   :  { %v637_v17 = vsel %vm450_vm4, %v633_v16, 0.0 }
 0x5b9   :  { %638 = vadd.xlane.f32.xlu0 %v637_v17  ;;  %v7445_v17 = vld [vmem:[%s9989_s12 + $0x8] sm:$0xff]  }
 0x644   :  { %v636_v19 = vpop.xlane.xlu1 %635 }
 0x645   :  { %v646_v22 = vrot.slane %v636_v19, %v8561_v18  ;;  %v7446_v19 = vld [vmem:[%s9994_s17] sm:$0xff]  }
 0x646   :  { %v639_v21 = vpop.xlane.xlu0 %638 }
 0x647   :  { %v650_v25 = vrot.slane %v639_v21, %v8561_v18  ;;  %v7447_v21 = vld [vmem:[%s9994_s17 + $0x8] sm:$0xff]  }
 0x649   :  { %v652_v26 = vsel %vm651_vm5, %v650_v25, %v646_v22  ;;  %v227_v22 = vsub.f32 1.0, %v8563_v20 }
 0x64a   :  { %v654_v27 = vsel %vm640_vm6, %v652_v26, -1e+09 }
 0x64b   :  { %v655_v4 = vsel %vm228_vm7, %v654_v27, -inf  ;;  %v229_v25 = vsel %vm228_vm7, %v227_v22, 0.0 }
 0x64c   :  { %656 = vmax.xlane.f32.xlu0 %v655_v4 }
 0x6d9   :  { %v657_v28 = vpop.xlane.xlu0 %656 }
 0x6da   :  { %v658_v29 = vsub.f32 %v654_v27, %v657_v28 }
 0x6dc   :  { %v659_v30 = vmul.f32 1.442695, %v658_v29  ;;  %v8628_v29 = vld [vmem:[#allocation14] ss:$0 sm:$0xff] }
 0x6de   :  { %7603 = vpow2.f32 %v659_v30 }
 0x6e8   :  { %v7604_v31 = vpop.eup %7603 }
 0x6e9   :  { %v661_v32 = vsel %vm228_vm7, %v7604_v31, 0.0 }
 0x6ea   :  { %662 = vadd.xlane.f32.xlu1 %v661_v32 }
 0x777   :  { %v663_v33 = vpop.xlane.xlu1 %662 }
 0x778   :  { %7605 = vrcp.f32 %v663_v33 }
 0x782   :  { %v7606_v35 = vpop.eup %7605 }
 0x783   :  { %v665_v36 = vmul.f32 %v7606_v35, %v7604_v31 }
 0x785   :  { %v676_v37 = vrot.slane %v665_v36, %v8573_v34  ;;  %v669_v39 = vrot.slane %v665_v36, %v8535_v59 }
 0x787   :  { %678 = vbcast.lane.b32.xlu1 %v676_v37, 256  ;;  %671 = vbcast.lane.b32.xlu0 %v669_v39, 256 }
 0x7ab   :  { %230 = vadd.xlane.f32.xlu1 %v229_v25 }
 0x7f9   :  { %v679_v45 = vpop.permute.xlu1 %678  ;;  %v672_v46 = vpop.permute.xlu0 %671 }
 0x7fa   :  { %v683_v47 = vmul.f32 %v8588_v43, %v679_v45  ;;  %v682_v49 = vmul.f32 %v8593_v44, %v672_v46 }
 0x7fc   :  { %v691_v50 = vsel %vm450_vm4, %v683_v47, 0.0  ;;  %v684_v51 = vsel %vm450_vm4, %v682_v49, 0.0 }
 0x7fd   :  { %v692_v52 = vrot.slane %v691_v50, 4  ;;  %v685_v55 = vrot.slane %v684_v51, 4 }
 0x7ff   :  { %v693_v56 = vadd.f32 %v692_v52, %v691_v50  ;;  %v686_v57 = vadd.f32 %v685_v55, %v684_v51  ;;  %v8645_v50 = vld [vmem:[%s9993_s16 + $0x8] sm:$0xff] }
 0x801   :  { %v694_v58 = vrot.slane %v693_v56, 2  ;;  %v687_v60 = vrot.slane %v686_v57, 2 }
 0x803   :  { %v695_v61 = vadd.f32 %v694_v58, %v693_v56  ;;  %v688_v62 = vadd.f32 %v687_v60, %v686_v57  ;;  %v8650_v58 = vld [vmem:[#allocation16] ss:$0 sm:$0xff] }
 0x805   :  { %v696_v63 = vrot.slane %v695_v61, 1  ;;  %v689_v2 = vrot.slane %v688_v62, 1 }
 0x807   :  { %v697_v3 = vadd.f32 %v696_v63, %v695_v61  ;;  %v690_v7 = vadd.f32 %v689_v2, %v688_v62 }
 0x809   :  { %v703_v8 = vpack.c.bf16 %v697_v3, %v697_v3  ;;  %v702_v9 = vpack.c.bf16 %v690_v7, %v690_v7 }
 0x80b   :  { %v711_v11 = vunpack.c.l.b16 %v703_v8  ;;  %v710_v13 = vunpack.c.l.b16 %v702_v9 }
 0x80d   :  { %v712_v14 = vsel %vm651_vm5, %v711_v11, %v710_v13 }
 0x80e   :  { %v713_v16 = vpack.c.b16 %v712_v14, %v712_v14 }
 0x810   :  { %6837 = vmatmul.mubr.msk.bf16.vlgmr.msra.gmra.mrb[8].mxu1 %vm450_vm4, %v713_v16 }
 0x811   :  { %6841 = vmatpush3.bf16.msra.mxu1 %v7444_v15  ;;  %6844 = vmatprep.mubr.msk.bf16.mxu1 %vm8134_vm0, %v8133_v0 }
 0x812   :  { %6842 = vmatprep.subr.bf16.mxu1 %v8133_v0 }
 0x815   :  { %6843 = vmatpush3.bf16.msra.mxu1 %v7445_v17 }
 0x816   :  { %6856 = vmatprep.subr.bf16.mxu1 %v8133_v0 }
 0x818   :  { %6845 = vmatmul.mubr.msk.bf16.vlgmr.msra.gmra.mrb[12].mxu1 %vm450_vm4, %v8523_v48 }
 0x819   :  { %6857 = vmatpush3.bf16.msra.mxu1 %v7446_v19  ;;  %6860 = vmatprep.mubr.msk.bf16.mxu1 %vm8134_vm0, %v8133_v0 }
 0x81a   :  { %6858 = vmatprep.subr.bf16.mxu1 %v8133_v0 }
 0x81d   :  { %6859 = vmatpush3.bf16.msra.mxu1 %v7447_v21 }
 0x81e   :  { %6872 = vmatprep.subr.bf16.mxu1 %v8133_v0 }
 0x820   :  { %6861 = vmatmul.mubr.msk.bf16.vlgmr.msra.gmra.mrb[16].mxu1 %vm450_vm4, %v713_v16 }
 0x821   :  { %6876 = vmatprep.mubr.msk.bf16.mxu1 %vm8134_vm0, %v8133_v0 }
 0x838   :  { %v231_v7 = vpop.xlane.xlu1 %230 }
 0x839   :  { %vm232_vm8 = vcmp.eq.f32.partialorder %v231_v7, 0.0 }
 0x83a   :  { %v8656_v9 = vsel %vm232_vm8, 1.0, %v227_v22 }
 0x83b   :  { %vm876_vm9 = vcmp.gt.f32.partialorder %v8656_v9, 0.0 }
 0x8e3   :  { %v763_v26 = vpop.f32.mrb[8].mxu1 }
 0x8e4   :  { %v6838_v27 = vpop.f32.mrb[9].mxu1 }
 0x8e5   :  { %v766_v4 = vpop.f32.mrb[10].mxu1 }
 0x8e6   :  { %v6839_v28 = vpop.f32.mrb[11].mxu1 }
 0x8eb   :  { %v815_v30 = vpop.f32.mrb[12].mxu1 }
 0x8ec   :  { %v816_v31 = vadd.f32 %v815_v30, %v763_v26  ;;  %v6846_v32 = vpop.f32.mrb[13].mxu1 }
 0x8ed   :  { %v818_v33 = vpop.f32.mrb[14].mxu1  ;;  %v7448_v32 = vld [vmem:[#allocation17] sm:$0xff]  }
 0x8ee   :  { %v821_v35 = vadd.f32 %v8628_v29, %v816_v31  ;;  %v6847_v36 = vpop.f32.mrb[15].mxu1  ;;  %6849 = vmatpush3.bf16.msra.mxu0 %v7448_v32  ;;  %v7449_v33 = vld [vmem:[#allocation17 + $0x8] sm:$0xff]  }
 0x8ef   :  { %6850 = vmatprep.subr.bf16.mxu0 %v8133_v0  ;;  %v7453_v36 = vld [vmem:[%s9997_s20 + $0x8] sm:$0xff]  }
 0x8f0   :  { %v829_v37 = vrot.slane %v821_v35, %v8532_v54  ;;  %v7451_v35 = vld [vmem:[%s9997_s20] sm:$0xff]  }
 0x8f1   :  { %6873 = vmatpush3.bf16.msra.mxu1 %v7451_v35  ;;  %v8700_v35 = vld [vmem:[%s9998_s21] ss:$0 sm:$0xff] }
 0x8f2   :  { %v830_v39 = vcombine.high %v829_v37, %v829_v37  ;;  %v837_v40 = vrot.slane %v829_v37, %v8532_v54  ;;  %6851 = vmatpush3.bf16.msra.mxu0 %v7449_v33  ;;  %6874 = vmatprep.subr.bf16.mxu1 %v8133_v0 }
 0x8f3   :  { %v8638_v45 = vpop.f32.mrb[16].mxu1  ;;  %6864 = vmatprep.subr.bf16.mxu0 %v8133_v0 }
 0x8f4   :  { %v844_v46 = vrot.slane %v830_v39, %v8532_v54  ;;  %v850_v47 = vrot.slane %v837_v40, %v8535_v59  ;;  %v6862_v49 = vpop.f32.mrb[17].mxu1 }
 0x8f5   :  { %v1051_v51 = vpop.f32.mrb[18].mxu1  ;;  %6875 = vmatpush3.bf16.msra.mxu1 %v7453_v36 }
 0x8f6   :  { %v854_v52 = vrot.slane %v844_v46, %v8535_v59  ;;  %v857_v55 = vadd.f32 %v850_v47, %v8636_v42  ;;  %v6863_v56 = vpop.f32.mrb[19].mxu1  ;;  %6888 = vmatprep.subr.bf16.mxu1 %v8133_v0 }
 0x8f8   :  { %v858_v57 = vadd.f32 %v854_v52, %v8645_v50  ;;  %7607 = vtanh.f32 %v857_v55  ;;  %6877 = vmatmul.mubr.msk.bf16.vlgmr.msra.gmra.mrb[20].mxu1 %vm450_vm4, %v8495_v23 }
 0x8f9   :  { %6904 = vmatprep.mubr.msk.bf16.mxu1 %vm8134_vm0, %v8133_v0 }
 0x8fa   :  { %7609 = vtanh.f32 %v858_v57 }
 0x902   :  { %v7608_v60 = vpop.eup %7607 }
 0x903   :  { %v868_v61 = vmul.f32 %v7608_v60, %v8650_v58 }
 0x904   :  { %v7610_v62 = vpop.eup %7609 }
 0x905   :  { %v870_v63 = vsel %vm450_vm4, %v868_v61, 0.0  ;;  %v869_v2 = vmul.f32 %v7610_v62, %v8650_v58 }
 0x906   :  { %871 = vadd.xlane.f32.xlu0 %v870_v63 }
 0x907   :  { %v873_v3 = vsel %vm450_vm4, %v869_v2, 0.0 }
 0x90a   :  { %874 = vadd.xlane.f32.xlu0 %v873_v3 }
 0x993   :  { %v872_v8 = vpop.xlane.xlu0 %871 }
 0x994   :  { %v882_v13 = vrot.slane %v872_v8, %v8561_v18 }
 0x997   :  { %v875_v11 = vpop.xlane.xlu0 %874 }
 0x998   :  { %v886_v14 = vrot.slane %v875_v11, %v8561_v18 }
 0x99a   :  { %v887_v15 = vsel %vm651_vm5, %v886_v14, %v882_v13 }
 0x99b   :  { %v889_v16 = vsel %vm876_vm9, %v887_v15, -1e+09  ;;  %v7450_v15 = vld [vmem:[#allocation19] sm:$0xff]  }
 0x99c   :  { %v890_v17 = vsel %vm228_vm7, %v889_v16, -inf }
 0x99d   :  { %891 = vmax.xlane.f32.xlu1 %v890_v17  ;;  %v7452_v17 = vld [vmem:[#allocation19 + $0x8] sm:$0xff]  }
 0xa2a   :  { %v892_v19 = vpop.xlane.xlu1 %891 }
 0xa2b   :  { %v893_v21 = vsub.f32 %v889_v16, %v892_v19  ;;  %v1161_v19 = vpop.f32.mrb[20].mxu1 }
 0xa2d   :  { %v894_v25 = vmul.f32 1.442695, %v893_v21  ;;  %v6878_v21 = vpop.f32.mrb[21].mxu1 }
 0xa2e   :  { %v7458_v21 = vld [vmem:[%s10025_s7 + $0x10] sm:$0xff]  }
 0xa2f   :  { %7611 = vpow2.f32 %v894_v25  ;;  %v1164_v25 = vpop.f32.mrb[22].mxu1 }
 0xa30   :  { %v7459_v25 = vld [vmem:[%s10025_s7 + $0x18] sm:$0xff]  }
 0xa39   :  { %v7612_v22 = vpop.eup %7611 }
 0xa3a   :  { %v896_v26 = vsel %vm228_vm7, %v7612_v22, 0.0 }
 0xa3b   :  { %897 = vadd.xlane.f32.xlu0 %v896_v26 }
 0xac8   :  { %v898_v27 = vpop.xlane.xlu0 %897 }
 0xac9   :  { %7613 = vrcp.f32 %v898_v27 }
 0xad3   :  { %v7614_v4 = vpop.eup %7613 }
 0xad4   :  { %v900_v28 = vmul.f32 %v7614_v4, %v7612_v22  ;;  %v6879_v22 = vpop.f32.mrb[23].mxu1 }
 0xad5   :  { %v7460_v22 = vld [vmem:[%s10025_s7 + $0x20] sm:$0xff]  }
 0xad6   :  { %v911_v30 = vrot.slane %v900_v28, %v8573_v34  ;;  %v904_v31 = vrot.slane %v900_v28, %v8535_v59 }
 0xad8   :  { %913 = vbcast.lane.b32.xlu0 %v911_v30, 256  ;;  %906 = vbcast.lane.b32.xlu1 %v904_v31, 256 }
 0xb4a   :  { %v914_v37 = vpop.permute.xlu0 %913  ;;  %v907_v39 = vpop.permute.xlu1 %906 }
 0xb4b   :  { %v916_v40 = vmul.f32 %v914_v37, %v8588_v43  ;;  %v915_v46 = vmul.f32 %v907_v39, %v8593_v44 }
 0xb4d   :  { %v924_v47 = vsel %vm450_vm4, %v916_v40, 0.0  ;;  %v917_v49 = vsel %vm450_vm4, %v915_v46, 0.0 }
 0xb4e   :  { %v925_v51 = vrot.slane %v924_v47, 4  ;;  %v918_v52 = vrot.slane %v917_v49, 4 }
 0xb50   :  { %v926_v55 = vadd.f32 %v925_v51, %v924_v47  ;;  %v919_v56 = vadd.f32 %v918_v52, %v917_v49 }
 0xb52   :  { %v927_v57 = vrot.slane %v926_v55, 2  ;;  %v920_v60 = vrot.slane %v919_v56, 2 }
 0xb54   :  { %v928_v23 = vadd.f32 %v927_v57, %v926_v55  ;;  %v921_v61 = vadd.f32 %v920_v60, %v919_v56 }
 0xb56   :  { %v929_v62 = vrot.slane %v928_v23, 1  ;;  %v922_v63 = vrot.slane %v921_v61, 1 }
 0xb58   :  { %v930_v2 = vadd.f32 %v929_v62, %v928_v23  ;;  %v923_v3 = vadd.f32 %v922_v63, %v921_v61  ;;  %v7454_v23 = vld [vmem:[#allocation20] sm:$0xff]   ;;  %v7455_v61 = vld [vmem:[#allocation20 + $0x8] sm:$0xff]  }
 0xb5a   :  { %v936_v7 = vpack.c.bf16 %v930_v2, %v930_v2  ;;  %v935_v8 = vpack.c.bf16 %v923_v3, %v923_v3 }
 0xb5c   :  { %v944_v11 = vunpack.c.l.b16 %v936_v7  ;;  %v943_v13 = vunpack.c.l.b16 %v935_v8  ;;  %v8722_v7 = vld [vmem:[%s10000_s23] ss:$0 sm:$0xff] }
 0xb5e   :  { %v945_v14 = vsel %vm651_vm5, %v944_v11, %v943_v13 }
 0xb5f   :  { %v946_v16 = vpack.c.b16 %v945_v14, %v945_v14 }
 0xb61   :  { %6853 = vmatmul.mubr.msk.bf16.vlgmr.msra.gmra.mrb[4].mxu0 %vm450_vm4, %v946_v16 }
 0xb62   :  { %6865 = vmatpush3.bf16.msra.mxu0 %v7450_v15  ;;  %6868 = vmatprep.mubr.msk.bf16.mxu0 %vm8134_vm0, %v8133_v0 }
 0xb63   :  { %6866 = vmatprep.subr.bf16.mxu0 %v8133_v0 }
 0xb66   :  { %6867 = vmatpush3.bf16.msra.mxu0 %v7452_v17  ;;  %v7456_v17 = vld [vmem:[%s10025_s7] sm:$0xff]  }
 0xb67   :  { %6880 = vmatprep.subr.bf16.mxu0 %v8133_v0  ;;  %6889 = vmatpush3.bf16.msra.mxu1 %v7456_v17  ;;  %v7468_v17 = vld [vmem:[%s9989_s12] sm:$0xff]  }
 0xb68   :  { %6890 = vmatprep.subr.bf16.mxu1 %v8133_v0 }
 0xb69   :  { %6869 = vmatmul.mubr.msk.bf16.vlgmr.msra.gmra.mrb[8].mxu0 %vm450_vm4, %v8523_v48 }
 0xb6a   :  { %6884 = vmatprep.mubr.msk.bf16.mxu0 %vm8134_vm0, %v8133_v0  ;;  %6881 = vmatpush3.bf16.msra.mxu0 %v7454_v23 }
 0xb6b   :  { %6882 = vmatprep.subr.bf16.mxu0 %v8133_v0 }
 0xb6e   :  { %6883 = vmatpush3.bf16.msra.mxu0 %v7455_v61 }
 0xb6f   :  { %6908 = vmatprep.subr.bf16.mxu0 %v8133_v0 }
 0xc34   :  { %v996_v26 = vpop.f32.mrb[4].mxu0 }
 0xc35   :  { %v1049_v27 = vadd.f32 %v8638_v45, %v996_v26  ;;  %v6854_v4 = vpop.f32.mrb[5].mxu0  ;;  %v7461_v26 = vld [vmem:[%s10025_s7 + $0x28] sm:$0xff]  }
 0xc36   :  { %v999_v28 = vpop.f32.mrb[6].mxu0 }
 0xc37   :  { %v6855_v30 = vpop.f32.mrb[7].mxu0 }
 0xc3c   :  { %v1104_v31 = vpop.f32.mrb[8].mxu0 }
 0xc3d   :  { %v1110_v32 = vadd.f32 %v1104_v31, %v1049_v27  ;;  %v6870_v33 = vpop.f32.mrb[9].mxu0  ;;  %v7462_v27 = vld [vmem:[%s10025_s7 + $0x30] sm:$0xff]   ;;  %v7463_v31 = vld [vmem:[%s10025_s7 + $0x38] sm:$0xff]  }
 0xc3e   :  { %v1107_v36 = vpop.f32.mrb[10].mxu0 }
 0xc3f   :  { %v1167_v37 = vadd.f32 %v1161_v19, %v1110_v32  ;;  %v6871_v39 = vpop.f32.mrb[11].mxu0  ;;  %v7457_v19 = vld [vmem:[%s10025_s7 + $0x8] sm:$0xff]  }
 0xc40   :  { %6891 = vmatpush3.bf16.msra.mxu1 %v7457_v19  ;;  %v7464_v32 = vld [vmem:[#allocation10] sm:$0xff]  }
 0xc41   :  { %v1168_v40 = vadd.f32 %v8700_v35, %v1167_v37  ;;  %6892 = vmatprep.subr.bf16.mxu1 %v8133_v0  ;;  %v7469_v19 = vld [vmem:[%s10027_s6 + $0x8] sm:$0xff]  }
 0xc43   :  { %7615 = vtanh.f32 %v1168_v40  ;;  %v6333_v45 = vmul.f32 -1.442695, %v1168_v40 }
 0xc44   :  { %6893 = vmatpush3.bf16.msra.mxu1 %v7458_v21 }
 0xc45   :  { %7617 = vpow2.f32 %v6333_v45  ;;  %6894 = vmatprep.subr.bf16.mxu1 %v8133_v0 }
 0xc48   :  { %6895 = vmatpush3.bf16.msra.mxu1 %v7459_v25 }
 0xc49   :  { %6896 = vmatprep.subr.bf16.mxu1 %v8133_v0 }
 0xc4c   :  { %6897 = vmatpush3.bf16.msra.mxu1 %v7460_v22 }
 0xc4d   :  { %v7616_v46 = vpop.eup %7615  ;;  %6898 = vmatprep.subr.bf16.mxu1 %v8133_v0 }
 0xc4e   :  { %1178 = vrot.lane.b32.xlu1 %v7616_v46, %s8125_s5 }
 0xc4f   :  { %v7618_v47 = vpop.eup %7617 }
 0xc50   :  { %v1172_v49 = vadd.f32 1.0, %v7618_v47  ;;  %6899 = vmatpush3.bf16.msra.mxu1 %v7461_v26  ;;  %v7465_v47 = vld [vmem:[%s10026_s19] sm:$0xff]  }
 0xc51   :  { %6900 = vmatprep.subr.bf16.mxu1 %v8133_v0 }
 0xc52   :  { %7619 = vrcp.f32 %v1172_v49 }
 0xc54   :  { %6901 = vmatpush3.bf16.msra.mxu1 %v7462_v27 }
 0xc55   :  { %6902 = vmatprep.subr.bf16.mxu1 %v8133_v0 }
 0xc58   :  { %6903 = vmatpush3.bf16.msra.mxu1 %v7463_v31 }
 0xc59   :  { %6938 = vmatprep.subr.bf16.mxu1 %v8133_v0 }
 0xc5c   :  { %v7620_v51 = vpop.eup %7619 }
 0xc5d   :  { %v1176_v56 = vmul.f32 %v7620_v51, %v8507_v38 }
 0xcc0   :  { %v1179_v52 = vpop.permute.xlu1 %1178 }
 0xcc1   :  { %v1181_v55 = vmul.f32 %v7620_v51, %v1179_v52  ;;  %v7466_v52 = vld [vmem:[%s10026_s19 + $0x8] sm:$0xff]  }
 0xcc3   :  { %1183 = vrot.lane.b32.xlu1 %v1181_v55, %s8136_s3 }
 0xd35   :  { %v1184_v57 = vpop.permute.xlu1 %1183 }
 0xd36   :  { %v8706_v60 = vadd.f32 %v1184_v57, %v1176_v56 }
 0xd38   :  { %7621 = vtanh.f32 %v8706_v60 }
 0xd42   :  { %v7622_v62 = vpop.eup %7621 }
 0xd43   :  { %1189 = vrot.lane.b32.xlu0 %v7622_v62, %s8125_s5 }
 0xdb5   :  { %v1190_v63 = vpop.permute.xlu0 %1189 }
 0xdb6   :  { %v1192_v2 = vmul.f32 %v7620_v51, %v1190_v63 }
 0xdb8   :  { %v1193_v3 = vpack.c.bf16 %v1192_v2, %v1192_v2 }
 0xdba   :  { %1199 = vrot.lane.b32.xlu1 %v1193_v3, %s8136_s3 }
 0xe2c   :  { %v8713_v38 = vpop.permute.xlu1 %1199 }
 0xe2d   :  { %6885 = vmatmul.mubr.msk.bf16.vlgmr.msra.gmra.mrb[12].mxu0 %vm450_vm4, %v8713_v38 }
 0xe2e   :  { %6910 = vmatprep.mubr.msk.bf16.mxu0 %vm8134_vm0, %v8133_v0  ;;  %6909 = vmatpush3.bf16.msra.mxu0 %v7464_v32 }
 0xe2f   :  { %6914 = vmatprep.subr.bf16.mxu0 %v8133_v0 }
 0xf00   :  { %v1250_v8 = vpop.f32.mrb[12].mxu0 }
 0xf01   :  { %v8725_v11 = vadd.f32 %v8722_v7, %v1250_v8  ;;  %v6886_v13 = vpop.f32.mrb[13].mxu0 }
 0xf02   :  { %v1253_v14 = vpop.f32.mrb[14].mxu0 }
 0xf03   :  { %v6887_v15 = vpop.f32.mrb[15].mxu0  ;;  %v1257_v16 = vsel %vm1256_vm10, %v8725_v11, -inf }
 0xf04   :  { %1258 = vmax.xlane.f32.xlu0 %v1257_v16  ;;  %v7467_v16 = vld [vmem:[%s10027_s6] sm:$0xff]  }
 0xf91   :  { %v8757_v4 = vpop.xlane.xlu0 %1258 }
 0xf92   :  { %vm1271_vm11 = vcmp.eq.f32.partialorder %v8725_v11, %v8757_v4 }
 0xf93   :  { %v1272_v28 = vsel %vm1271_vm11, %v8456_v6, 128.0 }
 0xf94   :  { %v1273_v30 = vsel %vm1256_vm10, %v1272_v28, inf }
 0xf95   :  { %1274 = vmin.xlane.f32.xlu1 %v1273_v30 }
0x1022   :  { %v1275_v33 = vpop.xlane.xlu1 %1274 }
0x1023   :  { %vm1276_vm12 = vcmp.eq.f32.partialorder %v1275_v33, 2.0 }
0x1024   :  { %v8769_v36 = vsel %vm1276_vm12, 1.0, %v8133_v0 }
0x1025   :  { %vm1280_vm13 = vcmp.ne.f32.partialorder %v8769_v36, 0.0 }
0x1026   :  { %v1281_v37 = vsel %vm1280_vm13, 2.0, %v1275_v33 }
0x1027   :  { %vm1282_vm14 = vcmp.eq.f32.partialorder %v8456_v6, %v1281_v37 }
0x1028   :  { %vm6347_vm15 = vmpackc.low %vm1282_vm14, %vm1282_vm14 }
0x1029   :  { %6905 = vmatmul.mubr.msk.bf16.vlgmr.msra.gmra.mrb[24].mxu1 %vm6347_vm15, %v8135_v12 }
0x102a   :  { %6942 = vmatprep.mubr.msk.bf16.mxu1 %vm8134_vm0, %v8133_v0  ;;  %6939 = vmatpush3.bf16.msra.mxu1 %v7468_v17 }
0x102b   :  { %6940 = vmatprep.subr.bf16.mxu1 %v8133_v0 }
0x10fc   :  { %v1384_v39 = vpop.f32.mrb[24].mxu1 }
0x10fd   :  { %v1390_v40 = vmax.f32 %v1384_v39, 0.0  ;;  %v6906_v46 = vpop.f32.mrb[25].mxu1 }
0x10fe   :  { %v1387_v45 = vpop.f32.mrb[26].mxu1 }
0x10ff   :  { %v1391_v49 = vpack.c.bf16 %v1390_v40, %v1390_v40  ;;  %v6907_v51 = vpop.f32.mrb[27].mxu1 }
0x1101   :  { %6911 = vmatmul.mubr.msk.bf16.vlgmr.msra.gmra.mrb[16].mxu0 %vm388_vm3, %v1391_v49 }
0x1102   :  { %6915 = vmatpush3.bf16.msra.mxu0 %v7465_v47  ;;  %6918 = vmatprep.mubr.msk.bf16.mxu0 %vm8134_vm0, %v8133_v0 }
0x1103   :  { %6916 = vmatprep.subr.bf16.mxu0 %v8133_v0 }
0x1106   :  { %6917 = vmatpush3.bf16.msra.mxu0 %v7466_v52 }
0x1107   :  { %6922 = vmatprep.subr.bf16.mxu0 %v8133_v0 }
0x110d   :  { %6919 = vmatmul.mubr.msk.bf16.vlgmr.msra.gmra.mrb[16].mxu0 %vm450_vm4, %v8523_v48 }
0x110e   :  { %6926 = vmatprep.mubr.msk.bf16.mxu0 %vm8134_vm0, %v8133_v0  ;;  %6923 = vmatpush3.bf16.msra.mxu0 %v7467_v16 }
0x110f   :  { %6924 = vmatprep.subr.bf16.mxu0 %v8133_v0 }
0x1112   :  { %6925 = vmatpush3.bf16.msra.mxu0 %v7469_v19 }
0x1113   :  { %6930 = vmatprep.subr.bf16.mxu0 %v8133_v0 }
0x11e0   :  { %v1494_v55 = vpop.f32.mrb[16].mxu0 }
0x11e1   :  { %v7379_v56 = vadd.f32 %v1494_v55, %v8501_v24  ;;  %v6920_v57 = vpop.f32.mrb[17].mxu0 }
0x11e2   :  { %v1497_v23 = vpop.f32.mrb[18].mxu0 }
0x11e3   :  { %7623 = vtanh.f32 %v7379_v56  ;;  %v6921_v61 = vpop.f32.mrb[19].mxu0  ;;  %v6354_v63 = vmul.f32 -1.442695, %v7379_v56 }
0x11e5   :  { %7625 = vpow2.f32 %v6354_v63 }
0x11ed   :  { %v7624_v62 = vpop.eup %7623 }
0x11ee   :  { %1510 = vrot.lane.b32.xlu0 %v7624_v62, %s8125_s5 }
0x11ef   :  { %v7626_v2 = vpop.eup %7625 }
0x11f0   :  { %v1504_v3 = vadd.f32 1.0, %v7626_v2 }
0x11f2   :  { %7627 = vrcp.f32 %v1504_v3 }
0x11fc   :  { %v7628_v8 = vpop.eup %7627 }
0x11fd   :  { %v1508_v14 = vmul.f32 %v7628_v8, %v8510_v41  ;;  %v7470_v41 = vld [vmem:[%s9989_s12 + $0x8] sm:$0xff]  }
0x11fe   :  { %6941 = vmatpush3.bf16.msra.mxu1 %v7470_v41 }
0x11ff   :  { %6954 = vmatprep.subr.bf16.mxu1 %v8133_v0 }
0x1260   :  { %v1511_v48 = vpop.permute.xlu0 %1510 }
0x1261   :  { %v1513_v13 = vmul.f32 %v7628_v8, %v1511_v48 }
0x1263   :  { %1515 = vrot.lane.b32.xlu1 %v1513_v13, %s8136_s3 }
0x12d5   :  { %v1516_v24 = vpop.permute.xlu1 %1515 }
0x12d6   :  { %v8795_v15 = vadd.f32 %v1516_v24, %v1508_v14 }
0x12d8   :  { %7629 = vtanh.f32 %v8795_v15 }
0x12e2   :  { %v7630_v21 = vpop.eup %7629 }
0x12e3   :  { %1521 = vrot.lane.b32.xlu0 %v7630_v21, %s8125_s5 }
0x1355   :  { %v1522_v25 = vpop.permute.xlu0 %1521 }
0x1356   :  { %v1524_v22 = vmul.f32 %v7628_v8, %v1522_v25 }
0x1358   :  { %v1525_v26 = vpack.c.bf16 %v1524_v22, %v1524_v22 }
0x135a   :  { %1531 = vrot.lane.b32.xlu1 %v1525_v26, %s8136_s3 }
0x13cc   :  { %v8816_v27 = vpop.permute.xlu1 %1531 }
0x13cd   :  { %6927 = vmatmul.mubr.msk.bf16.vlgmr.msra.gmra.mrb[20].mxu0 %vm450_vm4, %v8816_v27  ;;  %6943 = vmatmul.mubr.msk.bf16.vlgmr.msra.gmra.mrb[28].mxu1 %vm450_vm4, %v8816_v27 }
0x13ce   :  { %6934 = vmatprep.mubr.msk.bf16.mxu0 %vm8134_vm0, %v8133_v0  ;;  %6958 = vmatprep.mubr.msk.bf16.mxu1 %vm8134_vm0, %v8133_v0 }
0x14a0   :  { %v1582_v28 = vpop.f32.mrb[20].mxu0  ;;  %v8826_v30 = vpop.f32.mrb[28].mxu1 }
0x14a1   :  { %v1583_v31 = vadd.f32 %v8530_v53, %v1582_v28  ;;  %v6928_v32 = vpop.f32.mrb[21].mxu0  ;;  %v6944_v33 = vpop.f32.mrb[29].mxu1  ;;  %v7471_v28 = vld [vmem:[%s9990_s13] sm:$0xff]  }
0x14a2   :  { %v1585_v37 = vpop.f32.mrb[22].mxu0  ;;  %v1818_v39 = vpop.f32.mrb[30].mxu1  ;;  %6931 = vmatpush3.bf16.msra.mxu0 %v7471_v28  ;;  %v7473_v32 = vld [vmem:[%s9990_s13 + $0x8] sm:$0xff]  }
0x14a3   :  { %v1595_v40 = vrot.slane %v1583_v31, %v8532_v54  ;;  %v6929_v46 = vpop.f32.mrb[23].mxu0  ;;  %v6945_v45 = vpop.f32.mrb[31].mxu1  ;;  %v7472_v31 = vld [vmem:[%s9994_s17] sm:$0xff]   ;;  %6932 = vmatprep.subr.bf16.mxu0 %v8133_v0  ;;  %v7474_v33 = vld [vmem:[%s9994_s17 + $0x8] sm:$0xff]  }
0x14a4   :  { %6955 = vmatpush3.bf16.msra.mxu1 %v7472_v31 }
0x14a5   :  { %v1596_v47 = vcombine.high %v1595_v40, %v1595_v40  ;;  %v1603_v49 = vrot.slane %v1595_v40, %v8532_v54  ;;  %6956 = vmatprep.subr.bf16.mxu1 %v8133_v0 }
0x14a6   :  { %6933 = vmatpush3.bf16.msra.mxu0 %v7473_v32 }
0x14a7   :  { %v1610_v51 = vrot.slane %v1596_v47, %v8532_v54  ;;  %v1616_v52 = vrot.slane %v1603_v49, %v8535_v59  ;;  %6946 = vmatprep.subr.bf16.mxu0 %v8133_v0 }
0x14a8   :  { %6957 = vmatpush3.bf16.msra.mxu1 %v7474_v33 }
0x14a9   :  { %v1620_v55 = vrot.slane %v1610_v51, %v8535_v59  ;;  %v1623_v56 = vadd.f32 %v1616_v52, %v8542_v1  ;;  %6970 = vmatprep.subr.bf16.mxu1 %v8133_v0 }
0x14ab   :  { %v1624_v53 = vadd.f32 %v1620_v55, %v8549_v5  ;;  %7631 = vtanh.f32 %v1623_v56 }
0x14ad   :  { %7633 = vtanh.f32 %v1624_v53 }
0x14b5   :  { %v7632_v57 = vpop.eup %7631 }
0x14b6   :  { %v1634_v23 = vmul.f32 %v7632_v57, %v8554_v10 }
0x14b7   :  { %v7634_v61 = vpop.eup %7633 }
0x14b8   :  { %v1636_v62 = vsel %vm450_vm4, %v1634_v23, 0.0  ;;  %v1635_v63 = vmul.f32 %v7634_v61, %v8554_v10 }
0x14b9   :  { %1637 = vadd.xlane.f32.xlu0 %v1636_v62 }
0x14ba   :  { %v1639_v2 = vsel %vm450_vm4, %v1635_v63, 0.0 }
0x14bb   :  { %1640 = vadd.xlane.f32.xlu1 %v1639_v2 }
0x1546   :  { %v1638_v3 = vpop.xlane.xlu0 %1637 }
0x1547   :  { %v1647_v1 = vrot.slane %v1638_v3, %v8561_v18 }
0x1548   :  { %v1641_v8 = vpop.xlane.xlu1 %1640 }
0x1549   :  { %v1651_v5 = vrot.slane %v1641_v8, %v8561_v18 }
0x154b   :  { %v1652_v48 = vsel %vm651_vm5, %v1651_v5, %v1647_v1 }
0x154c   :  { %v1654_v13 = vsel %vm640_vm6, %v1652_v48, -1e+09 }
0x154d   :  { %v1655_v14 = vsel %vm228_vm7, %v1654_v13, -inf }
0x154e   :  { %1656 = vmax.xlane.f32.xlu0 %v1655_v14 }
0x15db   :  { %v1657_v24 = vpop.xlane.xlu0 %1656 }
0x15dc   :  { %v1658_v10 = vsub.f32 %v1654_v13, %v1657_v24  ;;  %v7475_v13 = vld [vmem:[%s9997_s20] sm:$0xff]   ;;  %v7476_v24 = vld [vmem:[%s9997_s20 + $0x8] sm:$0xff]  }
0x15de   :  { %v1659_v16 = vmul.f32 1.442695, %v1658_v10 }
0x15e0   :  { %7635 = vpow2.f32 %v1659_v16 }
0x15ea   :  { %v7636_v17 = vpop.eup %7635 }
0x15eb   :  { %v1661_v19 = vsel %vm228_vm7, %v7636_v17, 0.0 }
0x15ec   :  { %1662 = vadd.xlane.f32.xlu0 %v1661_v19 }
0x1679   :  { %v1663_v41 = vpop.xlane.xlu0 %1662 }
0x167a   :  { %7637 = vrcp.f32 %v1663_v41 }
0x1684   :  { %v7638_v21 = vpop.eup %7637 }
0x1685   :  { %v1665_v25 = vmul.f32 %v7638_v21, %v7636_v17 }
0x1687   :  { %v1676_v22 = vrot.slane %v1665_v25, %v8573_v34  ;;  %v1669_v26 = vrot.slane %v1665_v25, %v8535_v59 }
0x1689   :  { %1678 = vbcast.lane.b32.xlu0 %v1676_v22, 256  ;;  %1671 = vbcast.lane.b32.xlu1 %v1669_v26, 256 }
0x16fb   :  { %v1679_v37 = vpop.permute.xlu0 %1678  ;;  %v1672_v39 = vpop.permute.xlu1 %1671 }
0x16fc   :  { %v1683_v40 = vmul.f32 %v1679_v37, %v8588_v43  ;;  %v1682_v46 = vmul.f32 %v1672_v39, %v8593_v44 }
0x16fe   :  { %v1691_v45 = vsel %vm450_vm4, %v1683_v40, 0.0  ;;  %v1684_v47 = vsel %vm450_vm4, %v1682_v46, 0.0 }
0x16ff   :  { %v1692_v49 = vrot.slane %v1691_v45, 4  ;;  %v1685_v51 = vrot.slane %v1684_v47, 4 }
0x1701   :  { %v1693_v52 = vadd.f32 %v1692_v49, %v1691_v45  ;;  %v1686_v55 = vadd.f32 %v1685_v51, %v1684_v47 }
0x1703   :  { %v1694_v56 = vrot.slane %v1693_v52, 2  ;;  %v1687_v53 = vrot.slane %v1686_v55, 2 }
0x1705   :  { %v1695_v57 = vadd.f32 %v1694_v56, %v1693_v52  ;;  %v1688_v23 = vadd.f32 %v1687_v53, %v1686_v55 }
0x1707   :  { %v1696_v61 = vrot.slane %v1695_v57, 1  ;;  %v1689_v62 = vrot.slane %v1688_v23, 1 }
0x1709   :  { %v1697_v63 = vadd.f32 %v1696_v61, %v1695_v57  ;;  %v1690_v2 = vadd.f32 %v1689_v62, %v1688_v23 }
0x170b   :  { %v1703_v3 = vpack.c.bf16 %v1697_v63, %v1697_v63  ;;  %v1702_v8 = vpack.c.bf16 %v1690_v2, %v1690_v2 }
0x170d   :  { %v1711_v1 = vunpack.c.l.b16 %v1703_v3  ;;  %v1710_v5 = vunpack.c.l.b16 %v1702_v8 }
0x170f   :  { %v1712_v48 = vsel %vm651_vm5, %v1711_v1, %v1710_v5 }
0x1710   :  { %v1713_v14 = vpack.c.b16 %v1712_v48, %v1712_v48 }
0x1712   :  { %6935 = vmatmul.mubr.msk.bf16.vlgmr.msra.gmra.mrb[24].mxu0 %vm450_vm4, %v1713_v14  ;;  %6959 = vmatmul.mubr.msk.bf16.vlgmr.msra.gmra.mrb[32].mxu1 %vm450_vm4, %v1713_v14 }
0x1713   :  { %6971 = vmatpush3.bf16.msra.mxu1 %v7475_v13  ;;  %6974 = vmatprep.mubr.msk.bf16.mxu1 %vm8134_vm0, %v8133_v0 }
0x1714   :  { %6972 = vmatprep.subr.bf16.mxu1 %v8133_v0  ;;  %6950 = vmatprep.mubr.msk.bf16.mxu0 %vm8134_vm0, %v8133_v0 }
0x1717   :  { %6973 = vmatpush3.bf16.msra.mxu1 %v7476_v24 }
0x1718   :  { %6986 = vmatprep.subr.bf16.mxu1 %v8133_v0 }
0x171a   :  { %6975 = vmatmul.mubr.msk.bf16.vlgmr.msra.gmra.mrb[36].mxu1 %vm450_vm4, %v8713_v38 }
0x171b   :  { %7002 = vmatprep.mubr.msk.bf16.mxu1 %vm8134_vm0, %v8133_v0 }
0x17e5   :  { %v1763_v10 = vpop.f32.mrb[24].mxu0  ;;  %v8888_v16 = vpop.f32.mrb[32].mxu1 }
0x17e6   :  { %v1816_v17 = vadd.f32 %v8826_v30, %v1763_v10  ;;  %v6936_v19 = vpop.f32.mrb[25].mxu0  ;;  %v6960_v41 = vpop.f32.mrb[33].mxu1  ;;  %v7477_v10 = vld [vmem:[#allocation17] sm:$0xff]  }
0x17e7   :  { %v1766_v21 = vpop.f32.mrb[26].mxu0  ;;  %v2050_v25 = vpop.f32.mrb[34].mxu1  ;;  %6947 = vmatpush3.bf16.msra.mxu0 %v7477_v10 }
0x17e8   :  { %v1821_v22 = vadd.f32 %v8628_v29, %v1816_v17  ;;  %v6937_v26 = vpop.f32.mrb[27].mxu0  ;;  %v6961_v28 = vpop.f32.mrb[35].mxu1  ;;  %6948 = vmatprep.subr.bf16.mxu0 %v8133_v0  ;;  %v7478_v17 = vld [vmem:[#allocation17 + $0x8] sm:$0xff]  }
0x17ea   :  { %v1829_v31 = vrot.slane %v1821_v22, %v8532_v54 }
0x17eb   :  { %6949 = vmatpush3.bf16.msra.mxu0 %v7478_v17 }
0x17ec   :  { %v1830_v32 = vcombine.high %v1829_v31, %v1829_v31  ;;  %v1837_v38 = vrot.slane %v1829_v31, %v8532_v54  ;;  %6962 = vmatprep.subr.bf16.mxu0 %v8133_v0 }
0x17ed   :  { %v8894_v33 = vpop.f32.mrb[36].mxu1 }
0x17ee   :  { %v1844_v37 = vrot.slane %v1830_v32, %v8532_v54  ;;  %v1850_v39 = vrot.slane %v1837_v38, %v8535_v59  ;;  %v6976_v30 = vpop.f32.mrb[37].mxu1 }
0x17ef   :  { %v2163_v40 = vpop.f32.mrb[38].mxu1 }
0x17f0   :  { %v1854_v46 = vrot.slane %v1844_v37, %v8535_v59  ;;  %v1857_v45 = vadd.f32 %v1850_v39, %v8636_v42  ;;  %v6977_v29 = vpop.f32.mrb[39].mxu1 }
0x17f2   :  { %v1858_v47 = vadd.f32 %v1854_v46, %v8645_v50  ;;  %7639 = vtanh.f32 %v1857_v45 }
0x17f4   :  { %7641 = vtanh.f32 %v1858_v47 }
0x17fc   :  { %v7640_v49 = vpop.eup %7639 }
0x17fd   :  { %v1868_v51 = vmul.f32 %v7640_v49, %v8650_v58 }
0x17fe   :  { %v7642_v52 = vpop.eup %7641 }
0x17ff   :  { %v1870_v55 = vsel %vm450_vm4, %v1868_v51, 0.0  ;;  %v1869_v56 = vmul.f32 %v7642_v52, %v8650_v58 }
0x1800   :  { %1871 = vadd.xlane.f32.xlu1 %v1870_v55  ;;  %v7479_v55 = vld [vmem:[#allocation19] sm:$0xff]  }
0x1801   :  { %v1873_v53 = vsel %vm450_vm4, %v1869_v56, 0.0 }
0x1802   :  { %1874 = vadd.xlane.f32.xlu0 %v1873_v53  ;;  %v7480_v53 = vld [vmem:[#allocation19 + $0x8] sm:$0xff]  }
0x188d   :  { %v1872_v57 = vpop.xlane.xlu1 %1871 }
0x188e   :  { %v1881_v42 = vrot.slane %v1872_v57, %v8561_v18 }
0x188f   :  { %v1875_v23 = vpop.xlane.xlu0 %1874 }
0x1890   :  { %v1885_v50 = vrot.slane %v1875_v23, %v8561_v18 }
0x1892   :  { %v1886_v61 = vsel %vm651_vm5, %v1885_v50, %v1881_v42 }
0x1893   :  { %v1888_v62 = vsel %vm876_vm9, %v1886_v61, -1e+09 }
0x1894   :  { %v1889_v63 = vsel %vm228_vm7, %v1888_v62, -inf }
0x1895   :  { %1890 = vmax.xlane.f32.xlu1 %v1889_v63 }
0x1922   :  { %v1891_v2 = vpop.xlane.xlu1 %1890 }
0x1923   :  { %v1892_v58 = vsub.f32 %v1888_v62, %v1891_v2 }
0x1925   :  { %v1893_v3 = vmul.f32 1.442695, %v1892_v58 }
0x1927   :  { %7643 = vpow2.f32 %v1893_v3 }
0x1931   :  { %v7644_v8 = vpop.eup %7643 }
0x1932   :  { %v1895_v1 = vsel %vm228_vm7, %v7644_v8, 0.0 }
0x1933   :  { %1896 = vadd.xlane.f32.xlu0 %v1895_v1 }
0x19c0   :  { %v1897_v5 = vpop.xlane.xlu0 %1896 }
0x19c1   :  { %7645 = vrcp.f32 %v1897_v5 }
0x19cb   :  { %v7646_v48 = vpop.eup %7645 }
0x19cc   :  { %v1899_v13 = vmul.f32 %v7646_v48, %v7644_v8 }
0x19ce   :  { %v1910_v14 = vrot.slane %v1899_v13, %v8573_v34  ;;  %v1903_v24 = vrot.slane %v1899_v13, %v8535_v59 }
0x19d0   :  { %1912 = vbcast.lane.b32.xlu0 %v1910_v14, 256  ;;  %1905 = vbcast.lane.b32.xlu1 %v1903_v24, 256 }
0x1a42   :  { %v1913_v19 = vpop.permute.xlu0 %1912  ;;  %v1906_v41 = vpop.permute.xlu1 %1905 }
0x1a43   :  { %v1915_v21 = vmul.f32 %v1913_v19, %v8588_v43  ;;  %v1914_v25 = vmul.f32 %v1906_v41, %v8593_v44  ;;  %v7482_v41 = vld [vmem:[#allocation20 + $0x8] sm:$0xff]  }
0x1a45   :  { %v1923_v22 = vsel %vm450_vm4, %v1915_v21, 0.0  ;;  %v1916_v26 = vsel %vm450_vm4, %v1914_v25, 0.0 }
0x1a46   :  { %v1924_v28 = vrot.slane %v1923_v22, 4  ;;  %v1917_v31 = vrot.slane %v1916_v26, 4 }
0x1a48   :  { %v1925_v32 = vadd.f32 %v1924_v28, %v1923_v22  ;;  %v1918_v38 = vadd.f32 %v1917_v31, %v1916_v26 }
0x1a4a   :  { %v1926_v37 = vrot.slane %v1925_v32, 2  ;;  %v1919_v39 = vrot.slane %v1918_v38, 2 }
0x1a4c   :  { %v1927_v30 = vadd.f32 %v1926_v37, %v1925_v32  ;;  %v1920_v40 = vadd.f32 %v1919_v39, %v1918_v38 }
0x1a4e   :  { %v1928_v46 = vrot.slane %v1927_v30, 1  ;;  %v1921_v45 = vrot.slane %v1920_v40, 1 }
0x1a50   :  { %v1929_v29 = vadd.f32 %v1928_v46, %v1927_v30  ;;  %v1922_v47 = vadd.f32 %v1921_v45, %v1920_v40  ;;  %v7483_v30 = vld [vmem:[%s10025_s7] sm:$0xff]   ;;  %v7484_v40 = vld [vmem:[%s10025_s7 + $0x8] sm:$0xff]   ;;  %v7486_v46 = vld [vmem:[%s10025_s7 + $0x18] sm:$0xff]  }
0x1a51   :  { %6987 = vmatpush3.bf16.msra.mxu1 %v7483_v30  ;;  %v7487_v45 = vld [vmem:[%s10025_s7 + $0x20] sm:$0xff]  }
0x1a52   :  { %v1935_v49 = vpack.c.bf16 %v1929_v29, %v1929_v29  ;;  %v1934_v43 = vpack.c.bf16 %v1922_v47, %v1922_v47  ;;  %6988 = vmatprep.subr.bf16.mxu1 %v8133_v0  ;;  %v7488_v29 = vld [vmem:[%s10025_s7 + $0x28] sm:$0xff]  }
0x1a54   :  { %v1943_v51 = vunpack.c.l.b16 %v1935_v49  ;;  %v1942_v44 = vunpack.c.l.b16 %v1934_v43 }
0x1a55   :  { %6989 = vmatpush3.bf16.msra.mxu1 %v7484_v40  ;;  %v9056_v40 = vld [vmem:[#allocation11] ss:$0 sm:$0xff] }
0x1a56   :  { %v1944_v52 = vsel %vm651_vm5, %v1943_v51, %v1942_v44  ;;  %6990 = vmatprep.subr.bf16.mxu1 %v8133_v0  ;;  %v7489_v51 = vld [vmem:[%s10025_s7 + $0x30] sm:$0xff]   ;;  %v7490_v44 = vld [vmem:[%s10025_s7 + $0x38] sm:$0xff]  }
0x1a57   :  { %v1945_v56 = vpack.c.b16 %v1944_v52, %v1944_v52  ;;  %v7491_v52 = vld [vmem:[#allocation10] sm:$0xff]  }
0x1a59   :  { %6951 = vmatmul.mubr.msk.bf16.vlgmr.msra.gmra.mrb[28].mxu0 %vm450_vm4, %v1945_v56 }
0x1a5a   :  { %6963 = vmatpush3.bf16.msra.mxu0 %v7479_v55  ;;  %6966 = vmatprep.mubr.msk.bf16.mxu0 %vm8134_vm0, %v8133_v0 }
0x1a5b   :  { %6964 = vmatprep.subr.bf16.mxu0 %v8133_v0 }
0x1a5e   :  { %6965 = vmatpush3.bf16.msra.mxu0 %v7480_v53 }
0x1a5f   :  { %6978 = vmatprep.subr.bf16.mxu0 %v8133_v0 }
0x1a61   :  { %6967 = vmatmul.mubr.msk.bf16.vlgmr.msra.gmra.mrb[32].mxu0 %vm450_vm4, %v8816_v27 }
0x1a62   :  { %6982 = vmatprep.mubr.msk.bf16.mxu0 %vm8134_vm0, %v8133_v0 }
0x1b2c   :  { %v1995_v57 = vpop.f32.mrb[28].mxu0 }
0x1b2d   :  { %v2048_v23 = vadd.f32 %v8888_v16, %v1995_v57  ;;  %v6952_v42 = vpop.f32.mrb[29].mxu0 }
0x1b2e   :  { %v1998_v50 = vpop.f32.mrb[30].mxu0 }
0x1b2f   :  { %v6953_v61 = vpop.f32.mrb[31].mxu0 }
0x1b34   :  { %v2103_v62 = vpop.f32.mrb[32].mxu0 }
0x1b35   :  { %v2109_v63 = vadd.f32 %v2103_v62, %v2048_v23  ;;  %v6968_v2 = vpop.f32.mrb[33].mxu0 }
0x1b36   :  { %v2106_v58 = vpop.f32.mrb[34].mxu0  ;;  %v7493_v2 = vld [vmem:[%s10026_s19 + $0x8] sm:$0xff]  }
0x1b37   :  { %v2166_v3 = vadd.f32 %v8894_v33, %v2109_v63  ;;  %v6969_v8 = vpop.f32.mrb[35].mxu0 }
0x1b39   :  { %v2167_v1 = vadd.f32 %v8700_v35, %v2166_v3  ;;  %v7481_v35 = vld [vmem:[#allocation20] sm:$0xff]   ;;  %v9017_v3 = vld [vmem:[#allocation8] sm:$0x3] }
0x1b3a   :  { %6979 = vmatpush3.bf16.msra.mxu0 %v7481_v35 }
0x1b3b   :  { %7647 = vtanh.f32 %v2167_v1  ;;  %v6378_v48 = vmul.f32 -1.442695, %v2167_v1  ;;  %6980 = vmatprep.subr.bf16.mxu0 %v8133_v0 }
0x1b3d   :  { %7649 = vpow2.f32 %v6378_v48 }
0x1b3e   :  { %6981 = vmatpush3.bf16.msra.mxu0 %v7482_v41 }
0x1b3f   :  { %7006 = vmatprep.subr.bf16.mxu0 %v8133_v0 }
0x1b45   :  { %v7648_v5 = vpop.eup %7647 }
0x1b46   :  { %2177 = vrot.lane.b32.xlu1 %v7648_v5, %s8125_s5 }
0x1b47   :  { %v7650_v13 = vpop.eup %7649 }
0x1b48   :  { %v2171_v16 = vadd.f32 1.0, %v7650_v13 }
0x1b4a   :  { %7651 = vrcp.f32 %v2171_v16 }
0x1b54   :  { %v7652_v14 = vpop.eup %7651 }
0x1b55   :  { %v2175_v17 = vmul.f32 %v7652_v14, %v8706_v60 }
0x1bb8   :  { %v2178_v24 = vpop.permute.xlu1 %2177 }
0x1bb9   :  { %v2180_v10 = vmul.f32 %v7652_v14, %v2178_v24 }
0x1bbb   :  { %2182 = vrot.lane.b32.xlu1 %v2180_v10, %s8136_s3 }
0x1c2d   :  { %v2183_v33 = vpop.permute.xlu1 %2182 }
0x1c2e   :  { %v8936_v19 = vadd.f32 %v2183_v33, %v2175_v17 }
0x1c30   :  { %7653 = vtanh.f32 %v8936_v19 }
0x1c3a   :  { %v7654_v21 = vpop.eup %7653 }
0x1c3b   :  { %2188 = vrot.lane.b32.xlu0 %v7654_v21, %s8125_s5  ;;  %v7494_v21 = vld [vmem:[%s10027_s6] sm:$0xff]  }
0x1cad   :  { %v2189_v25 = vpop.permute.xlu0 %2188 }
0x1cae   :  { %v2191_v22 = vmul.f32 %v7652_v14, %v2189_v25  ;;  %v7495_v25 = vld [vmem:[%s9989_s12] sm:$0xff]  }
0x1cb0   :  { %v2192_v26 = vpack.c.bf16 %v2191_v22, %v2191_v22  ;;  %v7496_v22 = vld [vmem:[%s10027_s6 + $0x8] sm:$0xff]  }
0x1cb2   :  { %2198 = vrot.lane.b32.xlu1 %v2192_v26, %s8136_s3 }
0x1d24   :  { %v8943_v60 = vpop.permute.xlu1 %2198 }
0x1d25   :  { %6983 = vmatmul.mubr.msk.bf16.vlgmr.msra.gmra.mrb[36].mxu0 %vm450_vm4, %v8943_v60 }
0x1d26   :  { %7008 = vmatprep.mubr.msk.bf16.mxu0 %vm8134_vm0, %v8133_v0  ;;  %7007 = vmatpush3.bf16.msra.mxu0 %v7491_v52 }
0x1d27   :  { %7012 = vmatprep.subr.bf16.mxu0 %v8133_v0 }
0x1df8   :  { %v2249_v28 = vpop.f32.mrb[36].mxu0 }
0x1df9   :  { %v8950_v31 = vadd.f32 %v8722_v7, %v2249_v28  ;;  %v6984_v32 = vpop.f32.mrb[37].mxu0  ;;  %v7485_v7 = vld [vmem:[%s10025_s7 + $0x10] sm:$0xff]  }
0x1dfa   :  { %v2252_v38 = vpop.f32.mrb[38].mxu0  ;;  %6991 = vmatpush3.bf16.msra.mxu1 %v7485_v7 }
0x1dfb   :  { %v6985_v37 = vpop.f32.mrb[39].mxu0  ;;  %v2255_v39 = vsel %vm1256_vm10, %v8950_v31, -inf  ;;  %6992 = vmatprep.subr.bf16.mxu1 %v8133_v0 }
0x1dfc   :  { %2256 = vmax.xlane.f32.xlu0 %v2255_v39 }
0x1dfe   :  { %6993 = vmatpush3.bf16.msra.mxu1 %v7486_v46 }
0x1dff   :  { %6994 = vmatprep.subr.bf16.mxu1 %v8133_v0 }
0x1e02   :  { %6995 = vmatpush3.bf16.msra.mxu1 %v7487_v45 }
0x1e03   :  { %6996 = vmatprep.subr.bf16.mxu1 %v8133_v0 }
0x1e06   :  { %6997 = vmatpush3.bf16.msra.mxu1 %v7488_v29 }
0x1e07   :  { %6998 = vmatprep.subr.bf16.mxu1 %v8133_v0 }
0x1e0a   :  { %6999 = vmatpush3.bf16.msra.mxu1 %v7489_v51 }
0x1e0b   :  { %7000 = vmatprep.subr.bf16.mxu1 %v8133_v0 }
0x1e0e   :  { %7001 = vmatpush3.bf16.msra.mxu1 %v7490_v44 }
0x1e0f   :  { %7036 = vmatprep.subr.bf16.mxu1 %v8133_v0 }
0x1e89   :  { %v8978_v47 = vpop.xlane.xlu0 %2256 }
0x1e8a   :  { %vm2270_vm1 = vcmp.eq.f32.partialorder %v8950_v31, %v8978_v47 }
0x1e8b   :  { %v2271_v49 = vsel %vm2270_vm1, %v8456_v6, 128.0 }
0x1e8c   :  { %v2272_v43 = vsel %vm1256_vm10, %v2271_v49, inf }
0x1e8d   :  { %2273 = vmin.xlane.f32.xlu1 %v2272_v43 }
0x1f1a   :  { %v2274_v55 = vpop.xlane.xlu1 %2273 }
0x1f1b   :  { %vm2275_vm2 = vcmp.eq.f32.partialorder %v2274_v55, 2.0 }
0x1f1c   :  { %v6382_v56 = vsel %vm2275_vm2, 1.0, %v8133_v0 }
0x1f1d   :  { %v8995_v53 = vadd.f32 %v6382_v56, %v8769_v36  ;;  %v7492_v36 = vld [vmem:[%s10026_s19] sm:$0xff]  }
0x1f1e   :  { %v9064_v56 = vld [vmem:[%s9988_s11] sm:$0xff] }
0x1f1f   :  { %vm2279_vm8 = vcmp.ne.f32.partialorder %v8995_v53, 0.0 }
0x1f20   :  { %v2280_v57 = vsel %vm2279_vm8, 2.0, %v2274_v55 }
0x1f21   :  { %vm2281_vm11 = vcmp.eq.f32.partialorder %v8456_v6, %v2280_v57 }
0x1f22   :  { %vm6392_vm12 = vmpackc.low %vm2281_vm11, %vm2281_vm11 }
0x1f23   :  { %7003 = vmatmul.mubr.msk.bf16.vlgmr.msra.gmra.mrb[40].mxu1 %vm6392_vm12, %v8135_v12 }
0x1f24   :  { %7040 = vmatprep.mubr.msk.bf16.mxu1 %vm8134_vm0, %v8133_v0  ;;  %7037 = vmatpush3.bf16.msra.mxu1 %v7495_v25 }
0x1f25   :  { %7038 = vmatprep.subr.bf16.mxu1 %v8133_v0 }
0x1ff6   :  { %v2383_v23 = vpop.f32.mrb[40].mxu1 }
0x1ff7   :  { %v2389_v42 = vmax.f32 %v2383_v23, 0.0  ;;  %v7004_v50 = vpop.f32.mrb[41].mxu1 }
0x1ff8   :  { %v2386_v61 = vpop.f32.mrb[42].mxu1 }
0x1ff9   :  { %v2390_v62 = vpack.c.bf16 %v2389_v42, %v2389_v42  ;;  %v7005_v63 = vpop.f32.mrb[43].mxu1  ;;  %v9071_v42 = vld [vmem:[%s9988_s11 + $0x8] sm:$0xff] }
0x1ffb   :  { %7009 = vmatmul.mubr.msk.bf16.vlgmr.msra.gmra.mrb[40].mxu0 %vm388_vm3, %v2390_v62  ;;  %v9076_v62 = vld [vmem:[#allocation13] ss:$0 sm:$0xff] }
0x1ffc   :  { %7013 = vmatpush3.bf16.msra.mxu0 %v7492_v36  ;;  %7016 = vmatprep.mubr.msk.bf16.mxu0 %vm8134_vm0, %v8133_v0 }
0x1ffd   :  { %7014 = vmatprep.subr.bf16.mxu0 %v8133_v0 }
0x2000   :  { %7015 = vmatpush3.bf16.msra.mxu0 %v7493_v2 }
0x2001   :  { %7020 = vmatprep.subr.bf16.mxu0 %v8133_v0 }
0x2007   :  { %7017 = vmatmul.mubr.msk.bf16.vlgmr.msra.gmra.mrb[40].mxu0 %vm450_vm4, %v8816_v27 }
0x2008   :  { %7024 = vmatprep.mubr.msk.bf16.mxu0 %vm8134_vm0, %v8133_v0  ;;  %7021 = vmatpush3.bf16.msra.mxu0 %v7494_v21 }
0x2009   :  { %7022 = vmatprep.subr.bf16.mxu0 %v8133_v0 }
0x200c   :  { %7023 = vmatpush3.bf16.msra.mxu0 %v7496_v22 }
0x200d   :  { %7028 = vmatprep.subr.bf16.mxu0 %v8133_v0 }
0x20da   :  { %v2493_v58 = vpop.f32.mrb[40].mxu0 }
0x20db   :  { %v7380_v8 = vadd.f32 %v9017_v3, %v2493_v58  ;;  %v7018_v1 = vpop.f32.mrb[41].mxu0 }
0x20dc   :  { %v2496_v5 = vpop.f32.mrb[42].mxu0 }
0x20dd   :  { %7655 = vtanh.f32 %v7380_v8  ;;  %v7019_v48 = vpop.f32.mrb[43].mxu0  ;;  %v6399_v16 = vmul.f32 -1.442695, %v7380_v8 }
0x20df   :  { %7657 = vpow2.f32 %v6399_v16 }
0x20e7   :  { %v7656_v13 = vpop.eup %7655 }
0x20e8   :  { %2509 = vrot.lane.b32.xlu0 %v7656_v13, %s8125_s5 }
0x20e9   :  { %v7658_v14 = vpop.eup %7657 }
0x20ea   :  { %v2503_v24 = vadd.f32 1.0, %v7658_v14 }
0x20ec   :  { %7659 = vrcp.f32 %v2503_v24 }
0x20f6   :  { %v7660_v27 = vpop.eup %7659 }
0x20f7   :  { %v2507_v33 = vmul.f32 %v7660_v27, %v8795_v15  ;;  %v7497_v15 = vld [vmem:[%s9989_s12 + $0x8] sm:$0xff]  }
0x20f8   :  { %7039 = vmatpush3.bf16.msra.mxu1 %v7497_v15 }
0x20f9   :  { %7052 = vmatprep.subr.bf16.mxu1 %v8133_v0 }
0x215a   :  { %v2510_v10 = vpop.permute.xlu0 %2509 }
0x215b   :  { %v2512_v17 = vmul.f32 %v7660_v27, %v2510_v10 }
0x215d   :  { %2514 = vrot.lane.b32.xlu1 %v2512_v17, %s8136_s3 }
0x21cf   :  { %v2515_v35 = vpop.permute.xlu1 %2514 }
0x21d0   :  { %v9023_v41 = vadd.f32 %v2515_v35, %v2507_v33 }
0x21d2   :  { %7661 = vtanh.f32 %v9023_v41 }
0x21dc   :  { %v7662_v26 = vpop.eup %7661 }
0x21dd   :  { %2520 = vrot.lane.b32.xlu0 %v7662_v26, %s8125_s5 }
0x224f   :  { %v2521_v28 = vpop.permute.xlu0 %2520 }
0x2250   :  { %v2523_v32 = vmul.f32 %v7660_v27, %v2521_v28 }
0x2252   :  { %v2524_v38 = vpack.c.bf16 %v2523_v32, %v2523_v32 }
0x2254   :  { %2530 = vrot.lane.b32.xlu1 %v2524_v38, %s8136_s3  ;;  %v7498_v38 = vld [vmem:[%s9990_s13] sm:$0xff]  }
0x22c6   :  { %v9044_v37 = vpop.permute.xlu1 %2530 }
0x22c7   :  { %7025 = vmatmul.mubr.msk.bf16.vlgmr.msra.gmra.mrb[44].mxu0 %vm450_vm4, %v9044_v37  ;;  %7041 = vmatmul.mubr.msk.bf16.vlgmr.msra.gmra.mrb[44].mxu1 %vm450_vm4, %v9044_v37 }
0x22c8   :  { %7032 = vmatprep.mubr.msk.bf16.mxu0 %vm8134_vm0, %v8133_v0  ;;  %7056 = vmatprep.mubr.msk.bf16.mxu1 %vm8134_vm0, %v8133_v0 }
0x22c9   :  { %7029 = vmatpush3.bf16.msra.mxu0 %v7498_v38 }
0x22ca   :  { %7030 = vmatprep.subr.bf16.mxu0 %v8133_v0 }
0x239a   :  { %v2581_v39 = vpop.f32.mrb[44].mxu0  ;;  %v9054_v30 = vpop.f32.mrb[44].mxu1 }
0x239b   :  { %v2582_v7 = vadd.f32 %v9056_v40, %v2581_v39  ;;  %v7026_v46 = vpop.f32.mrb[45].mxu0  ;;  %v7042_v45 = vpop.f32.mrb[45].mxu1  ;;  %v7499_v39 = vld [vmem:[%s9994_s17] sm:$0xff]  }
0x239c   :  { %v2584_v29 = vpop.f32.mrb[46].mxu0  ;;  %v2817_v49 = vpop.f32.mrb[46].mxu1  ;;  %7053 = vmatpush3.bf16.msra.mxu1 %v7499_v39  ;;  %v7501_v46 = vld [vmem:[%s9994_s17 + $0x8] sm:$0xff]  }
0x239d   :  { %v2594_v43 = vrot.slane %v2582_v7, %v8532_v54  ;;  %v7027_v51 = vpop.f32.mrb[47].mxu0  ;;  %v7043_v44 = vpop.f32.mrb[47].mxu1  ;;  %7054 = vmatprep.subr.bf16.mxu1 %v8133_v0  ;;  %v7500_v7 = vld [vmem:[%s9990_s13 + $0x8] sm:$0xff]   ;;  %v9115_v29 = vld [vmem:[%s10028_s8] sm:$0xff] }
0x239e   :  { %7031 = vmatpush3.bf16.msra.mxu0 %v7500_v7  ;;  %v9110_v45 = vld [vmem:[%s10028_s8 + $0x8] sm:$0xff] }
0x239f   :  { %v2595_v52 = vcombine.high %v2594_v43, %v2594_v43  ;;  %v2602_v55 = vrot.slane %v2594_v43, %v8532_v54  ;;  %7044 = vmatprep.subr.bf16.mxu0 %v8133_v0 }
0x23a0   :  { %7055 = vmatpush3.bf16.msra.mxu1 %v7501_v46 }
0x23a1   :  { %v2609_v57 = vrot.slane %v2595_v52, %v8532_v54  ;;  %v2615_v23 = vrot.slane %v2602_v55, %v8535_v59  ;;  %7068 = vmatprep.subr.bf16.mxu1 %v8133_v0 }
0x23a3   :  { %v2619_v50 = vrot.slane %v2609_v57, %v8535_v59  ;;  %v2622_v61 = vadd.f32 %v2615_v23, %v9064_v56 }
0x23a5   :  { %v2623_v36 = vadd.f32 %v2619_v50, %v9071_v42  ;;  %7663 = vtanh.f32 %v2622_v61 }
0x23a7   :  { %7665 = vtanh.f32 %v2623_v36 }
0x23af   :  { %v7664_v63 = vpop.eup %7663 }
0x23b0   :  { %v2633_v2 = vmul.f32 %v7664_v63, %v9076_v62 }
0x23b1   :  { %v7666_v58 = vpop.eup %7665 }
0x23b2   :  { %v2635_v8 = vsel %vm450_vm4, %v2633_v2, 0.0  ;;  %v2634_v1 = vmul.f32 %v7666_v58, %v9076_v62 }
0x23b3   :  { %2636 = vadd.xlane.f32.xlu0 %v2635_v8 }
0x23b4   :  { %v2638_v5 = vsel %vm450_vm4, %v2634_v1, 0.0 }
0x23b5   :  { %2639 = vadd.xlane.f32.xlu1 %v2638_v5 }
0x2440   :  { %v2637_v48 = vpop.xlane.xlu0 %2636 }
0x2441   :  { %v2646_v16 = vrot.slane %v2637_v48, %v8561_v18 }
0x2442   :  { %v2640_v13 = vpop.xlane.xlu1 %2639 }
0x2443   :  { %v2650_v14 = vrot.slane %v2640_v13, %v8561_v18 }
0x2445   :  { %v2651_v24 = vsel %vm651_vm5, %v2650_v14, %v2646_v16 }
0x2446   :  { %v2653_v27 = vsel %vm640_vm6, %v2651_v24, -1e+09 }
0x2447   :  { %v2654_v10 = vsel %vm228_vm7, %v2653_v27, -inf }
0x2448   :  { %2655 = vmax.xlane.f32.xlu0 %v2654_v10  ;;  %v7502_v10 = vld [vmem:[%s9997_s20] sm:$0xff]  }
0x24d5   :  { %v2656_v17 = vpop.xlane.xlu0 %2655 }
0x24d6   :  { %v2657_v33 = vsub.f32 %v2653_v27, %v2656_v17 }
0x24d8   :  { %v2658_v35 = vmul.f32 1.442695, %v2657_v33  ;;  %v7503_v33 = vld [vmem:[%s9997_s20 + $0x8] sm:$0xff]  }
0x24da   :  { %7667 = vpow2.f32 %v2658_v35 }
0x24e4   :  { %v7668_v21 = vpop.eup %7667 }
0x24e5   :  { %v2660_v25 = vsel %vm228_vm7, %v7668_v21, 0.0 }
0x24e6   :  { %2661 = vadd.xlane.f32.xlu0 %v2660_v25 }
0x2573   :  { %v2662_v22 = vpop.xlane.xlu0 %2661 }
0x2574   :  { %7669 = vrcp.f32 %v2662_v22 }
0x257e   :  { %v7670_v15 = vpop.eup %7669 }
0x257f   :  { %v2664_v26 = vmul.f32 %v7670_v15, %v7668_v21 }
0x2581   :  { %v2675_v28 = vrot.slane %v2664_v26, %v8573_v34  ;;  %v2668_v32 = vrot.slane %v2664_v26, %v8535_v59 }
0x2583   :  { %2677 = vbcast.lane.b32.xlu0 %v2675_v28, 256  ;;  %2670 = vbcast.lane.b32.xlu1 %v2668_v32, 256  ;;  %v9143_v32 = vld [vmem:[#allocation14] ss:$0 sm:$0xff] }
0x25f5   :  { %v2678_v49 = vpop.permute.xlu0 %2677  ;;  %v2671_v43 = vpop.permute.xlu1 %2670 }
0x25f6   :  { %v2682_v51 = vmul.f32 %v9110_v45, %v2678_v49  ;;  %v2681_v44 = vmul.f32 %v9115_v29, %v2671_v43  ;;  %v9151_v43 = vld [vmem:[%s9993_s16] sm:$0xff] }
0x25f8   :  { %v2690_v52 = vsel %vm450_vm4, %v2682_v51, 0.0  ;;  %v2683_v55 = vsel %vm450_vm4, %v2681_v44, 0.0 }
0x25f9   :  { %v2691_v57 = vrot.slane %v2690_v52, 4  ;;  %v2684_v23 = vrot.slane %v2683_v55, 4 }
0x25fb   :  { %v2692_v50 = vadd.f32 %v2691_v57, %v2690_v52  ;;  %v2685_v61 = vadd.f32 %v2684_v23, %v2683_v55  ;;  %v9160_v55 = vld [vmem:[%s9993_s16 + $0x8] sm:$0xff] }
0x25fd   :  { %v2693_v36 = vrot.slane %v2692_v50, 2  ;;  %v2686_v63 = vrot.slane %v2685_v61, 2 }
0x25ff   :  { %v2694_v2 = vadd.f32 %v2693_v36, %v2692_v50  ;;  %v2687_v58 = vadd.f32 %v2686_v63, %v2685_v61  ;;  %v9165_v63 = vld [vmem:[#allocation16] ss:$0 sm:$0xff] }
0x2601   :  { %v2695_v8 = vrot.slane %v2694_v2, 1  ;;  %v2688_v1 = vrot.slane %v2687_v58, 1 }
0x2603   :  { %v2696_v5 = vadd.f32 %v2695_v8, %v2694_v2  ;;  %v2689_v48 = vadd.f32 %v2688_v1, %v2687_v58 }
0x2605   :  { %v2702_v13 = vpack.c.bf16 %v2696_v5, %v2696_v5  ;;  %v2701_v16 = vpack.c.bf16 %v2689_v48, %v2689_v48 }
0x2607   :  { %v2710_v14 = vunpack.c.l.b16 %v2702_v13  ;;  %v2709_v24 = vunpack.c.l.b16 %v2701_v16 }
0x2609   :  { %v2711_v27 = vsel %vm651_vm5, %v2710_v14, %v2709_v24 }
0x260a   :  { %v2712_v17 = vpack.c.b16 %v2711_v27, %v2711_v27 }
0x260c   :  { %7033 = vmatmul.mubr.msk.bf16.vlgmr.msra.gmra.mrb[48].mxu0 %vm450_vm4, %v2712_v17  ;;  %7057 = vmatmul.mubr.msk.bf16.vlgmr.msra.gmra.mrb[48].mxu1 %vm450_vm4, %v2712_v17 }
0x260d   :  { %7069 = vmatpush3.bf16.msra.mxu1 %v7502_v10  ;;  %7072 = vmatprep.mubr.msk.bf16.mxu1 %vm8134_vm0, %v8133_v0 }
0x260e   :  { %7070 = vmatprep.subr.bf16.mxu1 %v8133_v0  ;;  %7048 = vmatprep.mubr.msk.bf16.mxu0 %vm8134_vm0, %v8133_v0 }
0x2611   :  { %7071 = vmatpush3.bf16.msra.mxu1 %v7503_v33 }
0x2612   :  { %7084 = vmatprep.subr.bf16.mxu1 %v8133_v0 }
0x2614   :  { %7073 = vmatmul.mubr.msk.bf16.vlgmr.msra.gmra.mrb[52].mxu1 %vm450_vm4, %v8943_v60 }
0x2615   :  { %7100 = vmatprep.mubr.msk.bf16.mxu1 %vm8134_vm0, %v8133_v0 }
0x26df   :  { %v2762_v35 = vpop.f32.mrb[48].mxu0  ;;  %v9140_v21 = vpop.f32.mrb[48].mxu1 }
0x26e0   :  { %v2815_v25 = vadd.f32 %v9054_v30, %v2762_v35  ;;  %v7034_v22 = vpop.f32.mrb[49].mxu0  ;;  %v7058_v15 = vpop.f32.mrb[49].mxu1 }
0x26e1   :  { %v2765_v26 = vpop.f32.mrb[50].mxu0  ;;  %v3049_v28 = vpop.f32.mrb[50].mxu1 }
0x26e2   :  { %v2820_v38 = vadd.f32 %v9143_v32, %v2815_v25  ;;  %v7035_v39 = vpop.f32.mrb[51].mxu0  ;;  %v7059_v7 = vpop.f32.mrb[51].mxu1 }
0x26e4   :  { %v2828_v60 = vrot.slane %v2820_v38, %v8532_v54 }
0x26e6   :  { %v2829_v46 = vcombine.high %v2828_v60, %v2828_v60  ;;  %v2836_v49 = vrot.slane %v2828_v60, %v8532_v54  ;;  %v7504_v60 = vld [vmem:[#allocation17] sm:$0xff]  }
0x26e7   :  { %v9153_v30 = vpop.f32.mrb[52].mxu1  ;;  %7045 = vmatpush3.bf16.msra.mxu0 %v7504_v60 }
0x26e8   :  { %v2843_v51 = vrot.slane %v2829_v46, %v8532_v54  ;;  %v2849_v44 = vrot.slane %v2836_v49, %v8535_v59  ;;  %v7074_v52 = vpop.f32.mrb[53].mxu1  ;;  %7046 = vmatprep.subr.bf16.mxu0 %v8133_v0  ;;  %v7505_v46 = vld [vmem:[#allocation17 + $0x8] sm:$0xff]  }
0x26e9   :  { %v3162_v57 = vpop.f32.mrb[54].mxu1 }
0x26ea   :  { %v2853_v23 = vrot.slane %v2843_v51, %v8535_v59  ;;  %v2856_v50 = vadd.f32 %v2849_v44, %v9151_v43  ;;  %v7075_v61 = vpop.f32.mrb[55].mxu1 }
0x26eb   :  { %7047 = vmatpush3.bf16.msra.mxu0 %v7505_v46 }
0x26ec   :  { %v2857_v36 = vadd.f32 %v2853_v23, %v9160_v55  ;;  %7671 = vtanh.f32 %v2856_v50  ;;  %7060 = vmatprep.subr.bf16.mxu0 %v8133_v0 }
0x26ee   :  { %7673 = vtanh.f32 %v2857_v36 }
0x26f6   :  { %v7672_v2 = vpop.eup %7671 }
0x26f7   :  { %v2867_v58 = vmul.f32 %v7672_v2, %v9165_v63 }
0x26f8   :  { %v7674_v8 = vpop.eup %7673 }
0x26f9   :  { %v2869_v1 = vsel %vm450_vm4, %v2867_v58, 0.0  ;;  %v2868_v5 = vmul.f32 %v7674_v8, %v9165_v63 }
0x26fa   :  { %2870 = vadd.xlane.f32.xlu1 %v2869_v1 }
0x26fb   :  { %v2872_v48 = vsel %vm450_vm4, %v2868_v5, 0.0 }
0x26fc   :  { %2873 = vadd.xlane.f32.xlu0 %v2872_v48 }
0x2787   :  { %v2871_v13 = vpop.xlane.xlu1 %2870 }
0x2788   :  { %v2880_v14 = vrot.slane %v2871_v13, %v8561_v18 }
0x2789   :  { %v2874_v16 = vpop.xlane.xlu0 %2873 }
0x278a   :  { %v2884_v24 = vrot.slane %v2874_v16, %v8561_v18 }
0x278c   :  { %v2885_v27 = vsel %vm651_vm5, %v2884_v24, %v2880_v14 }
0x278d   :  { %v2887_v10 = vsel %vm876_vm9, %v2885_v27, -1e+09 }
0x278e   :  { %v2888_v17 = vsel %vm228_vm7, %v2887_v10, -inf }
0x278f   :  { %2889 = vmax.xlane.f32.xlu1 %v2888_v17 }
0x281c   :  { %v2890_v33 = vpop.xlane.xlu1 %2889 }
0x281d   :  { %v2891_v35 = vsub.f32 %v2887_v10, %v2890_v33 }
0x281f   :  { %v2892_v25 = vmul.f32 1.442695, %v2891_v35  ;;  %v7506_v35 = vld [vmem:[#allocation19] sm:$0xff]  }
0x2821   :  { %7675 = vpow2.f32 %v2892_v25 }
0x282b   :  { %v7676_v22 = vpop.eup %7675 }
0x282c   :  { %v2894_v15 = vsel %vm228_vm7, %v7676_v22, 0.0 }
0x282d   :  { %2895 = vadd.xlane.f32.xlu0 %v2894_v15 }
0x28ba   :  { %v2896_v26 = vpop.xlane.xlu0 %2895 }
0x28bb   :  { %7677 = vrcp.f32 %v2896_v26 }
0x28c5   :  { %v7678_v28 = vpop.eup %7677 }
0x28c6   :  { %v2898_v38 = vmul.f32 %v7678_v28, %v7676_v22  ;;  %v7507_v22 = vld [vmem:[#allocation19 + $0x8] sm:$0xff]  }
0x28c8   :  { %v2909_v39 = vrot.slane %v2898_v38, %v8573_v34  ;;  %v2902_v7 = vrot.slane %v2898_v38, %v8535_v59 }
0x28ca   :  { %2911 = vbcast.lane.b32.xlu0 %v2909_v39, 256  ;;  %2904 = vbcast.lane.b32.xlu1 %v2902_v7, 256 }
0x293c   :  { %v2912_v49 = vpop.permute.xlu0 %2911  ;;  %v2905_v51 = vpop.permute.xlu1 %2904 }
0x293d   :  { %v2914_v44 = vmul.f32 %v2912_v49, %v9110_v45  ;;  %v2913_v52 = vmul.f32 %v2905_v51, %v9115_v29 }
0x293f   :  { %v2922_v57 = vsel %vm450_vm4, %v2914_v44, 0.0  ;;  %v2915_v23 = vsel %vm450_vm4, %v2913_v52, 0.0  ;;  %v9201_v52 = vld [vmem:[%s9998_s21] ss:$0 sm:$0xff] }
0x2940   :  { %v2923_v50 = vrot.slane %v2922_v57, 4  ;;  %v2916_v61 = vrot.slane %v2915_v23, 4 }
0x2942   :  { %v2924_v36 = vadd.f32 %v2923_v50, %v2922_v57  ;;  %v2917_v2 = vadd.f32 %v2916_v61, %v2915_v23 }
0x2944   :  { %v2925_v58 = vrot.slane %v2924_v36, 2  ;;  %v2918_v8 = vrot.slane %v2917_v2, 2 }
0x2946   :  { %v2926_v1 = vadd.f32 %v2925_v58, %v2924_v36  ;;  %v2919_v5 = vadd.f32 %v2918_v8, %v2917_v2 }
0x2948   :  { %v2927_v48 = vrot.slane %v2926_v1, 1  ;;  %v2920_v13 = vrot.slane %v2919_v5, 1 }
0x294a   :  { %v2928_v16 = vadd.f32 %v2927_v48, %v2926_v1  ;;  %v2921_v14 = vadd.f32 %v2920_v13, %v2919_v5  ;;  %v7508_v5 = vld [vmem:[#allocation20] sm:$0xff]   ;;  %v7509_v48 = vld [vmem:[#allocation20 + $0x8] sm:$0xff]  }
0x294c   :  { %v2934_v24 = vpack.c.bf16 %v2928_v16, %v2928_v16  ;;  %v2933_v27 = vpack.c.bf16 %v2921_v14, %v2921_v14 }
0x294e   :  { %v2942_v10 = vunpack.c.l.b16 %v2934_v24  ;;  %v2941_v17 = vunpack.c.l.b16 %v2933_v27 }
0x2950   :  { %v2943_v33 = vsel %vm651_vm5, %v2942_v10, %v2941_v17  ;;  %v9223_v10 = vld [vmem:[%s10000_s23] ss:$0 sm:$0xff] }
0x2951   :  { %v2944_v25 = vpack.c.b16 %v2943_v33, %v2943_v33 }
0x2953   :  { %7049 = vmatmul.mubr.msk.bf16.vlgmr.msra.gmra.mrb[52].mxu0 %vm450_vm4, %v2944_v25 }
0x2954   :  { %7061 = vmatpush3.bf16.msra.mxu0 %v7506_v35  ;;  %7064 = vmatprep.mubr.msk.bf16.mxu0 %vm8134_vm0, %v8133_v0 }
0x2955   :  { %7062 = vmatprep.subr.bf16.mxu0 %v8133_v0 }
0x2958   :  { %7063 = vmatpush3.bf16.msra.mxu0 %v7507_v22 }
0x2959   :  { %7076 = vmatprep.subr.bf16.mxu0 %v8133_v0 }
0x295b   :  { %7065 = vmatmul.mubr.msk.bf16.vlgmr.msra.gmra.mrb[56].mxu0 %vm450_vm4, %v9044_v37 }
0x295c   :  { %7080 = vmatprep.mubr.msk.bf16.mxu0 %vm8134_vm0, %v8133_v0  ;;  %7077 = vmatpush3.bf16.msra.mxu0 %v7508_v5 }
0x295d   :  { %7078 = vmatprep.subr.bf16.mxu0 %v8133_v0 }
0x2960   :  { %7079 = vmatpush3.bf16.msra.mxu0 %v7509_v48  ;;  %v7520_v48 = vld [vmem:[%s10026_s19 + $0x8] sm:$0xff]  }
0x2961   :  { %7104 = vmatprep.subr.bf16.mxu0 %v8133_v0 }
0x2a26   :  { %v2994_v15 = vpop.f32.mrb[52].mxu0 }
0x2a27   :  { %v3047_v26 = vadd.f32 %v9140_v21, %v2994_v15  ;;  %v7050_v28 = vpop.f32.mrb[53].mxu0  ;;  %v7510_v15 = vld [vmem:[%s10025_s7] sm:$0xff]  }
0x2a28   :  { %v2997_v38 = vpop.f32.mrb[54].mxu0  ;;  %7085 = vmatpush3.bf16.msra.mxu1 %v7510_v15  ;;  %v7512_v28 = vld [vmem:[%s10025_s7 + $0x10] sm:$0xff]  }
0x2a29   :  { %v7051_v39 = vpop.f32.mrb[55].mxu0  ;;  %7086 = vmatprep.subr.bf16.mxu1 %v8133_v0  ;;  %v7513_v38 = vld [vmem:[%s10025_s7 + $0x18] sm:$0xff]  }
0x2a2a   :  { %v7514_v39 = vld [vmem:[%s10025_s7 + $0x20] sm:$0xff]  }
0x2a2e   :  { %v3102_v7 = vpop.f32.mrb[56].mxu0 }
0x2a2f   :  { %v3108_v60 = vadd.f32 %v3102_v7, %v3047_v26  ;;  %v7066_v46 = vpop.f32.mrb[57].mxu0  ;;  %v7511_v26 = vld [vmem:[%s10025_s7 + $0x8] sm:$0xff]  }
0x2a30   :  { %v3105_v49 = vpop.f32.mrb[58].mxu0  ;;  %7087 = vmatpush3.bf16.msra.mxu1 %v7511_v26  ;;  %v7515_v7 = vld [vmem:[%s10025_s7 + $0x28] sm:$0xff]  }
0x2a31   :  { %v3165_v51 = vadd.f32 %v9153_v30, %v3108_v60  ;;  %v7067_v44 = vpop.f32.mrb[59].mxu0  ;;  %7088 = vmatprep.subr.bf16.mxu1 %v8133_v0 }
0x2a32   :  { %v7517_v44 = vld [vmem:[%s10025_s7 + $0x38] sm:$0xff]  }
0x2a33   :  { %v3166_v57 = vadd.f32 %v9201_v52, %v3165_v51  ;;  %v7516_v51 = vld [vmem:[%s10025_s7 + $0x30] sm:$0xff]  }
0x2a34   :  { %7089 = vmatpush3.bf16.msra.mxu1 %v7512_v28 }
0x2a35   :  { %7679 = vtanh.f32 %v3166_v57  ;;  %v6423_v21 = vmul.f32 -1.442695, %v3166_v57  ;;  %7090 = vmatprep.subr.bf16.mxu1 %v8133_v0  ;;  %v7518_v57 = vld [vmem:[#allocation10] sm:$0xff]  }
0x2a37   :  { %7681 = vpow2.f32 %v6423_v21 }
0x2a38   :  { %7091 = vmatpush3.bf16.msra.mxu1 %v7513_v38 }
0x2a39   :  { %7092 = vmatprep.subr.bf16.mxu1 %v8133_v0 }
0x2a3c   :  { %7093 = vmatpush3.bf16.msra.mxu1 %v7514_v39  ;;  %v7521_v39 = vld [vmem:[%s10027_s6] sm:$0xff]  }
0x2a3d   :  { %7094 = vmatprep.subr.bf16.mxu1 %v8133_v0 }
0x2a3f   :  { %v7680_v23 = vpop.eup %7679 }
0x2a40   :  { %3176 = vrot.lane.b32.xlu1 %v7680_v23, %s8125_s5  ;;  %7095 = vmatpush3.bf16.msra.mxu1 %v7515_v7  ;;  %v7522_v7 = vld [vmem:[%s9989_s12] sm:$0xff]  }
0x2a41   :  { %v7682_v50 = vpop.eup %7681  ;;  %7096 = vmatprep.subr.bf16.mxu1 %v8133_v0 }
0x2a42   :  { %v3170_v61 = vadd.f32 1.0, %v7682_v50 }
0x2a44   :  { %7683 = vrcp.f32 %v3170_v61  ;;  %7097 = vmatpush3.bf16.msra.mxu1 %v7516_v51 }
0x2a45   :  { %7098 = vmatprep.subr.bf16.mxu1 %v8133_v0 }
0x2a48   :  { %7099 = vmatpush3.bf16.msra.mxu1 %v7517_v44 }
0x2a49   :  { %7134 = vmatprep.subr.bf16.mxu1 %v8133_v0 }
0x2a4e   :  { %v7684_v36 = vpop.eup %7683 }
0x2a4f   :  { %v3174_v58 = vmul.f32 %v7684_v36, %v8936_v19 }
0x2ab2   :  { %v3177_v2 = vpop.permute.xlu1 %3176 }
0x2ab3   :  { %v3179_v30 = vmul.f32 %v7684_v36, %v3177_v2 }
0x2ab5   :  { %3181 = vrot.lane.b32.xlu1 %v3179_v30, %s8136_s3 }
0x2b27   :  { %v3182_v8 = vpop.permute.xlu1 %3181 }
0x2b28   :  { %v9207_v1 = vadd.f32 %v3182_v8, %v3174_v58 }
0x2b2a   :  { %7685 = vtanh.f32 %v9207_v1 }
0x2b34   :  { %v7686_v13 = vpop.eup %7685 }
0x2b35   :  { %3187 = vrot.lane.b32.xlu0 %v7686_v13, %s8125_s5 }
0x2ba7   :  { %v3188_v16 = vpop.permute.xlu0 %3187 }
0x2ba8   :  { %v3190_v14 = vmul.f32 %v7684_v36, %v3188_v16 }
0x2baa   :  { %v3191_v24 = vpack.c.bf16 %v3190_v14, %v3190_v14 }
0x2bac   :  { %3197 = vrot.lane.b32.xlu1 %v3191_v24, %s8136_s3 }
0x2c1e   :  { %v9214_v19 = vpop.permute.xlu1 %3197 }
0x2c1f   :  { %7081 = vmatmul.mubr.msk.bf16.vlgmr.msra.gmra.mrb[60].mxu0 %vm450_vm4, %v9214_v19 }
0x2c20   :  { %7106 = vmatprep.mubr.msk.bf16.mxu0 %vm8134_vm0, %v8133_v0  ;;  %7105 = vmatpush3.bf16.msra.mxu0 %v7518_v57 }
0x2c21   :  { %7110 = vmatprep.subr.bf16.mxu0 %v8133_v0 }
0x2cf2   :  { %v3248_v27 = vpop.f32.mrb[60].mxu0 }
0x2cf3   :  { %v9226_v17 = vadd.f32 %v9223_v10, %v3248_v27  ;;  %v7082_v33 = vpop.f32.mrb[61].mxu0 }
0x2cf4   :  { %v3251_v35 = vpop.f32.mrb[62].mxu0 }
0x2cf5   :  { %v7083_v25 = vpop.f32.mrb[63].mxu0  ;;  %v3254_v22 = vsel %vm1256_vm10, %v9226_v17, -inf }
0x2cf6   :  { %3255 = vmax.xlane.f32.xlu0 %v3254_v22 }
0x2d83   :  { %v9254_v60 = vpop.xlane.xlu0 %3255 }
0x2d84   :  { %vm3269_vm13 = vcmp.eq.f32.partialorder %v9226_v17, %v9254_v60 }
0x2d85   :  { %v3270_v46 = vsel %vm3269_vm13, %v8456_v6, 128.0 }
0x2d86   :  { %v3271_v49 = vsel %vm1256_vm10, %v3270_v46, inf  ;;  %v7523_v46 = vld [vmem:[%s10027_s6 + $0x8] sm:$0xff]  }
0x2d87   :  { %3272 = vmin.xlane.f32.xlu1 %v3271_v49 }
0x2e14   :  { %v3273_v23 = vpop.xlane.xlu1 %3272 }
0x2e15   :  { %vm3274_vm14 = vcmp.eq.f32.partialorder %v3273_v23, 2.0 }
0x2e16   :  { %v6427_v21 = vsel %vm3274_vm14, 1.0, %v8133_v0 }
0x2e17   :  { %v9271_v50 = vadd.f32 %v6427_v21, %v8995_v53  ;;  %v7519_v53 = vld [vmem:[%s10026_s19] sm:$0xff]  }
0x2e19   :  { %vm3278_vm15 = vcmp.ne.f32.partialorder %v9271_v50, 0.0 }
0x2e1a   :  { %v3279_v61 = vsel %vm3278_vm15, 2.0, %v3273_v23 }
0x2e1b   :  { %vm3280_vm1 = vcmp.eq.f32.partialorder %v8456_v6, %v3279_v61 }
0x2e1c   :  { %vm6437_vm2 = vmpackc.low %vm3280_vm1, %vm3280_vm1 }
0x2e1d   :  { %7101 = vmatmul.mubr.msk.bf16.vlgmr.msra.gmra.mrb[56].mxu1 %vm6437_vm2, %v8135_v12 }
0x2e1e   :  { %7138 = vmatprep.mubr.msk.bf16.mxu1 %vm8134_vm0, %v8133_v0  ;;  %7135 = vmatpush3.bf16.msra.mxu1 %v7522_v7 }
0x2e1f   :  { %7136 = vmatprep.subr.bf16.mxu1 %v8133_v0 }
0x2ef0   :  { %v3382_v36 = vpop.f32.mrb[56].mxu1 }
0x2ef1   :  { %v3388_v2 = vmax.f32 %v3382_v36, 0.0  ;;  %v7102_v30 = vpop.f32.mrb[57].mxu1 }
0x2ef2   :  { %v3385_v58 = vpop.f32.mrb[58].mxu1 }
0x2ef3   :  { %v3389_v8 = vpack.c.bf16 %v3388_v2, %v3388_v2  ;;  %v7103_v5 = vpop.f32.mrb[59].mxu1 }
0x2ef5   :  { %7107 = vmatmul.mubr.msk.bf16.vlgmr.msra.gmra.mrb[64].mxu0 %vm388_vm3, %v3389_v8 }
0x2ef6   :  { %7111 = vmatpush3.bf16.msra.mxu0 %v7519_v53  ;;  %7114 = vmatprep.mubr.msk.bf16.mxu0 %vm8134_vm0, %v8133_v0 }
0x2ef7   :  { %7112 = vmatprep.subr.bf16.mxu0 %v8133_v0 }
0x2efa   :  { %7113 = vmatpush3.bf16.msra.mxu0 %v7520_v48 }
0x2efb   :  { %7118 = vmatprep.subr.bf16.mxu0 %v8133_v0 }
0x2f01   :  { %7115 = vmatmul.mubr.msk.bf16.vlgmr.msra.gmra.mrb[64].mxu0 %vm450_vm4, %v9044_v37 }
0x2f02   :  { %7122 = vmatprep.mubr.msk.bf16.mxu0 %vm8134_vm0, %v8133_v0  ;;  %7119 = vmatpush3.bf16.msra.mxu0 %v7521_v39 }
0x2f03   :  { %7120 = vmatprep.subr.bf16.mxu0 %v8133_v0 }
0x2f06   :  { %7121 = vmatpush3.bf16.msra.mxu0 %v7523_v46 }
0x2f07   :  { %7126 = vmatprep.subr.bf16.mxu0 %v8133_v0 }
0x2fd4   :  { %v3492_v13 = vpop.f32.mrb[64].mxu0 }
0x2fd5   :  { %v7381_v16 = vadd.f32 %v9017_v3, %v3492_v13  ;;  %v7116_v14 = vpop.f32.mrb[65].mxu0 }
0x2fd6   :  { %v3495_v24 = vpop.f32.mrb[66].mxu0 }
0x2fd7   :  { %7687 = vtanh.f32 %v7381_v16  ;;  %v7117_v27 = vpop.f32.mrb[67].mxu0  ;;  %v6444_v35 = vmul.f32 -1.442695, %v7381_v16 }
0x2fd9   :  { %7689 = vpow2.f32 %v6444_v35 }
0x2fe1   :  { %v7688_v33 = vpop.eup %7687 }
0x2fe2   :  { %3508 = vrot.lane.b32.xlu0 %v7688_v33, %s8125_s5 }
0x2fe3   :  { %v7690_v25 = vpop.eup %7689 }
0x2fe4   :  { %v3502_v22 = vadd.f32 1.0, %v7690_v25 }
0x2fe6   :  { %7691 = vrcp.f32 %v3502_v22 }
0x2ff0   :  { %v7692_v15 = vpop.eup %7691 }
0x2ff1   :  { %v3506_v28 = vmul.f32 %v7692_v15, %v9023_v41  ;;  %v7524_v41 = vld [vmem:[%s9989_s12 + $0x8] sm:$0xff]  }
0x2ff2   :  { %7137 = vmatpush3.bf16.msra.mxu1 %v7524_v41 }
0x2ff3   :  { %7150 = vmatprep.subr.bf16.mxu1 %v8133_v0 }
0x3054   :  { %v3509_v37 = vpop.permute.xlu0 %3508 }
0x3055   :  { %v3511_v26 = vmul.f32 %v7692_v15, %v3509_v37 }
0x3057   :  { %3513 = vrot.lane.b32.xlu1 %v3511_v26, %s8136_s3 }
0x30c9   :  { %v3514_v3 = vpop.permute.xlu1 %3513 }
0x30ca   :  { %v9297_v38 = vadd.f32 %v3514_v3, %v3506_v28 }
0x30cc   :  { %7693 = vtanh.f32 %v9297_v38 }
0x30d6   :  { %v7694_v49 = vpop.eup %7693 }
0x30d7   :  { %3519 = vrot.lane.b32.xlu0 %v7694_v49, %s8125_s5 }
0x3149   :  { %v3520_v51 = vpop.permute.xlu0 %3519 }
0x314a   :  { %v3522_v44 = vmul.f32 %v7692_v15, %v3520_v51 }
0x314c   :  { %v3523_v57 = vpack.c.bf16 %v3522_v44, %v3522_v44 }
0x314e   :  { %3529 = vrot.lane.b32.xlu1 %v3523_v57, %s8136_s3 }
0x31c0   :  { %v9318_v23 = vpop.permute.xlu1 %3529 }
0x31c1   :  { %7123 = vmatmul.mubr.msk.bf16.vlgmr.msra.gmra.mrb[68].mxu0 %vm450_vm4, %v9318_v23  ;;  %7139 = vmatmul.mubr.msk.bf16.vlgmr.msra.gmra.mrb[60].mxu1 %vm450_vm4, %v9318_v23 }
0x31c2   :  { %7130 = vmatprep.mubr.msk.bf16.mxu0 %vm8134_vm0, %v8133_v0  ;;  %7154 = vmatprep.mubr.msk.bf16.mxu1 %vm8134_vm0, %v8133_v0 }
0x3294   :  { %v3580_v21 = vpop.f32.mrb[68].mxu0  ;;  %v9328_v61 = vpop.f32.mrb[60].mxu1 }
0x3295   :  { %v3581_v36 = vadd.f32 %v9056_v40, %v3580_v21  ;;  %v7124_v2 = vpop.f32.mrb[69].mxu0  ;;  %v7140_v30 = vpop.f32.mrb[61].mxu1 }
0x3296   :  { %v3583_v58 = vpop.f32.mrb[70].mxu0  ;;  %v3816_v53 = vpop.f32.mrb[62].mxu1 }
0x3297   :  { %v3593_v8 = vrot.slane %v3581_v36, %v8532_v54  ;;  %v7125_v5 = vpop.f32.mrb[71].mxu0  ;;  %v7141_v48 = vpop.f32.mrb[63].mxu1  ;;  %v7525_v58 = vld [vmem:[%s9990_s13] sm:$0xff]  }
0x3298   :  { %v7526_v53 = vld [vmem:[%s9994_s17] sm:$0xff]   ;;  %7127 = vmatpush3.bf16.msra.mxu0 %v7525_v58  ;;  %v7528_v5 = vld [vmem:[%s9994_s17 + $0x8] sm:$0xff]  }
0x3299   :  { %v3594_v13 = vcombine.high %v3593_v8, %v3593_v8  ;;  %v3601_v16 = vrot.slane %v3593_v8, %v8532_v54  ;;  %7151 = vmatpush3.bf16.msra.mxu1 %v7526_v53  ;;  %7128 = vmatprep.subr.bf16.mxu0 %v8133_v0  ;;  %v7527_v8 = vld [vmem:[%s9990_s13 + $0x8] sm:$0xff]  }
0x329a   :  { %7152 = vmatprep.subr.bf16.mxu1 %v8133_v0 }
0x329b   :  { %v3608_v14 = vrot.slane %v3594_v13, %v8532_v54  ;;  %v3614_v24 = vrot.slane %v3601_v16, %v8535_v59 }
0x329c   :  { %7129 = vmatpush3.bf16.msra.mxu0 %v7527_v8 }
0x329d   :  { %v3618_v27 = vrot.slane %v3608_v14, %v8535_v59  ;;  %v3621_v33 = vadd.f32 %v3614_v24, %v9064_v56  ;;  %7153 = vmatpush3.bf16.msra.mxu1 %v7528_v5  ;;  %7142 = vmatprep.subr.bf16.mxu0 %v8133_v0 }
0x329e   :  { %7166 = vmatprep.subr.bf16.mxu1 %v8133_v0 }
0x329f   :  { %v3622_v40 = vadd.f32 %v3618_v27, %v9071_v42  ;;  %7695 = vtanh.f32 %v3621_v33 }
0x32a1   :  { %7697 = vtanh.f32 %v3622_v40 }
0x32a9   :  { %v7696_v35 = vpop.eup %7695 }
0x32aa   :  { %v3632_v25 = vmul.f32 %v7696_v35, %v9076_v62 }
0x32ab   :  { %v7698_v22 = vpop.eup %7697 }
0x32ac   :  { %v3634_v15 = vsel %vm450_vm4, %v3632_v25, 0.0  ;;  %v3633_v37 = vmul.f32 %v7698_v22, %v9076_v62 }
0x32ad   :  { %3635 = vadd.xlane.f32.xlu0 %v3634_v15 }
0x32ae   :  { %v3637_v26 = vsel %vm450_vm4, %v3633_v37, 0.0 }
0x32af   :  { %3638 = vadd.xlane.f32.xlu1 %v3637_v26 }
0x333a   :  { %v3636_v28 = vpop.xlane.xlu0 %3635 }
0x333b   :  { %v3645_v56 = vrot.slane %v3636_v28, %v8561_v18 }
0x333c   :  { %v3639_v3 = vpop.xlane.xlu1 %3638 }
0x333d   :  { %v3649_v42 = vrot.slane %v3639_v3, %v8561_v18 }
0x333f   :  { %v3650_v39 = vsel %vm651_vm5, %v3649_v42, %v3645_v56 }
0x3340   :  { %v3652_v7 = vsel %vm640_vm6, %v3650_v39, -1e+09 }
0x3341   :  { %v3653_v46 = vsel %vm228_vm7, %v3652_v7, -inf }
0x3342   :  { %3654 = vmax.xlane.f32.xlu0 %v3653_v46 }
0x33cf   :  { %v3655_v41 = vpop.xlane.xlu0 %3654 }
0x33d0   :  { %v3656_v62 = vsub.f32 %v3652_v7, %v3655_v41 }
0x33d2   :  { %v3657_v49 = vmul.f32 1.442695, %v3656_v62 }
0x33d4   :  { %7699 = vpow2.f32 %v3657_v49  ;;  %v7529_v49 = vld [vmem:[%s9997_s20] sm:$0xff]  }
0x33de   :  { %v7700_v51 = vpop.eup %7699 }
0x33df   :  { %v3659_v44 = vsel %vm228_vm7, %v7700_v51, 0.0 }
0x33e0   :  { %3660 = vadd.xlane.f32.xlu0 %v3659_v44  ;;  %v7530_v44 = vld [vmem:[%s9997_s20 + $0x8] sm:$0xff]  }
0x346d   :  { %v3661_v57 = vpop.xlane.xlu0 %3660 }
0x346e   :  { %7701 = vrcp.f32 %v3661_v57 }
0x3478   :  { %v7702_v21 = vpop.eup %7701 }
0x3479   :  { %v3663_v36 = vmul.f32 %v7702_v21, %v7700_v51 }
0x347b   :  { %v3674_v2 = vrot.slane %v3663_v36, %v8573_v34  ;;  %v3667_v30 = vrot.slane %v3663_v36, %v8535_v59 }
0x347d   :  { %3676 = vbcast.lane.b32.xlu0 %v3674_v2, 256  ;;  %3669 = vbcast.lane.b32.xlu1 %v3667_v30, 256 }
0x34ef   :  { %v3677_v48 = vpop.permute.xlu0 %3676  ;;  %v3670_v13 = vpop.permute.xlu1 %3669 }
0x34f0   :  { %v3681_v16 = vmul.f32 %v3677_v48, %v9110_v45  ;;  %v3680_v14 = vmul.f32 %v3670_v13, %v9115_v29 }
0x34f2   :  { %v3689_v24 = vsel %vm450_vm4, %v3681_v16, 0.0  ;;  %v3682_v27 = vsel %vm450_vm4, %v3680_v14, 0.0 }
0x34f3   :  { %v3690_v33 = vrot.slane %v3689_v24, 4  ;;  %v3683_v40 = vrot.slane %v3682_v27, 4 }
0x34f5   :  { %v3691_v35 = vadd.f32 %v3690_v33, %v3689_v24  ;;  %v3684_v25 = vadd.f32 %v3683_v40, %v3682_v27 }
0x34f7   :  { %v3692_v22 = vrot.slane %v3691_v35, 2  ;;  %v3685_v15 = vrot.slane %v3684_v25, 2 }
0x34f9   :  { %v3693_v37 = vadd.f32 %v3692_v22, %v3691_v35  ;;  %v3686_v26 = vadd.f32 %v3685_v15, %v3684_v25 }
0x34fb   :  { %v3694_v28 = vrot.slane %v3693_v37, 1  ;;  %v3687_v3 = vrot.slane %v3686_v26, 1 }
0x34fd   :  { %v3695_v56 = vadd.f32 %v3694_v28, %v3693_v37  ;;  %v3688_v42 = vadd.f32 %v3687_v3, %v3686_v26 }
0x34ff   :  { %v3701_v39 = vpack.c.bf16 %v3695_v56, %v3695_v56  ;;  %v3700_v7 = vpack.c.bf16 %v3688_v42, %v3688_v42 }
0x3501   :  { %v3709_v46 = vunpack.c.l.b16 %v3701_v39  ;;  %v3708_v41 = vunpack.c.l.b16 %v3700_v7 }
0x3503   :  { %v3710_v62 = vsel %vm651_vm5, %v3709_v46, %v3708_v41 }
0x3504   :  { %v3711_v51 = vpack.c.b16 %v3710_v62, %v3710_v62 }
0x3506   :  { %7131 = vmatmul.mubr.msk.bf16.vlgmr.msra.gmra.mrb[72].mxu0 %vm450_vm4, %v3711_v51  ;;  %7155 = vmatmul.mubr.msk.bf16.vlgmr.msra.gmra.mrb[64].mxu1 %vm450_vm4, %v3711_v51 }
0x3507   :  { %7167 = vmatpush3.bf16.msra.mxu1 %v7529_v49  ;;  %7170 = vmatprep.mubr.msk.bf16.mxu1 %vm8134_vm0, %v8133_v0 }
0x3508   :  { %7168 = vmatprep.subr.bf16.mxu1 %v8133_v0  ;;  %7146 = vmatprep.mubr.msk.bf16.mxu0 %vm8134_vm0, %v8133_v0 }
0x350b   :  { %7169 = vmatpush3.bf16.msra.mxu1 %v7530_v44 }
0x350c   :  { %7182 = vmatprep.subr.bf16.mxu1 %v8133_v0 }
0x350e   :  { %7171 = vmatmul.mubr.msk.bf16.vlgmr.msra.gmra.mrb[68].mxu1 %vm450_vm4, %v9214_v19 }
0x350f   :  { %7198 = vmatprep.mubr.msk.bf16.mxu1 %vm8134_vm0, %v8133_v0 }
0x35d9   :  { %v3761_v57 = vpop.f32.mrb[72].mxu0  ;;  %v9390_v21 = vpop.f32.mrb[64].mxu1 }
0x35da   :  { %v3814_v36 = vadd.f32 %v9328_v61, %v3761_v57  ;;  %v7132_v2 = vpop.f32.mrb[73].mxu0  ;;  %v7156_v30 = vpop.f32.mrb[65].mxu1 }
0x35db   :  { %v3764_v58 = vpop.f32.mrb[74].mxu0  ;;  %v4048_v53 = vpop.f32.mrb[66].mxu1 }
0x35dc   :  { %v3819_v8 = vadd.f32 %v9143_v32, %v3814_v36  ;;  %v7133_v5 = vpop.f32.mrb[75].mxu0  ;;  %v7157_v48 = vpop.f32.mrb[67].mxu1  ;;  %v7531_v58 = vld [vmem:[#allocation17] sm:$0xff]   ;;  %v7532_v53 = vld [vmem:[#allocation17 + $0x8] sm:$0xff]  }
0x35dd   :  { %7143 = vmatpush3.bf16.msra.mxu0 %v7531_v58 }
0x35de   :  { %v3827_v13 = vrot.slane %v3819_v8, %v8532_v54  ;;  %7144 = vmatprep.subr.bf16.mxu0 %v8133_v0 }
0x35e0   :  { %v3828_v16 = vcombine.high %v3827_v13, %v3827_v13  ;;  %v3835_v19 = vrot.slane %v3827_v13, %v8532_v54 }
0x35e1   :  { %v9396_v14 = vpop.f32.mrb[68].mxu1  ;;  %7145 = vmatpush3.bf16.msra.mxu0 %v7532_v53 }
0x35e2   :  { %v3842_v24 = vrot.slane %v3828_v16, %v8532_v54  ;;  %v3848_v27 = vrot.slane %v3835_v19, %v8535_v59  ;;  %v7172_v61 = vpop.f32.mrb[69].mxu1  ;;  %7158 = vmatprep.subr.bf16.mxu0 %v8133_v0 }
0x35e3   :  { %v4161_v33 = vpop.f32.mrb[70].mxu1 }
0x35e4   :  { %v3852_v40 = vrot.slane %v3842_v24, %v8535_v59  ;;  %v3855_v35 = vadd.f32 %v3848_v27, %v9151_v43  ;;  %v7173_v32 = vpop.f32.mrb[71].mxu1 }
0x35e6   :  { %v3856_v25 = vadd.f32 %v3852_v40, %v9160_v55  ;;  %7703 = vtanh.f32 %v3855_v35 }
0x35e8   :  { %7705 = vtanh.f32 %v3856_v25 }
0x35f0   :  { %v7704_v22 = vpop.eup %7703 }
0x35f1   :  { %v3866_v15 = vmul.f32 %v7704_v22, %v9165_v63 }
0x35f2   :  { %v7706_v37 = vpop.eup %7705 }
0x35f3   :  { %v3868_v26 = vsel %vm450_vm4, %v3866_v15, 0.0  ;;  %v3867_v28 = vmul.f32 %v7706_v37, %v9165_v63 }
0x35f4   :  { %3869 = vadd.xlane.f32.xlu1 %v3868_v26 }
0x35f5   :  { %v3871_v3 = vsel %vm450_vm4, %v3867_v28, 0.0 }
0x35f6   :  { %3872 = vadd.xlane.f32.xlu0 %v3871_v3 }
0x3681   :  { %v3870_v56 = vpop.xlane.xlu1 %3869 }
0x3682   :  { %v3879_v43 = vrot.slane %v3870_v56, %v8561_v18 }
0x3683   :  { %v3873_v42 = vpop.xlane.xlu0 %3872 }
0x3684   :  { %v3883_v55 = vrot.slane %v3873_v42, %v8561_v18  ;;  %v7533_v42 = vld [vmem:[#allocation19] sm:$0xff]  }
0x3686   :  { %v3884_v39 = vsel %vm651_vm5, %v3883_v55, %v3879_v43  ;;  %v7534_v55 = vld [vmem:[#allocation19 + $0x8] sm:$0xff]  }
0x3687   :  { %v3886_v7 = vsel %vm876_vm9, %v3884_v39, -1e+09 }
0x3688   :  { %v3887_v46 = vsel %vm228_vm7, %v3886_v7, -inf }
0x3689   :  { %3888 = vmax.xlane.f32.xlu1 %v3887_v46 }
0x3716   :  { %v3889_v41 = vpop.xlane.xlu1 %3888 }
0x3717   :  { %v3890_v63 = vsub.f32 %v3886_v7, %v3889_v41 }
0x3719   :  { %v3891_v62 = vmul.f32 1.442695, %v3890_v63 }
0x371b   :  { %7707 = vpow2.f32 %v3891_v62 }
0x3725   :  { %v7708_v49 = vpop.eup %7707 }
0x3726   :  { %v3893_v51 = vsel %vm228_vm7, %v7708_v49, 0.0 }
0x3727   :  { %3894 = vadd.xlane.f32.xlu0 %v3893_v51 }
0x37b4   :  { %v3895_v44 = vpop.xlane.xlu0 %3894 }
0x37b5   :  { %7709 = vrcp.f32 %v3895_v44 }
0x37bf   :  { %v7710_v57 = vpop.eup %7709 }
0x37c0   :  { %v3897_v36 = vmul.f32 %v7710_v57, %v7708_v49 }
0x37c2   :  { %v3908_v2 = vrot.slane %v3897_v36, %v8573_v34  ;;  %v3901_v30 = vrot.slane %v3897_v36, %v8535_v59 }
0x37c4   :  { %3910 = vbcast.lane.b32.xlu0 %v3908_v2, 256  ;;  %3903 = vbcast.lane.b32.xlu1 %v3901_v30, 256 }
0x3836   :  { %v3911_v8 = vpop.permute.xlu0 %3910  ;;  %v3904_v5 = vpop.permute.xlu1 %3903 }
0x3837   :  { %v3913_v48 = vmul.f32 %v3911_v8, %v9110_v45  ;;  %v3912_v13 = vmul.f32 %v3904_v5, %v9115_v29 }
0x3839   :  { %v3921_v16 = vsel %vm450_vm4, %v3913_v48, 0.0  ;;  %v3914_v19 = vsel %vm450_vm4, %v3912_v13, 0.0 }
0x383a   :  { %v3922_v24 = vrot.slane %v3921_v16, 4  ;;  %v3915_v27 = vrot.slane %v3914_v19, 4 }
0x383c   :  { %v3923_v61 = vadd.f32 %v3922_v24, %v3921_v16  ;;  %v3916_v33 = vadd.f32 %v3915_v27, %v3914_v19  ;;  %v7536_v19 = vld [vmem:[#allocation20 + $0x8] sm:$0xff]  }
0x383e   :  { %v3924_v40 = vrot.slane %v3923_v61, 2  ;;  %v3917_v35 = vrot.slane %v3916_v33, 2 }
0x3840   :  { %v3925_v32 = vadd.f32 %v3924_v40, %v3923_v61  ;;  %v3918_v25 = vadd.f32 %v3917_v35, %v3916_v33 }
0x3842   :  { %v3926_v22 = vrot.slane %v3925_v32, 1  ;;  %v3919_v15 = vrot.slane %v3918_v25, 1 }
0x3844   :  { %v3927_v37 = vadd.f32 %v3926_v22, %v3925_v32  ;;  %v3920_v26 = vadd.f32 %v3919_v15, %v3918_v25 }
0x3846   :  { %v3933_v28 = vpack.c.bf16 %v3927_v37, %v3927_v37  ;;  %v3932_v45 = vpack.c.bf16 %v3920_v26, %v3920_v26  ;;  %v7537_v37 = vld [vmem:[%s10025_s7] sm:$0xff]   ;;  %v7538_v26 = vld [vmem:[%s10025_s7 + $0x8] sm:$0xff]  }
0x3847   :  { %7183 = vmatpush3.bf16.msra.mxu1 %v7537_v37 }
0x3848   :  { %v3941_v3 = vunpack.c.l.b16 %v3933_v28  ;;  %v3940_v29 = vunpack.c.l.b16 %v3932_v45  ;;  %7184 = vmatprep.subr.bf16.mxu1 %v8133_v0  ;;  %v7540_v28 = vld [vmem:[%s10025_s7 + $0x18] sm:$0xff]   ;;  %v7541_v45 = vld [vmem:[%s10025_s7 + $0x20] sm:$0xff]  }
0x384a   :  { %v3942_v56 = vsel %vm651_vm5, %v3941_v3, %v3940_v29  ;;  %v7542_v3 = vld [vmem:[%s10025_s7 + $0x28] sm:$0xff]  }
0x384b   :  { %v3943_v43 = vpack.c.b16 %v3942_v56, %v3942_v56  ;;  %7185 = vmatpush3.bf16.msra.mxu1 %v7538_v26 }
0x384c   :  { %7186 = vmatprep.subr.bf16.mxu1 %v8133_v0 }
0x384d   :  { %7147 = vmatmul.mubr.msk.bf16.vlgmr.msra.gmra.mrb[76].mxu0 %vm450_vm4, %v3943_v43  ;;  %v7543_v43 = vld [vmem:[%s10025_s7 + $0x30] sm:$0xff]  }
0x384e   :  { %7159 = vmatpush3.bf16.msra.mxu0 %v7533_v42  ;;  %7162 = vmatprep.mubr.msk.bf16.mxu0 %vm8134_vm0, %v8133_v0 }
0x384f   :  { %7160 = vmatprep.subr.bf16.mxu0 %v8133_v0 }
0x3852   :  { %7161 = vmatpush3.bf16.msra.mxu0 %v7534_v55  ;;  %v7544_v55 = vld [vmem:[%s10025_s7 + $0x38] sm:$0xff]  }
0x3853   :  { %7174 = vmatprep.subr.bf16.mxu0 %v8133_v0 }
0x3855   :  { %7163 = vmatmul.mubr.msk.bf16.vlgmr.msra.gmra.mrb[80].mxu0 %vm450_vm4, %v9318_v23 }
0x3856   :  { %7178 = vmatprep.mubr.msk.bf16.mxu0 %vm8134_vm0, %v8133_v0 }
0x3920   :  { %v3993_v39 = vpop.f32.mrb[76].mxu0 }
0x3921   :  { %v4046_v7 = vadd.f32 %v9390_v21, %v3993_v39  ;;  %v7148_v46 = vpop.f32.mrb[77].mxu0  ;;  %v7545_v39 = vld [vmem:[#allocation10] sm:$0xff]  }
0x3922   :  { %v3996_v41 = vpop.f32.mrb[78].mxu0 }
0x3923   :  { %v7149_v63 = vpop.f32.mrb[79].mxu0 }
0x3928   :  { %v4101_v62 = vpop.f32.mrb[80].mxu0 }
0x3929   :  { %v4107_v49 = vadd.f32 %v4101_v62, %v4046_v7  ;;  %v7164_v51 = vpop.f32.mrb[81].mxu0 }
0x392a   :  { %v4104_v44 = vpop.f32.mrb[82].mxu0 }
0x392b   :  { %v4164_v57 = vadd.f32 %v9396_v14, %v4107_v49  ;;  %v7165_v36 = vpop.f32.mrb[83].mxu0 }
0x392d   :  { %v4165_v2 = vadd.f32 %v9201_v52, %v4164_v57  ;;  %v7535_v52 = vld [vmem:[#allocation20] sm:$0xff]  }
0x392e   :  { %7175 = vmatpush3.bf16.msra.mxu0 %v7535_v52 }
0x392f   :  { %7711 = vtanh.f32 %v4165_v2  ;;  %v6468_v58 = vmul.f32 -1.442695, %v4165_v2  ;;  %7176 = vmatprep.subr.bf16.mxu0 %v8133_v0  ;;  %v7547_v2 = vld [vmem:[%s10026_s19 + $0x8] sm:$0xff]  }
0x3931   :  { %7713 = vpow2.f32 %v6468_v58  ;;  %v9519_v58 = vld [vmem:[#allocation8] sm:$0x3] }
0x3932   :  { %7177 = vmatpush3.bf16.msra.mxu0 %v7536_v19 }
0x3933   :  { %7202 = vmatprep.subr.bf16.mxu0 %v8133_v0 }
0x3939   :  { %v7712_v30 = vpop.eup %7711 }
0x393a   :  { %4175 = vrot.lane.b32.xlu1 %v7712_v30, %s8125_s5 }
0x393b   :  { %v7714_v53 = vpop.eup %7713 }
0x393c   :  { %v4169_v21 = vadd.f32 1.0, %v7714_v53 }
0x393e   :  { %7715 = vrcp.f32 %v4169_v21 }
0x3948   :  { %v7716_v8 = vpop.eup %7715 }
0x3949   :  { %v4173_v13 = vmul.f32 %v7716_v8, %v9207_v1 }
0x39ac   :  { %v4176_v5 = vpop.permute.xlu1 %4175 }
0x39ad   :  { %v4178_v48 = vmul.f32 %v7716_v8, %v4176_v5 }
0x39af   :  { %4180 = vrot.lane.b32.xlu1 %v4178_v48, %s8136_s3 }
0x3a21   :  { %v4181_v14 = vpop.permute.xlu1 %4180 }
0x3a22   :  { %v9438_v16 = vadd.f32 %v4181_v14, %v4173_v13 }
0x3a24   :  { %7717 = vtanh.f32 %v9438_v16 }
0x3a2e   :  { %v7718_v24 = vpop.eup %7717 }
0x3a2f   :  { %4186 = vrot.lane.b32.xlu0 %v7718_v24, %s8125_s5 }
0x3aa1   :  { %v4187_v27 = vpop.permute.xlu0 %4186 }
0x3aa2   :  { %v4189_v61 = vmul.f32 %v7716_v8, %v4187_v27 }
0x3aa4   :  { %v4190_v33 = vpack.c.bf16 %v4189_v61, %v4189_v61 }
0x3aa6   :  { %4196 = vrot.lane.b32.xlu1 %v4190_v33, %s8136_s3 }
0x3b18   :  { %v9445_v1 = vpop.permute.xlu1 %4196 }
0x3b19   :  { %7179 = vmatmul.mubr.msk.bf16.vlgmr.msra.gmra.mrb[84].mxu0 %vm450_vm4, %v9445_v1 }
0x3b1a   :  { %7204 = vmatprep.mubr.msk.bf16.mxu0 %vm8134_vm0, %v8133_v0  ;;  %7203 = vmatpush3.bf16.msra.mxu0 %v7545_v39 }
0x3b1b   :  { %7208 = vmatprep.subr.bf16.mxu0 %v8133_v0 }
0x3bec   :  { %v4247_v40 = vpop.f32.mrb[84].mxu0 }
0x3bed   :  { %v9452_v35 = vadd.f32 %v9223_v10, %v4247_v40  ;;  %v7180_v32 = vpop.f32.mrb[85].mxu0  ;;  %v7539_v10 = vld [vmem:[%s10025_s7 + $0x10] sm:$0xff]   ;;  %v7548_v40 = vld [vmem:[%s10027_s6] sm:$0xff]  }
0x3bee   :  { %v4250_v25 = vpop.f32.mrb[86].mxu0  ;;  %7187 = vmatpush3.bf16.msra.mxu1 %v7539_v10  ;;  %v7549_v32 = vld [vmem:[%s9989_s12] sm:$0xff]  }
0x3bef   :  { %v7181_v22 = vpop.f32.mrb[87].mxu0  ;;  %v4253_v15 = vsel %vm1256_vm10, %v9452_v35, -inf  ;;  %7188 = vmatprep.subr.bf16.mxu1 %v8133_v0  ;;  %v7550_v25 = vld [vmem:[%s10027_s6 + $0x8] sm:$0xff]  }
0x3bf0   :  { %4254 = vmax.xlane.f32.xlu0 %v4253_v15 }
0x3bf2   :  { %7189 = vmatpush3.bf16.msra.mxu1 %v7540_v28 }
0x3bf3   :  { %7190 = vmatprep.subr.bf16.mxu1 %v8133_v0 }
0x3bf6   :  { %7191 = vmatpush3.bf16.msra.mxu1 %v7541_v45 }
0x3bf7   :  { %7192 = vmatprep.subr.bf16.mxu1 %v8133_v0 }
0x3bfa   :  { %7193 = vmatpush3.bf16.msra.mxu1 %v7542_v3  ;;  %v9558_v3 = vld [vmem:[#allocation11] ss:$0 sm:$0xff] }
0x3bfb   :  { %7194 = vmatprep.subr.bf16.mxu1 %v8133_v0 }
0x3bfe   :  { %7195 = vmatpush3.bf16.msra.mxu1 %v7543_v43 }
0x3bff   :  { %7196 = vmatprep.subr.bf16.mxu1 %v8133_v0 }
0x3c02   :  { %7197 = vmatpush3.bf16.msra.mxu1 %v7544_v55 }
0x3c03   :  { %7232 = vmatprep.subr.bf16.mxu1 %v8133_v0 }
0x3c7d   :  { %v9480_v29 = vpop.xlane.xlu0 %4254 }
0x3c7e   :  { %vm4268_vm8 = vcmp.eq.f32.partialorder %v9452_v35, %v9480_v29 }
0x3c7f   :  { %v4269_v56 = vsel %vm4268_vm8, %v8456_v6, 128.0 }
0x3c80   :  { %v4270_v42 = vsel %vm1256_vm10, %v4269_v56, inf }
0x3c81   :  { %4271 = vmin.xlane.f32.xlu1 %v4270_v42 }
0x3d0e   :  { %v4272_v7 = vpop.xlane.xlu1 %4271 }
0x3d0f   :  { %vm4273_vm11 = vcmp.eq.f32.partialorder %v4272_v7, 2.0 }
0x3d10   :  { %v6472_v46 = vsel %vm4273_vm11, 1.0, %v8133_v0 }
0x3d11   :  { %v9497_v41 = vadd.f32 %v6472_v46, %v9271_v50  ;;  %v7546_v50 = vld [vmem:[%s10026_s19] sm:$0xff]  }
0x3d13   :  { %vm4277_vm12 = vcmp.ne.f32.partialorder %v9497_v41, 0.0 }
0x3d14   :  { %v4278_v63 = vsel %vm4277_vm12, 2.0, %v4272_v7 }
0x3d15   :  { %vm4279_vm13 = vcmp.eq.f32.partialorder %v8456_v6, %v4278_v63 }
0x3d16   :  { %vm6482_vm14 = vmpackc.low %vm4279_vm13, %vm4279_vm13 }
0x3d17   :  { %7199 = vmatmul.mubr.msk.bf16.vlgmr.msra.gmra.mrb[72].mxu1 %vm6482_vm14, %v8135_v12 }
0x3d18   :  { %7236 = vmatprep.mubr.msk.bf16.mxu1 %vm8134_vm0, %v8133_v0  ;;  %7233 = vmatpush3.bf16.msra.mxu1 %v7549_v32 }
0x3d19   :  { %7234 = vmatprep.subr.bf16.mxu1 %v8133_v0 }
0x3dea   :  { %v4381_v62 = vpop.f32.mrb[72].mxu1 }
0x3deb   :  { %v4387_v49 = vmax.f32 %v4381_v62, 0.0  ;;  %v7200_v51 = vpop.f32.mrb[73].mxu1 }
0x3dec   :  { %v4384_v44 = vpop.f32.mrb[74].mxu1  ;;  %v9566_v51 = vld [vmem:[%s9988_s11] sm:$0xff] }
0x3ded   :  { %v4388_v57 = vpack.c.bf16 %v4387_v49, %v4387_v49  ;;  %v7201_v36 = vpop.f32.mrb[75].mxu1 }
0x3def   :  { %7205 = vmatmul.mubr.msk.bf16.vlgmr.msra.gmra.mrb[88].mxu0 %vm388_vm3, %v4388_v57  ;;  %v9573_v57 = vld [vmem:[%s9988_s11 + $0x8] sm:$0xff] }
0x3df0   :  { %7209 = vmatpush3.bf16.msra.mxu0 %v7546_v50  ;;  %7212 = vmatprep.mubr.msk.bf16.mxu0 %vm8134_vm0, %v8133_v0 }
0x3df1   :  { %7210 = vmatprep.subr.bf16.mxu0 %v8133_v0 }
0x3df4   :  { %7211 = vmatpush3.bf16.msra.mxu0 %v7547_v2 }
0x3df5   :  { %7216 = vmatprep.subr.bf16.mxu0 %v8133_v0 }
0x3dfb   :  { %7213 = vmatmul.mubr.msk.bf16.vlgmr.msra.gmra.mrb[88].mxu0 %vm450_vm4, %v9318_v23 }
0x3dfc   :  { %7220 = vmatprep.mubr.msk.bf16.mxu0 %vm8134_vm0, %v8133_v0  ;;  %7217 = vmatpush3.bf16.msra.mxu0 %v7548_v40 }
0x3dfd   :  { %7218 = vmatprep.subr.bf16.mxu0 %v8133_v0 }
0x3e00   :  { %7219 = vmatpush3.bf16.msra.mxu0 %v7550_v25 }
0x3e01   :  { %7224 = vmatprep.subr.bf16.mxu0 %v8133_v0 }
0x3ece   :  { %v4491_v30 = vpop.f32.mrb[88].mxu0 }
0x3ecf   :  { %v7382_v53 = vadd.f32 %v9519_v58, %v4491_v30  ;;  %v7214_v21 = vpop.f32.mrb[89].mxu0 }
0x3ed0   :  { %v4494_v8 = vpop.f32.mrb[90].mxu0 }
0x3ed1   :  { %7719 = vtanh.f32 %v7382_v53  ;;  %v7215_v5 = vpop.f32.mrb[91].mxu0  ;;  %v6489_v13 = vmul.f32 -1.442695, %v7382_v53  ;;  %v9578_v53 = vld [vmem:[#allocation13] ss:$0 sm:$0xff] }
0x3ed3   :  { %7721 = vpow2.f32 %v6489_v13 }
0x3edb   :  { %v7720_v48 = vpop.eup %7719 }
0x3edc   :  { %4507 = vrot.lane.b32.xlu0 %v7720_v48, %s8125_s5 }
0x3edd   :  { %v7722_v14 = vpop.eup %7721 }
0x3ede   :  { %v4501_v52 = vadd.f32 1.0, %v7722_v14 }
0x3ee0   :  { %7723 = vrcp.f32 %v4501_v52 }
0x3eea   :  { %v7724_v23 = vpop.eup %7723 }
0x3eeb   :  { %v4505_v27 = vmul.f32 %v7724_v23, %v9297_v38  ;;  %v7551_v38 = vld [vmem:[%s9989_s12 + $0x8] sm:$0xff]  }
0x3eec   :  { %7235 = vmatpush3.bf16.msra.mxu1 %v7551_v38 }
0x3eed   :  { %7248 = vmatprep.subr.bf16.mxu1 %v8133_v0 }
0x3f4e   :  { %v4508_v19 = vpop.permute.xlu0 %4507 }
0x3f4f   :  { %v4510_v24 = vmul.f32 %v7724_v23, %v4508_v19 }
0x3f51   :  { %4512 = vrot.lane.b32.xlu1 %v4510_v24, %s8136_s3 }
0x3fc3   :  { %v4513_v61 = vpop.permute.xlu1 %4512 }
0x3fc4   :  { %v9525_v33 = vadd.f32 %v4513_v61, %v4505_v27 }
0x3fc6   :  { %7725 = vtanh.f32 %v9525_v33 }
0x3fd0   :  { %v7726_v22 = vpop.eup %7725 }
0x3fd1   :  { %4518 = vrot.lane.b32.xlu0 %v7726_v22, %s8125_s5 }
0x4043   :  { %v4519_v15 = vpop.permute.xlu0 %4518 }
0x4044   :  { %v4521_v37 = vmul.f32 %v7724_v23, %v4519_v15 }
0x4046   :  { %v4522_v26 = vpack.c.bf16 %v4521_v37, %v4521_v37 }
0x4048   :  { %4528 = vrot.lane.b32.xlu1 %v4522_v26, %s8136_s3 }
0x40ba   :  { %v9546_v10 = vpop.permute.xlu1 %4528 }
0x40bb   :  { %7221 = vmatmul.mubr.msk.bf16.vlgmr.msra.gmra.mrb[92].mxu0 %vm450_vm4, %v9546_v10  ;;  %7237 = vmatmul.mubr.msk.bf16.vlgmr.msra.gmra.mrb[76].mxu1 %vm450_vm4, %v9546_v10 }
0x40bc   :  { %7228 = vmatprep.mubr.msk.bf16.mxu0 %vm8134_vm0, %v8133_v0  ;;  %7252 = vmatprep.mubr.msk.bf16.mxu1 %vm8134_vm0, %v8133_v0 }
0x418e   :  { %v4579_v28 = vpop.f32.mrb[92].mxu0  ;;  %v9556_v45 = vpop.f32.mrb[76].mxu1 }
0x418f   :  { %v4580_v56 = vadd.f32 %v9558_v3, %v4579_v28  ;;  %v7222_v42 = vpop.f32.mrb[93].mxu0  ;;  %v7238_v43 = vpop.f32.mrb[77].mxu1 }
0x4190   :  { %v4582_v55 = vpop.f32.mrb[94].mxu0  ;;  %v4815_v39 = vpop.f32.mrb[78].mxu1  ;;  %v7552_v43 = vld [vmem:[%s9990_s13] sm:$0xff]  }
0x4191   :  { %v4592_v7 = vrot.slane %v4580_v56, %v8532_v54  ;;  %v7223_v46 = vpop.f32.mrb[95].mxu0  ;;  %v7239_v63 = vpop.f32.mrb[79].mxu1  ;;  %v7553_v55 = vld [vmem:[%s9994_s17] sm:$0xff]   ;;  %7225 = vmatpush3.bf16.msra.mxu0 %v7552_v43  ;;  %v7554_v39 = vld [vmem:[%s9990_s13 + $0x8] sm:$0xff]  }
0x4192   :  { %7249 = vmatpush3.bf16.msra.mxu1 %v7553_v55  ;;  %7226 = vmatprep.subr.bf16.mxu0 %v8133_v0  ;;  %v9612_v46 = vld [vmem:[%s10028_s8 + $0x8] sm:$0xff]  ;;  %v9617_v63 = vld [vmem:[%s10028_s8] sm:$0xff] }
0x4193   :  { %v4593_v62 = vcombine.high %v4592_v7, %v4592_v7  ;;  %v4600_v49 = vrot.slane %v4592_v7, %v8532_v54  ;;  %7250 = vmatprep.subr.bf16.mxu1 %v8133_v0  ;;  %v7555_v7 = vld [vmem:[%s9994_s17 + $0x8] sm:$0xff]  }
0x4195   :  { %v4607_v44 = vrot.slane %v4593_v62, %v8532_v54  ;;  %v4613_v50 = vrot.slane %v4600_v49, %v8535_v59  ;;  %7227 = vmatpush3.bf16.msra.mxu0 %v7554_v39 }
0x4196   :  { %7251 = vmatpush3.bf16.msra.mxu1 %v7555_v7  ;;  %7240 = vmatprep.subr.bf16.mxu0 %v8133_v0  ;;  %v9645_v7 = vld [vmem:[#allocation14] ss:$0 sm:$0xff] }
0x4197   :  { %v4617_v36 = vrot.slane %v4607_v44, %v8535_v59  ;;  %v4620_v2 = vadd.f32 %v4613_v50, %v9566_v51  ;;  %7264 = vmatprep.subr.bf16.mxu1 %v8133_v0 }
0x4199   :  { %v4621_v30 = vadd.f32 %v4617_v36, %v9573_v57  ;;  %7727 = vtanh.f32 %v4620_v2 }
0x419b   :  { %7729 = vtanh.f32 %v4621_v30 }
0x41a3   :  { %v7728_v21 = vpop.eup %7727 }
0x41a4   :  { %v4631_v8 = vmul.f32 %v7728_v21, %v9578_v53 }
0x41a5   :  { %v7730_v5 = vpop.eup %7729 }
0x41a6   :  { %v4633_v48 = vsel %vm450_vm4, %v4631_v8, 0.0  ;;  %v4632_v13 = vmul.f32 %v7730_v5, %v9578_v53 }
0x41a7   :  { %4634 = vadd.xlane.f32.xlu0 %v4633_v48 }
0x41a8   :  { %v4636_v14 = vsel %vm450_vm4, %v4632_v13, 0.0 }
0x41a9   :  { %4637 = vadd.xlane.f32.xlu1 %v4636_v14 }
0x4234   :  { %v4635_v52 = vpop.xlane.xlu0 %4634 }
0x4235   :  { %v4644_v19 = vrot.slane %v4635_v52, %v8561_v18 }
0x4236   :  { %v4638_v23 = vpop.xlane.xlu1 %4637 }
0x4237   :  { %v4648_v24 = vrot.slane %v4638_v23, %v8561_v18 }
0x4239   :  { %v4649_v27 = vsel %vm651_vm5, %v4648_v24, %v4644_v19 }
0x423a   :  { %v4651_v61 = vsel %vm640_vm6, %v4649_v27, -1e+09 }
0x423b   :  { %v4652_v40 = vsel %vm228_vm7, %v4651_v61, -inf }
0x423c   :  { %4653 = vmax.xlane.f32.xlu0 %v4652_v40 }
0x42c9   :  { %v4654_v32 = vpop.xlane.xlu0 %4653 }
0x42ca   :  { %v4655_v25 = vsub.f32 %v4651_v61, %v4654_v32 }
0x42cc   :  { %v4656_v38 = vmul.f32 1.442695, %v4655_v25 }
0x42ce   :  { %7731 = vpow2.f32 %v4656_v38 }
0x42d8   :  { %v7732_v22 = vpop.eup %7731 }
0x42d9   :  { %v4658_v15 = vsel %vm228_vm7, %v7732_v22, 0.0 }
0x42da   :  { %4659 = vadd.xlane.f32.xlu0 %v4658_v15 }
0x4367   :  { %v4660_v37 = vpop.xlane.xlu0 %4659 }
0x4368   :  { %7733 = vrcp.f32 %v4660_v37  ;;  %v7557_v37 = vld [vmem:[%s9997_s20 + $0x8] sm:$0xff]  }
0x4372   :  { %v7734_v26 = vpop.eup %7733 }
0x4373   :  { %v4662_v28 = vmul.f32 %v7734_v26, %v7732_v22  ;;  %v7556_v22 = vld [vmem:[%s9997_s20] sm:$0xff]  }
0x4375   :  { %v4673_v56 = vrot.slane %v4662_v28, %v8573_v34  ;;  %v4666_v42 = vrot.slane %v4662_v28, %v8535_v59 }
0x4377   :  { %4675 = vbcast.lane.b32.xlu0 %v4673_v56, 256  ;;  %4668 = vbcast.lane.b32.xlu1 %v4666_v42, 256 }
0x43e9   :  { %v4676_v62 = vpop.permute.xlu0 %4675  ;;  %v4669_v49 = vpop.permute.xlu1 %4668 }
0x43ea   :  { %v4680_v44 = vmul.f32 %v9612_v46, %v4676_v62  ;;  %v4679_v50 = vmul.f32 %v9617_v63, %v4669_v49 }
0x43ec   :  { %v4688_v36 = vsel %vm450_vm4, %v4680_v44, 0.0  ;;  %v4681_v2 = vsel %vm450_vm4, %v4679_v50, 0.0 }
0x43ed   :  { %v4689_v30 = vrot.slane %v4688_v36, 4  ;;  %v4682_v21 = vrot.slane %v4681_v2, 4 }
0x43ef   :  { %v4690_v8 = vadd.f32 %v4689_v30, %v4688_v36  ;;  %v4683_v5 = vadd.f32 %v4682_v21, %v4681_v2  ;;  %v9653_v2 = vld [vmem:[%s9993_s16] sm:$0xff] }
0x43f1   :  { %v4691_v48 = vrot.slane %v4690_v8, 2  ;;  %v4684_v13 = vrot.slane %v4683_v5, 2 }
0x43f3   :  { %v4692_v14 = vadd.f32 %v4691_v48, %v4690_v8  ;;  %v4685_v52 = vadd.f32 %v4684_v13, %v4683_v5  ;;  %v9662_v5 = vld [vmem:[%s9993_s16 + $0x8] sm:$0xff] }
0x43f5   :  { %v4693_v23 = vrot.slane %v4692_v14, 1  ;;  %v4686_v19 = vrot.slane %v4685_v52, 1 }
0x43f7   :  { %v4694_v24 = vadd.f32 %v4693_v23, %v4692_v14  ;;  %v4687_v27 = vadd.f32 %v4686_v19, %v4685_v52  ;;  %v9667_v19 = vld [vmem:[#allocation16] ss:$0 sm:$0xff] }
0x43f9   :  { %v4700_v61 = vpack.c.bf16 %v4694_v24, %v4694_v24  ;;  %v4699_v40 = vpack.c.bf16 %v4687_v27, %v4687_v27 }
0x43fb   :  { %v4708_v32 = vunpack.c.l.b16 %v4700_v61  ;;  %v4707_v25 = vunpack.c.l.b16 %v4699_v40 }
0x43fd   :  { %v4709_v38 = vsel %vm651_vm5, %v4708_v32, %v4707_v25 }
0x43fe   :  { %v4710_v15 = vpack.c.b16 %v4709_v38, %v4709_v38 }
0x4400   :  { %7229 = vmatmul.mubr.msk.bf16.vlgmr.msra.gmra.mrb[96].mxu0 %vm450_vm4, %v4710_v15  ;;  %7253 = vmatmul.mubr.msk.bf16.vlgmr.msra.gmra.mrb[80].mxu1 %vm450_vm4, %v4710_v15 }
0x4401   :  { %7265 = vmatpush3.bf16.msra.mxu1 %v7556_v22  ;;  %7268 = vmatprep.mubr.msk.bf16.mxu1 %vm8134_vm0, %v8133_v0 }
0x4402   :  { %7266 = vmatprep.subr.bf16.mxu1 %v8133_v0  ;;  %7244 = vmatprep.mubr.msk.bf16.mxu0 %vm8134_vm0, %v8133_v0 }
0x4405   :  { %7267 = vmatpush3.bf16.msra.mxu1 %v7557_v37 }
0x4406   :  { %7280 = vmatprep.subr.bf16.mxu1 %v8133_v0 }
0x4408   :  { %7269 = vmatmul.mubr.msk.bf16.vlgmr.msra.gmra.mrb[84].mxu1 %vm450_vm4, %v9445_v1 }
0x4409   :  { %7296 = vmatprep.mubr.msk.bf16.mxu1 %vm8134_vm0, %v8133_v0 }
0x44d3   :  { %v4760_v26 = vpop.f32.mrb[96].mxu0  ;;  %v9642_v28 = vpop.f32.mrb[80].mxu1 }
0x44d4   :  { %v4813_v56 = vadd.f32 %v9556_v45, %v4760_v26  ;;  %v7230_v42 = vpop.f32.mrb[97].mxu0  ;;  %v7254_v43 = vpop.f32.mrb[81].mxu1 }
0x44d5   :  { %v4763_v55 = vpop.f32.mrb[98].mxu0  ;;  %v5047_v39 = vpop.f32.mrb[82].mxu1 }
0x44d6   :  { %v4818_v62 = vadd.f32 %v9645_v7, %v4813_v56  ;;  %v7231_v49 = vpop.f32.mrb[99].mxu0  ;;  %v7255_v44 = vpop.f32.mrb[83].mxu1 }
0x44d8   :  { %v4826_v1 = vrot.slane %v4818_v62, %v8532_v54 }
0x44da   :  { %v4827_v50 = vcombine.high %v4826_v1, %v4826_v1  ;;  %v4834_v36 = vrot.slane %v4826_v1, %v8532_v54 }
0x44db   :  { %v9655_v45 = vpop.f32.mrb[84].mxu1 }
0x44dc   :  { %v4841_v30 = vrot.slane %v4827_v50, %v8532_v54  ;;  %v4847_v21 = vrot.slane %v4834_v36, %v8535_v59  ;;  %v7270_v8 = vpop.f32.mrb[85].mxu1 }
0x44dd   :  { %v5160_v48 = vpop.f32.mrb[86].mxu1  ;;  %v7559_v8 = vld [vmem:[#allocation17 + $0x8] sm:$0xff]  }
0x44de   :  { %v4851_v13 = vrot.slane %v4841_v30, %v8535_v59  ;;  %v4854_v14 = vadd.f32 %v4847_v21, %v9653_v2  ;;  %v7271_v52 = vpop.f32.mrb[87].mxu1  ;;  %v7558_v21 = vld [vmem:[#allocation17] sm:$0xff]  }
0x44df   :  { %7241 = vmatpush3.bf16.msra.mxu0 %v7558_v21 }
0x44e0   :  { %v4855_v23 = vadd.f32 %v4851_v13, %v9662_v5  ;;  %7735 = vtanh.f32 %v4854_v14  ;;  %7242 = vmatprep.subr.bf16.mxu0 %v8133_v0 }
0x44e2   :  { %7737 = vtanh.f32 %v4855_v23 }
0x44e3   :  { %7243 = vmatpush3.bf16.msra.mxu0 %v7559_v8 }
0x44e4   :  { %7256 = vmatprep.subr.bf16.mxu0 %v8133_v0 }
0x44ea   :  { %v7736_v24 = vpop.eup %7735 }
0x44eb   :  { %v4865_v27 = vmul.f32 %v7736_v24, %v9667_v19 }
0x44ec   :  { %v7738_v61 = vpop.eup %7737 }
0x44ed   :  { %v4867_v40 = vsel %vm450_vm4, %v4865_v27, 0.0  ;;  %v4866_v32 = vmul.f32 %v7738_v61, %v9667_v19 }
0x44ee   :  { %4868 = vadd.xlane.f32.xlu1 %v4867_v40 }
0x44ef   :  { %v4870_v25 = vsel %vm450_vm4, %v4866_v32, 0.0 }
0x44f0   :  { %4871 = vadd.xlane.f32.xlu0 %v4870_v25 }
0x457b   :  { %v4869_v38 = vpop.xlane.xlu1 %4868 }
0x457c   :  { %v4878_v15 = vrot.slane %v4869_v38, %v8561_v18 }
0x457d   :  { %v4872_v22 = vpop.xlane.xlu0 %4871 }
0x457e   :  { %v4882_v37 = vrot.slane %v4872_v22, %v8561_v18 }
0x4580   :  { %v4883_v26 = vsel %vm651_vm5, %v4882_v37, %v4878_v15 }
0x4581   :  { %v4885_v56 = vsel %vm876_vm9, %v4883_v26, -1e+09 }
0x4582   :  { %v4886_v42 = vsel %vm228_vm7, %v4885_v56, -inf }
0x4583   :  { %4887 = vmax.xlane.f32.xlu1 %v4886_v42 }
0x4610   :  { %v4888_v43 = vpop.xlane.xlu1 %4887 }
0x4611   :  { %v4889_v55 = vsub.f32 %v4885_v56, %v4888_v43 }
0x4613   :  { %v4890_v39 = vmul.f32 1.442695, %v4889_v55 }
0x4615   :  { %7739 = vpow2.f32 %v4890_v39 }
0x461f   :  { %v7740_v62 = vpop.eup %7739 }
0x4620   :  { %v4892_v49 = vsel %vm228_vm7, %v7740_v62, 0.0 }
0x4621   :  { %4893 = vadd.xlane.f32.xlu0 %v4892_v49 }
0x46ae   :  { %v4894_v44 = vpop.xlane.xlu0 %4893 }
0x46af   :  { %7741 = vrcp.f32 %v4894_v44  ;;  %v7560_v44 = vld [vmem:[#allocation19] sm:$0xff]  }
0x46b9   :  { %v7742_v1 = vpop.eup %7741 }
0x46ba   :  { %v4896_v50 = vmul.f32 %v7742_v1, %v7740_v62 }
0x46bc   :  { %v4907_v36 = vrot.slane %v4896_v50, %v8573_v34  ;;  %v4900_v30 = vrot.slane %v4896_v50, %v8535_v59  ;;  %v7561_v50 = vld [vmem:[#allocation19 + $0x8] sm:$0xff]  }
0x46be   :  { %4909 = vbcast.lane.b32.xlu0 %v4907_v36, 256  ;;  %4902 = vbcast.lane.b32.xlu1 %v4900_v30, 256 }
0x4730   :  { %v4910_v48 = vpop.permute.xlu0 %4909  ;;  %v4903_v13 = vpop.permute.xlu1 %4902 }
0x4731   :  { %v4912_v14 = vmul.f32 %v4910_v48, %v9612_v46  ;;  %v4911_v52 = vmul.f32 %v4903_v13, %v9617_v63 }
0x4733   :  { %v4920_v23 = vsel %vm450_vm4, %v4912_v14, 0.0  ;;  %v4913_v24 = vsel %vm450_vm4, %v4911_v52, 0.0 }
0x4734   :  { %v4921_v27 = vrot.slane %v4920_v23, 4  ;;  %v4914_v61 = vrot.slane %v4913_v24, 4 }
0x4736   :  { %v4922_v40 = vadd.f32 %v4921_v27, %v4920_v23  ;;  %v4915_v32 = vadd.f32 %v4914_v61, %v4913_v24  ;;  %v9703_v61 = vld [vmem:[%s9998_s21] ss:$0 sm:$0xff] }
0x4738   :  { %v4923_v25 = vrot.slane %v4922_v40, 2  ;;  %v4916_v38 = vrot.slane %v4915_v32, 2 }
0x473a   :  { %v4924_v22 = vadd.f32 %v4923_v25, %v4922_v40  ;;  %v4917_v15 = vadd.f32 %v4916_v38, %v4915_v32 }
0x473c   :  { %v4925_v37 = vrot.slane %v4924_v22, 1  ;;  %v4918_v26 = vrot.slane %v4917_v15, 1 }
0x473e   :  { %v4926_v56 = vadd.f32 %v4925_v37, %v4924_v22  ;;  %v4919_v42 = vadd.f32 %v4918_v26, %v4917_v15 }
0x4740   :  { %v4932_v43 = vpack.c.bf16 %v4926_v56, %v4926_v56  ;;  %v4931_v55 = vpack.c.bf16 %v4919_v42, %v4919_v42  ;;  %v7562_v42 = vld [vmem:[#allocation20] sm:$0xff]  }
0x4742   :  { %v4940_v39 = vunpack.c.l.b16 %v4932_v43  ;;  %v4939_v62 = vunpack.c.l.b16 %v4931_v55  ;;  %v7563_v43 = vld [vmem:[#allocation20 + $0x8] sm:$0xff]  }
0x4744   :  { %v4941_v49 = vsel %vm651_vm5, %v4940_v39, %v4939_v62 }
0x4745   :  { %v4942_v1 = vpack.c.b16 %v4941_v49, %v4941_v49 }
0x4747   :  { %7245 = vmatmul.mubr.msk.bf16.vlgmr.msra.gmra.mrb[100].mxu0 %vm450_vm4, %v4942_v1  ;;  %v9725_v1 = vld [vmem:[%s10000_s23] ss:$0 sm:$0xff] }
0x4748   :  { %7257 = vmatpush3.bf16.msra.mxu0 %v7560_v44  ;;  %7260 = vmatprep.mubr.msk.bf16.mxu0 %vm8134_vm0, %v8133_v0 }
0x4749   :  { %7258 = vmatprep.subr.bf16.mxu0 %v8133_v0 }
0x474c   :  { %7259 = vmatpush3.bf16.msra.mxu0 %v7561_v50 }
0x474d   :  { %7272 = vmatprep.subr.bf16.mxu0 %v8133_v0 }
0x474f   :  { %7261 = vmatmul.mubr.msk.bf16.vlgmr.msra.gmra.mrb[104].mxu0 %vm450_vm4, %v9546_v10 }
0x4750   :  { %7276 = vmatprep.mubr.msk.bf16.mxu0 %vm8134_vm0, %v8133_v0  ;;  %7273 = vmatpush3.bf16.msra.mxu0 %v7562_v42 }
0x4751   :  { %7274 = vmatprep.subr.bf16.mxu0 %v8133_v0 }
0x4754   :  { %7275 = vmatpush3.bf16.msra.mxu0 %v7563_v43 }
0x4755   :  { %7300 = vmatprep.subr.bf16.mxu0 %v8133_v0 }
0x481a   :  { %v4992_v36 = vpop.f32.mrb[100].mxu0 }
0x481b   :  { %v5045_v30 = vadd.f32 %v9642_v28, %v4992_v36  ;;  %v7246_v21 = vpop.f32.mrb[101].mxu0 }
0x481c   :  { %v4995_v8 = vpop.f32.mrb[102].mxu0 }
0x481d   :  { %v7247_v48 = vpop.f32.mrb[103].mxu0 }
0x481e   :  { %v7564_v48 = vld [vmem:[%s10025_s7] sm:$0xff]  }
0x481f   :  { %7281 = vmatpush3.bf16.msra.mxu1 %v7564_v48 }
0x4820   :  { %7282 = vmatprep.subr.bf16.mxu1 %v8133_v0 }
0x4822   :  { %v5100_v13 = vpop.f32.mrb[104].mxu0 }
0x4823   :  { %v5106_v14 = vadd.f32 %v5100_v13, %v5045_v30  ;;  %v7262_v52 = vpop.f32.mrb[105].mxu0  ;;  %v7565_v13 = vld [vmem:[%s10025_s7 + $0x8] sm:$0xff]  }
0x4824   :  { %v5103_v23 = vpop.f32.mrb[106].mxu0  ;;  %7283 = vmatpush3.bf16.msra.mxu1 %v7565_v13  ;;  %v7567_v52 = vld [vmem:[%s10025_s7 + $0x18] sm:$0xff]  }
0x4825   :  { %v5163_v24 = vadd.f32 %v9655_v45, %v5106_v14  ;;  %v7263_v27 = vpop.f32.mrb[107].mxu0  ;;  %v7566_v14 = vld [vmem:[%s10025_s7 + $0x10] sm:$0xff]   ;;  %7284 = vmatprep.subr.bf16.mxu1 %v8133_v0  ;;  %v7568_v23 = vld [vmem:[%s10025_s7 + $0x20] sm:$0xff]  }
0x4827   :  { %v5164_v40 = vadd.f32 %v9703_v61, %v5163_v24  ;;  %v7569_v24 = vld [vmem:[%s10025_s7 + $0x28] sm:$0xff]  }
0x4828   :  { %7285 = vmatpush3.bf16.msra.mxu1 %v7566_v14 }
0x4829   :  { %7743 = vtanh.f32 %v5164_v40  ;;  %v6513_v28 = vmul.f32 -1.442695, %v5164_v40  ;;  %7286 = vmatprep.subr.bf16.mxu1 %v8133_v0 }
0x482b   :  { %7745 = vpow2.f32 %v6513_v28  ;;  %v7570_v28 = vld [vmem:[%s10025_s7 + $0x30] sm:$0xff]  }
0x482c   :  { %7287 = vmatpush3.bf16.msra.mxu1 %v7567_v52 }
0x482d   :  { %7288 = vmatprep.subr.bf16.mxu1 %v8133_v0 }
0x4830   :  { %7289 = vmatpush3.bf16.msra.mxu1 %v7568_v23 }
0x4831   :  { %7290 = vmatprep.subr.bf16.mxu1 %v8133_v0 }
0x4833   :  { %v7744_v32 = vpop.eup %7743 }
0x4834   :  { %5174 = vrot.lane.b32.xlu1 %v7744_v32, %s8125_s5  ;;  %7291 = vmatpush3.bf16.msra.mxu1 %v7569_v24 }
0x4835   :  { %v7746_v25 = vpop.eup %7745  ;;  %7292 = vmatprep.subr.bf16.mxu1 %v8133_v0 }
0x4836   :  { %v5168_v38 = vadd.f32 1.0, %v7746_v25  ;;  %v7571_v25 = vld [vmem:[%s10025_s7 + $0x38] sm:$0xff]  }
0x4838   :  { %7747 = vrcp.f32 %v5168_v38  ;;  %7293 = vmatpush3.bf16.msra.mxu1 %v7570_v28  ;;  %v7572_v38 = vld [vmem:[#allocation10] sm:$0xff]  }
0x4839   :  { %7294 = vmatprep.subr.bf16.mxu1 %v8133_v0  ;;  %v7577_v28 = vld [vmem:[%s10027_s6 + $0x8] sm:$0xff]  }
0x483c   :  { %7295 = vmatpush3.bf16.msra.mxu1 %v7571_v25 }
0x483d   :  { %7330 = vmatprep.subr.bf16.mxu1 %v8133_v0 }
0x4842   :  { %v7748_v22 = vpop.eup %7747 }
0x4843   :  { %v5172_v37 = vmul.f32 %v7748_v22, %v9438_v16 }
0x48a6   :  { %v5175_v15 = vpop.permute.xlu1 %5174 }
0x48a7   :  { %v5177_v45 = vmul.f32 %v7748_v22, %v5175_v15 }
0x48a9   :  { %5179 = vrot.lane.b32.xlu1 %v5177_v45, %s8136_s3 }
0x491b   :  { %v5180_v26 = vpop.permute.xlu1 %5179 }
0x491c   :  { %v9709_v56 = vadd.f32 %v5180_v26, %v5172_v37 }
0x491e   :  { %7749 = vtanh.f32 %v9709_v56 }
0x4928   :  { %v7750_v55 = vpop.eup %7749 }
0x4929   :  { %5185 = vrot.lane.b32.xlu0 %v7750_v55, %s8125_s5 }
0x499b   :  { %v5186_v39 = vpop.permute.xlu0 %5185 }
0x499c   :  { %v5188_v62 = vmul.f32 %v7748_v22, %v5186_v39  ;;  %v7573_v39 = vld [vmem:[%s10026_s19] sm:$0xff]  }
0x499e   :  { %v5189_v49 = vpack.c.bf16 %v5188_v62, %v5188_v62 }
0x49a0   :  { %5195 = vrot.lane.b32.xlu1 %v5189_v49, %s8136_s3 }
0x4a12   :  { %v9716_v16 = vpop.permute.xlu1 %5195 }
0x4a13   :  { %7277 = vmatmul.mubr.msk.bf16.vlgmr.msra.gmra.mrb[108].mxu0 %vm450_vm4, %v9716_v16 }
0x4a14   :  { %7302 = vmatprep.mubr.msk.bf16.mxu0 %vm8134_vm0, %v8133_v0  ;;  %7301 = vmatpush3.bf16.msra.mxu0 %v7572_v38 }
0x4a15   :  { %7306 = vmatprep.subr.bf16.mxu0 %v8133_v0 }
0x4ae6   :  { %v5246_v44 = vpop.f32.mrb[108].mxu0 }
0x4ae7   :  { %v9728_v50 = vadd.f32 %v9725_v1, %v5246_v44  ;;  %v7278_v36 = vpop.f32.mrb[109].mxu0 }
0x4ae8   :  { %v5249_v30 = vpop.f32.mrb[110].mxu0 }
0x4ae9   :  { %v7279_v21 = vpop.f32.mrb[111].mxu0  ;;  %v5252_v8 = vsel %vm1256_vm10, %v9728_v50, -inf }
0x4aea   :  { %5253 = vmax.xlane.f32.xlu0 %v5252_v8 }
0x4b77   :  { %v9756_v27 = vpop.xlane.xlu0 %5253 }
0x4b78   :  { %vm5267_vm15 = vcmp.eq.f32.partialorder %v9728_v50, %v9756_v27 }
0x4b79   :  { %v5268_v40 = vsel %vm5267_vm15, %v8456_v6, 128.0 }
0x4b7a   :  { %v5269_v32 = vsel %vm1256_vm10, %v5268_v40, inf  ;;  %v7575_v40 = vld [vmem:[%s10027_s6] sm:$0xff]  }
0x4b7b   :  { %5270 = vmin.xlane.f32.xlu1 %v5269_v32  ;;  %v7576_v32 = vld [vmem:[%s9989_s12] sm:$0xff]  }
0x4c08   :  { %v5271_v22 = vpop.xlane.xlu1 %5270 }
0x4c09   :  { %vm5272_vm1 = vcmp.eq.f32.partialorder %v5271_v22, 2.0 }
0x4c0a   :  { %v6517_v15 = vsel %vm5272_vm1, 1.0, %v8133_v0 }
0x4c0b   :  { %v5275_v45 = vadd.f32 %v6517_v15, %v9497_v41 }
0x4c0d   :  { %vm5276_vm2 = vcmp.ne.f32.partialorder %v5275_v45, 0.0 }
0x4c0e   :  { %v5277_v37 = vsel %vm5276_vm2, 2.0, %v5271_v22 }
0x4c0f   :  { %vm5278_vm8 = vcmp.eq.f32.partialorder %v8456_v6, %v5277_v37  ;;  %v7574_v6 = vld [vmem:[%s10026_s19 + $0x8] sm:$0xff]  }
0x4c10   :  { %vm6527_vm11 = vmpackc.low %vm5278_vm8, %vm5278_vm8 }
0x4c11   :  { %7297 = vmatmul.mubr.msk.bf16.vlgmr.msra.gmra.mrb[88].mxu1 %vm6527_vm11, %v8135_v12 }
0x4c12   :  { %7334 = vmatprep.mubr.msk.bf16.mxu1 %vm8134_vm0, %v8133_v0  ;;  %7331 = vmatpush3.bf16.msra.mxu1 %v7576_v32 }
0x4c13   :  { %7332 = vmatprep.subr.bf16.mxu1 %v8133_v0 }
0x4ce4   :  { %v5380_v26 = vpop.f32.mrb[88].mxu1 }
0x4ce5   :  { %v5386_v42 = vmax.f32 %v5380_v26, 0.0  ;;  %v7298_v43 = vpop.f32.mrb[89].mxu1 }
0x4ce6   :  { %v5383_v55 = vpop.f32.mrb[90].mxu1 }
0x4ce7   :  { %v5387_v62 = vpack.c.bf16 %v5386_v42, %v5386_v42  ;;  %v7299_v41 = vpop.f32.mrb[91].mxu1 }
0x4ce9   :  { %7303 = vmatmul.mubr.msk.bf16.vlgmr.msra.gmra.mrb[112].mxu0 %vm388_vm3, %v5387_v62 }
0x4cea   :  { %7307 = vmatpush3.bf16.msra.mxu0 %v7573_v39  ;;  %7310 = vmatprep.mubr.msk.bf16.mxu0 %vm8134_vm0, %v8133_v0 }
0x4ceb   :  { %7308 = vmatprep.subr.bf16.mxu0 %v8133_v0 }
0x4cee   :  { %7309 = vmatpush3.bf16.msra.mxu0 %v7574_v6 }
0x4cef   :  { %7314 = vmatprep.subr.bf16.mxu0 %v8133_v0 }
0x4cf5   :  { %7311 = vmatmul.mubr.msk.bf16.vlgmr.msra.gmra.mrb[112].mxu0 %vm450_vm4, %v9546_v10 }
0x4cf6   :  { %7318 = vmatprep.mubr.msk.bf16.mxu0 %vm8134_vm0, %v8133_v0  ;;  %7315 = vmatpush3.bf16.msra.mxu0 %v7575_v40 }
0x4cf7   :  { %7316 = vmatprep.subr.bf16.mxu0 %v8133_v0 }
0x4cfa   :  { %7317 = vmatpush3.bf16.msra.mxu0 %v7577_v28 }
0x4cfb   :  { %7322 = vmatprep.subr.bf16.mxu0 %v8133_v0 }
0x4dc8   :  { %v5490_v12 = vpop.f32.mrb[112].mxu0 }
0x4dc9   :  { %v7383_v49 = vadd.f32 %v9519_v58, %v5490_v12  ;;  %v7312_v44 = vpop.f32.mrb[113].mxu0 }
0x4dca   :  { %v5493_v36 = vpop.f32.mrb[114].mxu0 }
0x4dcb   :  { %7751 = vtanh.f32 %v7383_v49  ;;  %v7313_v30 = vpop.f32.mrb[115].mxu0  ;;  %v6534_v8 = vmul.f32 -1.442695, %v7383_v49 }
0x4dcd   :  { %7753 = vpow2.f32 %v6534_v8 }
0x4dd5   :  { %v7752_v21 = vpop.eup %7751 }
0x4dd6   :  { %5506 = vrot.lane.b32.xlu0 %v7752_v21, %s8125_s5 }
0x4dd7   :  { %v7754_v48 = vpop.eup %7753 }
0x4dd8   :  { %v5500_v13 = vadd.f32 1.0, %v7754_v48 }
0x4dda   :  { %7755 = vrcp.f32 %v5500_v13 }
0x4de4   :  { %v7756_v14 = vpop.eup %7755 }
0x4de5   :  { %v5504_v23 = vmul.f32 %v7756_v14, %v9525_v33  ;;  %v7578_v33 = vld [vmem:[%s9989_s12 + $0x8] sm:$0xff]  }
0x4de6   :  { %7333 = vmatpush3.bf16.msra.mxu1 %v7578_v33 }
0x4de7   :  { %7346 = vmatprep.subr.bf16.mxu1 %v8133_v0 }
0x4e48   :  { %v5507_v10 = vpop.permute.xlu0 %5506 }
0x4e49   :  { %v5509_v52 = vmul.f32 %v7756_v14, %v5507_v10 }
0x4e4b   :  { %5511 = vrot.lane.b32.xlu1 %v5509_v52, %s8136_s3 }
0x4ebd   :  { %v5512_v58 = vpop.permute.xlu1 %5511 }
0x4ebe   :  { %v5514_v24 = vadd.f32 %v5512_v58, %v5504_v23 }
0x4ec0   :  { %7757 = vtanh.f32 %v5514_v24 }
0x4eca   :  { %v7758_v25 = vpop.eup %7757 }
0x4ecb   :  { %5517 = vrot.lane.b32.xlu0 %v7758_v25, %s8125_s5 }
0x4f3d   :  { %v5518_v38 = vpop.permute.xlu0 %5517 }
0x4f3e   :  { %v5520_v22 = vmul.f32 %v7756_v14, %v5518_v38 }
0x4f40   :  { %v5521_v15 = vpack.c.bf16 %v5520_v22, %v5520_v22 }
0x4f42   :  { %5527 = vrot.lane.b32.xlu1 %v5521_v15, %s8136_s3 }
0x4fb4   :  { %v9814_v45 = vpop.permute.xlu1 %5527 }
0x4fb5   :  { %7319 = vmatmul.mubr.msk.bf16.vlgmr.msra.gmra.mrb[116].mxu0 %vm450_vm4, %v9814_v45  ;;  %7335 = vmatmul.mubr.msk.bf16.vlgmr.msra.gmra.mrb[92].mxu1 %vm450_vm4, %v9814_v45 }
0x4fb6   :  { %7326 = vmatprep.mubr.msk.bf16.mxu0 %vm8134_vm0, %v8133_v0  ;;  %7350 = vmatprep.mubr.msk.bf16.mxu1 %vm8134_vm0, %v8133_v0 }
0x5088   :  { %v5578_v37 = vpop.f32.mrb[116].mxu0  ;;  %v9824_v26 = vpop.f32.mrb[92].mxu1 }
0x5089   :  { %v5579_v42 = vadd.f32 %v9558_v3, %v5578_v37  ;;  %v7320_v43 = vpop.f32.mrb[117].mxu0  ;;  %v7336_v55 = vpop.f32.mrb[93].mxu1 }
0x508a   :  { %v5581_v39 = vpop.f32.mrb[118].mxu0  ;;  %v5814_v62 = vpop.f32.mrb[94].mxu1  ;;  %v7579_v55 = vld [vmem:[%s9990_s13] sm:$0xff]  }
0x508b   :  { %v5591_v41 = vrot.slane %v5579_v42, %v8532_v54  ;;  %v7321_v6 = vpop.f32.mrb[119].mxu0  ;;  %v7337_v12 = vpop.f32.mrb[95].mxu1  ;;  %v7580_v39 = vld [vmem:[%s9994_s17] sm:$0xff]   ;;  %7323 = vmatpush3.bf16.msra.mxu0 %v7579_v55  ;;  %v7581_v62 = vld [vmem:[%s9990_s13 + $0x8] sm:$0xff]  }
0x508c   :  { %7347 = vmatpush3.bf16.msra.mxu1 %v7580_v39  ;;  %7324 = vmatprep.subr.bf16.mxu0 %v8133_v0 }
0x508d   :  { %v5592_v49 = vcombine.high %v5591_v41, %v5591_v41  ;;  %v5599_v44 = vrot.slane %v5591_v41, %v8532_v54  ;;  %7348 = vmatprep.subr.bf16.mxu1 %v8133_v0  ;;  %v7582_v41 = vld [vmem:[%s9994_s17 + $0x8] sm:$0xff]  }
0x508f   :  { %v5606_v36 = vrot.slane %v5592_v49, %v8532_v54  ;;  %v5612_v30 = vrot.slane %v5599_v44, %v8535_v59  ;;  %7325 = vmatpush3.bf16.msra.mxu0 %v7581_v62 }
0x5090   :  { %7349 = vmatpush3.bf16.msra.mxu1 %v7582_v41  ;;  %7338 = vmatprep.subr.bf16.mxu0 %v8133_v0 }
0x5091   :  { %v5616_v21 = vrot.slane %v5606_v36, %v8535_v59  ;;  %v5619_v8 = vadd.f32 %v5612_v30, %v9566_v51  ;;  %7362 = vmatprep.subr.bf16.mxu1 %v8133_v0 }
0x5093   :  { %v5620_v3 = vadd.f32 %v5616_v21, %v9573_v57  ;;  %7759 = vtanh.f32 %v5619_v8 }
0x5095   :  { %7761 = vtanh.f32 %v5620_v3 }
0x509d   :  { %v7760_v48 = vpop.eup %7759 }
0x509e   :  { %v5630_v13 = vmul.f32 %v7760_v48, %v9578_v53 }
0x509f   :  { %v7762_v14 = vpop.eup %7761 }
0x50a0   :  { %v5632_v10 = vsel %vm450_vm4, %v5630_v13, 0.0  ;;  %v5631_v52 = vmul.f32 %v7762_v14, %v9578_v53 }
0x50a1   :  { %5633 = vadd.xlane.f32.xlu0 %v5632_v10 }
0x50a2   :  { %v5635_v23 = vsel %vm450_vm4, %v5631_v52, 0.0 }
0x50a3   :  { %5636 = vadd.xlane.f32.xlu1 %v5635_v23 }
0x512e   :  { %v5634_v58 = vpop.xlane.xlu0 %5633 }
0x512f   :  { %v5643_v51 = vrot.slane %v5634_v58, %v8561_v18 }
0x5130   :  { %v5637_v24 = vpop.xlane.xlu1 %5636 }
0x5131   :  { %v5647_v57 = vrot.slane %v5637_v24, %v8561_v18 }
0x5133   :  { %v5648_v40 = vsel %vm651_vm5, %v5647_v57, %v5643_v51 }
0x5134   :  { %v5650_v32 = vsel %vm640_vm6, %v5648_v40, -1e+09 }
0x5135   :  { %v5651_v28 = vsel %vm228_vm7, %v5650_v32, -inf }
0x5136   :  { %5652 = vmax.xlane.f32.xlu0 %v5651_v28 }
0x51c3   :  { %v5653_v33 = vpop.xlane.xlu0 %5652 }
0x51c4   :  { %v5654_v53 = vsub.f32 %v5650_v32, %v5653_v33 }
0x51c6   :  { %v5655_v25 = vmul.f32 1.442695, %v5654_v53  ;;  %v7583_v53 = vld [vmem:[%s9997_s20] sm:$0xff]  }
0x51c8   :  { %7763 = vpow2.f32 %v5655_v25 }
0x51d2   :  { %v7764_v38 = vpop.eup %7763 }
0x51d3   :  { %v5657_v22 = vsel %vm228_vm7, %v7764_v38, 0.0 }
0x51d4   :  { %5658 = vadd.xlane.f32.xlu0 %v5657_v22 }
0x5261   :  { %v5659_v15 = vpop.xlane.xlu0 %5658 }
0x5262   :  { %7765 = vrcp.f32 %v5659_v15 }
0x526c   :  { %v7766_v37 = vpop.eup %7765 }
0x526d   :  { %v5661_v42 = vmul.f32 %v7766_v37, %v7764_v38  ;;  %v7584_v38 = vld [vmem:[%s9997_s20 + $0x8] sm:$0xff]   ;;  %s8138_s20 = smov [#allocation22]  }
0x526f   :  { %v5672_v43 = vrot.slane %v5661_v42, %v8573_v34  ;;  %v5665_v20 = vrot.slane %v5661_v42, %v8535_v59 }
0x5271   :  { %5674 = vbcast.lane.b32.xlu0 %v5672_v43, 256  ;;  %5667 = vbcast.lane.b32.xlu1 %v5665_v20, 256 }
0x52e3   :  { %v5675_v6 = vpop.permute.xlu0 %5674  ;;  %v5668_v12 = vpop.permute.xlu1 %5667 }
0x52e4   :  { %v5679_v49 = vmul.f32 %v5675_v6, %v9612_v46  ;;  %v5678_v44 = vmul.f32 %v5668_v12, %v9617_v63 }
0x52e6   :  { %v5687_v36 = vsel %vm450_vm4, %v5679_v49, 0.0  ;;  %v5680_v30 = vsel %vm450_vm4, %v5678_v44, 0.0 }
0x52e7   :  { %v5688_v21 = vrot.slane %v5687_v36, 4  ;;  %v5681_v8 = vrot.slane %v5680_v30, 4 }
0x52e9   :  { %v5689_v3 = vadd.f32 %v5688_v21, %v5687_v36  ;;  %v5682_v48 = vadd.f32 %v5681_v8, %v5680_v30 }
0x52eb   :  { %v5690_v13 = vrot.slane %v5689_v3, 2  ;;  %v5683_v14 = vrot.slane %v5682_v48, 2 }
0x52ed   :  { %v5691_v10 = vadd.f32 %v5690_v13, %v5689_v3  ;;  %v5684_v52 = vadd.f32 %v5683_v14, %v5682_v48 }
0x52ef   :  { %v5692_v23 = vrot.slane %v5691_v10, 1  ;;  %v5685_v58 = vrot.slane %v5684_v52, 1 }
0x52f1   :  { %v5693_v24 = vadd.f32 %v5692_v23, %v5691_v10  ;;  %v5686_v51 = vadd.f32 %v5685_v58, %v5684_v52 }
0x52f3   :  { %v5699_v57 = vpack.c.bf16 %v5693_v24, %v5693_v24  ;;  %v5698_v40 = vpack.c.bf16 %v5686_v51, %v5686_v51 }
0x52f5   :  { %v5707_v32 = vunpack.c.l.b16 %v5699_v57  ;;  %v5706_v28 = vunpack.c.l.b16 %v5698_v40 }
0x52f7   :  { %v5708_v33 = vsel %vm651_vm5, %v5707_v32, %v5706_v28 }
0x52f8   :  { %v5709_v25 = vpack.c.b16 %v5708_v33, %v5708_v33 }
0x52fa   :  { %7327 = vmatmul.mubr.msk.bf16.vlgmr.msra.gmra.mrb[120].mxu0 %vm450_vm4, %v5709_v25  ;;  %7351 = vmatmul.mubr.msk.bf16.vlgmr.msra.gmra.mrb[96].mxu1 %vm450_vm4, %v5709_v25 }
0x52fb   :  { %7363 = vmatpush3.bf16.msra.mxu1 %v7583_v53  ;;  %7366 = vmatprep.mubr.msk.bf16.mxu1 %vm8134_vm0, %v8133_v0 }
0x52fc   :  { %7364 = vmatprep.subr.bf16.mxu1 %v8133_v0  ;;  %7342 = vmatprep.mubr.msk.bf16.mxu0 %vm8134_vm0, %v8133_v0 }
0x52ff   :  { %7365 = vmatpush3.bf16.msra.mxu1 %v7584_v38 }
0x5302   :  { %7367 = vmatmul.mubr.msk.bf16.vlgmr.msra.gmra.mrb[100].mxu1 %vm450_vm4, %v9716_v16 }
0x53cd   :  { %v5759_v22 = vpop.f32.mrb[120].mxu0  ;;  %v9883_v15 = vpop.f32.mrb[96].mxu1 }
0x53ce   :  { %v5812_v37 = vadd.f32 %v9824_v26, %v5759_v22  ;;  %v7328_v42 = vpop.f32.mrb[121].mxu0  ;;  %v7352_v43 = vpop.f32.mrb[97].mxu1  ;;  %v7585_v22 = vld [vmem:[#allocation17] sm:$0xff]  }
0x53cf   :  { %v5762_v20 = vpop.f32.mrb[122].mxu0  ;;  %v6046_v55 = vpop.f32.mrb[98].mxu1  ;;  %7339 = vmatpush3.bf16.msra.mxu0 %v7585_v22  ;;  %v7589_v22 = vld [vmem:[#allocation20] sm:$0xff]  }
0x53d0   :  { %v5817_v39 = vadd.f32 %v9645_v7, %v5812_v37  ;;  %v7329_v62 = vpop.f32.mrb[123].mxu0  ;;  %v7353_v41 = vpop.f32.mrb[99].mxu1  ;;  %7340 = vmatprep.subr.bf16.mxu0 %v8133_v0  ;;  %v7586_v37 = vld [vmem:[#allocation17 + $0x8] sm:$0xff]  }
0x53d2   :  { %v5825_v6 = vrot.slane %v5817_v39, %v8532_v54 }
0x53d3   :  { %7341 = vmatpush3.bf16.msra.mxu0 %v7586_v37  ;;  %v7590_v37 = vld [vmem:[#allocation20 + $0x8] sm:$0xff]  }
0x53d4   :  { %v5826_v12 = vcombine.high %v5825_v6, %v5825_v6  ;;  %v5833_v49 = vrot.slane %v5825_v6, %v8532_v54  ;;  %7354 = vmatprep.subr.bf16.mxu0 %v8133_v0 }
0x53d5   :  { %v9889_v44 = vpop.f32.mrb[100].mxu1 }
0x53d6   :  { %v5840_v16 = vrot.slane %v5826_v12, %v8532_v54  ;;  %v5846_v36 = vrot.slane %v5833_v49, %v8535_v59  ;;  %v7368_v26 = vpop.f32.mrb[101].mxu1 }
0x53d7   :  { %v6159_v30 = vpop.f32.mrb[102].mxu1 }
0x53d8   :  { %v5850_v21 = vrot.slane %v5840_v16, %v8535_v59  ;;  %v5853_v8 = vadd.f32 %v5846_v36, %v9653_v2  ;;  %v7369_v7 = vpop.f32.mrb[103].mxu1 }
0x53da   :  { %v5854_v3 = vadd.f32 %v5850_v21, %v9662_v5  ;;  %7767 = vtanh.f32 %v5853_v8 }
0x53dc   :  { %7769 = vtanh.f32 %v5854_v3 }
0x53e4   :  { %v7768_v48 = vpop.eup %7767 }
0x53e5   :  { %v5864_v13 = vmul.f32 %v7768_v48, %v9667_v19 }
0x53e6   :  { %v7770_v14 = vpop.eup %7769 }
0x53e7   :  { %v5866_v10 = vsel %vm450_vm4, %v5864_v13, 0.0  ;;  %v5865_v54 = vmul.f32 %v7770_v14, %v9667_v19  ;;  %v7587_v13 = vld [vmem:[#allocation19] sm:$0xff]  }
0x53e8   :  { %5867 = vadd.xlane.f32.xlu1 %v5866_v10  ;;  %v7588_v10 = vld [vmem:[#allocation19 + $0x8] sm:$0xff]  }
0x53e9   :  { %v5869_v52 = vsel %vm450_vm4, %v5865_v54, 0.0 }
0x53ea   :  { %5870 = vadd.xlane.f32.xlu0 %v5869_v52 }
0x5475   :  { %v5868_v23 = vpop.xlane.xlu1 %5867 }
0x5476   :  { %v5877_v2 = vrot.slane %v5868_v23, %v8561_v18 }
0x5477   :  { %v5871_v58 = vpop.xlane.xlu0 %5870 }
0x5478   :  { %v5881_v5 = vrot.slane %v5871_v58, %v8561_v18 }
0x547a   :  { %v5882_v24 = vsel %vm651_vm5, %v5881_v5, %v5877_v2 }
0x547b   :  { %v5884_v51 = vsel %vm876_vm9, %v5882_v24, -1e+09 }
0x547c   :  { %v5885_v57 = vsel %vm228_vm7, %v5884_v51, -inf }
0x547d   :  { %5886 = vmax.xlane.f32.xlu1 %v5885_v57 }
0x550a   :  { %v5887_v40 = vpop.xlane.xlu1 %5886 }
0x550b   :  { %v5888_v19 = vsub.f32 %v5884_v51, %v5887_v40 }
0x550d   :  { %v5889_v32 = vmul.f32 1.442695, %v5888_v19 }
0x550f   :  { %7771 = vpow2.f32 %v5889_v32 }
0x5519   :  { %v7772_v28 = vpop.eup %7771 }
0x551a   :  { %v5891_v33 = vsel %vm228_vm7, %v7772_v28, 0.0 }
0x551b   :  { %5892 = vadd.xlane.f32.xlu0 %v5891_v33 }
0x55a8   :  { %v5893_v53 = vpop.xlane.xlu0 %5892 }
0x55a9   :  { %7773 = vrcp.f32 %v5893_v53 }
0x55b3   :  { %v7774_v25 = vpop.eup %7773 }
0x55b4   :  { %v5895_v18 = vmul.f32 %v7774_v25, %v7772_v28 }
0x55b6   :  { %v5906_v38 = vrot.slane %v5895_v18, %v8573_v34  ;;  %v5899_v9 = vrot.slane %v5895_v18, %v8535_v59 }
0x55b8   :  { %5908 = vbcast.lane.b32.xlu0 %v5906_v38, 256  ;;  %5901 = vbcast.lane.b32.xlu1 %v5899_v9, 256 }
0x562a   :  { %v5909_v42 = vpop.permute.xlu0 %5908  ;;  %v5902_v43 = vpop.permute.xlu1 %5901 }
0x562b   :  { %v5911_v20 = vmul.f32 %v5909_v42, %v9612_v46  ;;  %v5910_v55 = vmul.f32 %v5902_v43, %v9617_v63 }
0x562d   :  { %v5919_v34 = vsel %vm450_vm4, %v5911_v20, 0.0  ;;  %v5912_v59 = vsel %vm450_vm4, %v5910_v55, 0.0 }
0x562e   :  { %v5920_v39 = vrot.slane %v5919_v34, 4  ;;  %v5913_v62 = vrot.slane %v5912_v59, 4 }
0x5630   :  { %v5921_v41 = vadd.f32 %v5920_v39, %v5919_v34  ;;  %v5914_v6 = vadd.f32 %v5913_v62, %v5912_v59  ;;  %v4256_v34 = vsub.f32 %v9452_v35, %v9480_v29 }
0x5632   :  { %v5922_v12 = vrot.slane %v5921_v41, 2  ;;  %v5915_v49 = vrot.slane %v5914_v6, 2  ;;  %v4257_v59 = vmul.f32 1.442695, %v4256_v34 }
0x5634   :  { %v5923_v16 = vadd.f32 %v5922_v12, %v5921_v41  ;;  %v5916_v36 = vadd.f32 %v5915_v49, %v5914_v6 }
0x5636   :  { %v5924_v26 = vrot.slane %v5923_v16, 1  ;;  %v5917_v30 = vrot.slane %v5916_v36, 1 }
0x5638   :  { %v5925_v21 = vadd.f32 %v5924_v26, %v5923_v16  ;;  %v5918_v8 = vadd.f32 %v5917_v30, %v5916_v36 }
0x563a   :  { %v5931_v7 = vpack.c.bf16 %v5925_v21, %v5925_v21  ;;  %v5930_v46 = vpack.c.bf16 %v5918_v8, %v5918_v8 }
0x563c   :  { %v5939_v3 = vunpack.c.l.b16 %v5931_v7  ;;  %v5938_v63 = vunpack.c.l.b16 %v5930_v46 }
0x563e   :  { %v5940_v48 = vsel %vm651_vm5, %v5939_v3, %v5938_v63  ;;  %v2258_v3 = vsub.f32 %v8950_v31, %v8978_v47 }
0x563f   :  { %v5941_v14 = vpack.c.b16 %v5940_v48, %v5940_v48  ;;  %v3257_v48 = vsub.f32 %v9226_v17, %v9254_v60 }
0x5640   :  { %v2259_v63 = vmul.f32 1.442695, %v2258_v3 }
0x5641   :  { %7343 = vmatmul.mubr.msk.bf16.vlgmr.msra.gmra.mrb[124].mxu0 %vm450_vm4, %v5941_v14 }
0x5642   :  { %7355 = vmatpush3.bf16.msra.mxu0 %v7587_v13  ;;  %7358 = vmatprep.mubr.msk.bf16.mxu0 %vm8134_vm0, %v8133_v0  ;;  %v3258_v13 = vmul.f32 1.442695, %v3257_v48 }
0x5643   :  { %7356 = vmatprep.subr.bf16.mxu0 %v8133_v0 }
0x5646   :  { %7357 = vmatpush3.bf16.msra.mxu0 %v7588_v10 }
0x5647   :  { %7370 = vmatprep.subr.bf16.mxu0 %v8133_v0 }
0x5649   :  { %7359 = vmatmul.mubr.msk.bf16.vlgmr.msra.gmra.mrb[128].mxu0 %vm450_vm4, %v9814_v45 }
0x564a   :  { %7374 = vmatprep.mubr.msk.bf16.mxu0 %vm8134_vm0, %v8133_v0  ;;  %7371 = vmatpush3.bf16.msra.mxu0 %v7589_v22 }
0x564b   :  { %7372 = vmatprep.subr.bf16.mxu0 %v8133_v0 }
0x564e   :  { %7373 = vmatpush3.bf16.msra.mxu0 %v7590_v37 }
0x5714   :  { %v5991_v54 = vpop.f32.mrb[124].mxu0 }
0x5715   :  { %v6044_v52 = vadd.f32 %v9883_v15, %v5991_v54  ;;  %v7344_v23 = vpop.f32.mrb[125].mxu0 }
0x5716   :  { %v5994_v58 = vpop.f32.mrb[126].mxu0 }
0x5717   :  { %v7345_v2 = vpop.f32.mrb[127].mxu0 }
0x571c   :  { %v6099_v5 = vpop.f32.mrb[128].mxu0 }
0x571d   :  { %v6105_v24 = vadd.f32 %v6099_v5, %v6044_v52  ;;  %v7360_v51 = vpop.f32.mrb[129].mxu0 }
0x571e   :  { %v6102_v57 = vpop.f32.mrb[130].mxu0 }
0x571f   :  { %v6162_v40 = vadd.f32 %v9889_v44, %v6105_v24  ;;  %v7361_v19 = vpop.f32.mrb[131].mxu0 }
0x5721   :  { %v6163_v32 = vadd.f32 %v9703_v61, %v6162_v40 }
0x5723   :  { %7775 = vtanh.f32 %v6163_v32  ;;  %v6558_v28 = vmul.f32 -1.442695, %v6163_v32 }
0x5725   :  { %7777 = vpow2.f32 %v6558_v28 }
0x572d   :  { %v7776_v45 = vpop.eup %7775 }
0x572e   :  { %6173 = vrot.lane.b32.xlu1 %v7776_v45, %s8125_s5 }
0x572f   :  { %v7778_v33 = vpop.eup %7777 }
0x5730   :  { %v6167_v15 = vadd.f32 1.0, %v7778_v33 }
0x5732   :  { %7779 = vrcp.f32 %v6167_v15 }
0x573c   :  { %v7780_v53 = vpop.eup %7779 }
0x573d   :  { %v6171_v38 = vmul.f32 %v7780_v53, %v9709_v56  ;;  %v1260_v56 = vsub.f32 %v8725_v11, %v8757_v4 }
0x573f   :  { %v1261_v55 = vmul.f32 1.442695, %v1260_v56 }
0x57a0   :  { %v6174_v25 = vpop.permute.xlu1 %6173 }
0x57a1   :  { %v6176_v18 = vmul.f32 %v7780_v53, %v6174_v25 }
0x57a3   :  { %6178 = vrot.lane.b32.xlu1 %v6176_v18, %s8136_s3 }
0x5815   :  { %v6179_v44 = vpop.permute.xlu1 %6178 }
0x5816   :  { %v6181_v9 = vadd.f32 %v6179_v44, %v6171_v38 }
0x5818   :  { %7781 = vtanh.f32 %v6181_v9 }
0x5819   :  { %7783 = vpow2.f32 %v1261_v55 }
0x581a   :  { %7785 = vpow2.f32 %v4257_v59 }
0x5822   :  { %v7782_v61 = vpop.eup %7781 }
0x5823   :  { %6184 = vrot.lane.b32.xlu0 %v7782_v61, %s8125_s5  ;;  %v7784_v39 = vpop.eup %7783  ;;  %s6271_s5 = sshll.u32 %s8138_s20, 4  ;;  %s6272_s5 = int_to_ptr.vmem [resolvable:$true] %s6271_s5 }
0x5824   :  { %v1263_v62 = vsel %vm1256_vm10, %v7784_v39, 0.0  ;;  %v7786_v0 = vpop.eup %7785  ;;  %s8081_s29 = scalar_lea.vmem %s6272_s5, 192  ;;  %p8086_p13 = scmp.lt.s32.totalorder %s6272_s5, %s6272_s5 }
0x5825   :  { %v4259_v41 = vsel %vm1256_vm10, %v7786_v0, 0.0  ;;  %p8082_p12 = scmp.ne.s32.totalorder %s6272_s5, %s8081_s29  ;;  %p8087_p0 = scmp.lt.s32.totalorder %s8081_s29, %s8081_s29 }
0x5827   :  { %p8088_p1 = por %p8087_p0, %p8086_p13 }
0x5829   :  { %p8089_p2 = pnand %p8088_p1, %p8082_p12 }
0x5895   :  { %v6185_v42 = vpop.permute.xlu0 %6184 }
0x5896   :  { %v6187_v43 = vmul.f32 %v7780_v53, %v6185_v42 }
0x5898   :  { %v6188_v20 = vpack.c.bf16 %v6187_v43, %v6187_v43 }
0x589a   :  { %6194 = vrot.lane.b32.xlu1 %v6188_v20, %s8136_s3 }
0x58be   :  { %1264 = vadd.xlane.f32.xlu1 %v1263_v62 }
0x58c2   :  { %4260 = vadd.xlane.f32.xlu1 %v4259_v41 }
0x590c   :  { %v6195_v6 = vpop.permute.xlu1 %6194 }
0x590d   :  { %7375 = vmatmul.mubr.msk.bf16.vlgmr.msra.gmra.mrb[132].mxu0 %vm450_vm4, %v6195_v6 }
0x594b   :  { %v1265_v12 = vpop.xlane.xlu1 %1264 }
0x594c   :  { %7787 = vlog2.f32 %v1265_v12 }
0x594f   :  { %v4261_v49 = vpop.xlane.xlu1 %4260 }
0x5950   :  { %7789 = vlog2.f32 %v4261_v49 }
0x5951   :  { %7791 = vpow2.f32 %v2259_v63 }
0x5952   :  { %7793 = vpow2.f32 %v3258_v13 }
0x5956   :  { %v7788_v16 = vpop.eup %7787 }
0x5957   :  { %v1267_v36 = vmul.f32 0.6931472, %v7788_v16 }
0x5959   :  { %v1268_v26 = vadd.f32 %v1267_v36, %v8757_v4  ;;  %v5255_v4 = vsub.f32 %v9728_v50, %v9756_v27 }
0x595a   :  { %v7790_v30 = vpop.eup %7789 }
0x595b   :  { %v1269_v21 = vsub.f32 %v8725_v11, %v1268_v26  ;;  %v4263_v8 = vmul.f32 0.6931472, %v7790_v30  ;;  %v5256_v11 = vmul.f32 1.442695, %v5255_v4  ;;  %v7792_v23 = vpop.eup %7791 }
0x595c   :  { %v2261_v58 = vsel %vm1256_vm10, %v7792_v23, 0.0  ;;  %v7794_v2 = vpop.eup %7793 }
0x595d   :  { %1270 = vst [vmem:[#allocation22] sm:$0x3] %v1269_v21  ;;  %v4264_v7 = vadd.f32 %v4263_v8, %v9480_v29  ;;  %7795 = vpow2.f32 %v5256_v11  ;;  %v3260_v5 = vsel %vm1256_vm10, %v7794_v2, 0.0 }
0x595f   :  { %v4265_v46 = vsub.f32 %v9452_v35, %v4264_v7 }
0x5961   :  { %4267 = vst [vmem:[#allocation22 + $0x6] sm:$0x3] %v4265_v46 }
0x5967   :  { %v7796_v24 = vpop.eup %7795 }
0x5968   :  { %v5258_v51 = vsel %vm1256_vm10, %v7796_v24, 0.0 }
0x59e0   :  { %v6245_v14 = vpop.f32.mrb[132].mxu0 }
0x59e1   :  { %v6246_v29 = vadd.f32 %v9725_v1, %v6245_v14  ;;  %v7376_v10 = vpop.f32.mrb[133].mxu0 }
0x59e2   :  { %v6248_v35 = vpop.f32.mrb[134].mxu0 }
0x59e3   :  { %v7377_v54 = vpop.f32.mrb[135].mxu0  ;;  %v6251_v52 = vsel %vm1256_vm10, %v6246_v29, -inf }
0x59e4   :  { %6252 = vmax.xlane.f32.xlu0 %v6251_v52 }
0x59e8   :  { %2262 = vadd.xlane.f32.xlu0 %v2261_v58 }
0x59ec   :  { %3261 = vadd.xlane.f32.xlu0 %v3260_v5 }
0x59f0   :  { %5259 = vadd.xlane.f32.xlu0 %v5258_v51 }
0x5a71   :  { %v6253_v1 = vpop.xlane.xlu0 %6252 }
0x5a72   :  { %v6254_v57 = vsub.f32 %v6246_v29, %v6253_v1 }
0x5a74   :  { %v6255_v40 = vmul.f32 1.442695, %v6254_v57 }
0x5a75   :  { %v2263_v19 = vpop.xlane.xlu0 %2262 }
0x5a76   :  { %7797 = vpow2.f32 %v6255_v40 }
0x5a77   :  { %7799 = vlog2.f32 %v2263_v19 }
0x5a79   :  { %v3262_v32 = vpop.xlane.xlu0 %3261 }
0x5a7a   :  { %7801 = vlog2.f32 %v3262_v32 }
0x5a7d   :  { %v5260_v45 = vpop.xlane.xlu0 %5259 }
0x5a7e   :  { %7803 = vlog2.f32 %v5260_v45 }
0x5a80   :  { %v7798_v28 = vpop.eup %7797 }
0x5a81   :  { %v7800_v33 = vpop.eup %7799  ;;  %v6257_v15 = vsel %vm1256_vm10, %v7798_v28, 0.0 }
0x5a82   :  { %v2265_v53 = vmul.f32 0.6931472, %v7800_v33  ;;  %6258 = vadd.xlane.f32.xlu1 %v6257_v15 }
0x5a84   :  { %v7802_v25 = vpop.eup %7801  ;;  %v2266_v18 = vadd.f32 %v2265_v53, %v8978_v47 }
0x5a85   :  { %v3264_v38 = vmul.f32 0.6931472, %v7802_v25 }
0x5a86   :  { %v2267_v44 = vsub.f32 %v8950_v31, %v2266_v18 }
0x5a87   :  { %v3265_v9 = vadd.f32 %v3264_v38, %v9254_v60 }
0x5a88   :  { %v7804_v61 = vpop.eup %7803  ;;  %2269 = vst [vmem:[#allocation22 + $0x2] sm:$0x3] %v2267_v44 }
0x5a89   :  { %v3266_v22 = vsub.f32 %v9226_v17, %v3265_v9  ;;  %v5262_v37 = vmul.f32 0.6931472, %v7804_v61 }
0x5a8b   :  { %3268 = vst [vmem:[#allocation22 + $0x4] sm:$0x3] %v3266_v22  ;;  %v5263_v42 = vadd.f32 %v5262_v37, %v9756_v27 }
0x5a8d   :  { %v5264_v43 = vsub.f32 %v9728_v50, %v5263_v42 }
0x5a8f   :  { %5266 = vst [vmem:[#allocation22 + $0x8] sm:$0x3] %v5264_v43 }
0x5b0f   :  { %v6259_v20 = vpop.xlane.xlu1 %6258 }
0x5b10   :  { %7805 = vlog2.f32 %v6259_v20 }
0x5b1a   :  { %v7806_v56 = vpop.eup %7805 }
0x5b1b   :  { %v6261_v47 = vmul.f32 0.6931472, %v7806_v56 }
0x5b1d   :  { %v6262_v31 = vadd.f32 %v6261_v47, %v6253_v1 }
0x5b1f   :  { %v6263_v55 = vsub.f32 %v6246_v29, %v6262_v31 }
0x5b21   :  { %6265 = vst [vmem:[#allocation22 + $0xa] sm:$0x3] %v6263_v55 }
0x5b22   :  { %8092 = shalt.err (!%p8089_p2)
}
0x5b23   :  { %s8093_s7 = scalar_lea.hbm %s10001_s24, 192 }
0x5b24   :  { %p8094_p3 = scmp.ne.s32.totalorder %s10001_s24, %s8093_s7  ;;  %p8097_p4 = scmp.lt.u32.totalorder %s8093_s7, %s10001_s24 }
0x5b26   :  { %p8099_p5 = pnand %p8097_p4, %p8094_p3 }
0x5b28   :  { %8102 = shalt.err (!%p8099_p5)
}
0x5b29   :  { %s8139_s21 = smov 2  }
0x5b2a   :  { %6277 = dma.vmem_to_hbm [thread:$0]  %s6272_s5, 192, %s10001_s24, [#allocation4], %s8136_s3, %s8136_s3, %s8139_s21  }
0x5b2b   :  { %8117 = dma.done.wait [#allocation4], 192  }
0x5b2c   :  { %8118 = vsyncadd [#allocation4], 4294967104 }
0x5b2d   :  { %6281 = vsyncpa [#allocation3], 1 }
0x5b2e   :  { %6282 = vsyncpa [#allocation6], 1 }
0x5b2f   :  { %6283 = vsyncpa [#allocation9], 1 }
0x5b30   :  { %6284 = vsyncpa [#allocation12], 1 }
0x5b31   :  { %6285 = vsyncpa [#allocation15], 1 }
0x5b32   :  { %6286 = vsyncpa [#allocation18], 1 }
0x5b33   :  { %6287 = vsyncpa [#allocation21], 1 }
0x5b34   :  { %6288 = vsyncpa [#allocation4], 1 }

</bundles_post_ra>
